<compile_context>
chip_gen: v5e
topology: v5e:2x2
jax: 0.10.0
libtpu: 0.0.40
codegen_flags: <defaults>
</compile_context>

<pallas_src>
import numpy as np
import jax
import jax.numpy as jnp
from jax.experimental import pallas as pl
from jax.experimental.pallas import tpu as pltpu


MSSSIM_WEIGHTS = np.asarray([0.0448, 0.2856, 0.3001, 0.2363, 0.1333],
                            dtype=np.float32)


# ----------------------------------------------------------------------------
# host-side constant matrices (numpy, built at trace time from static shapes)
# ----------------------------------------------------------------------------
def _gaussian_1d(window_size, sigma=1.5):
    xs = np.arange(window_size, dtype=np.float64)
    g = np.exp(-((xs - window_size // 2) ** 2) / (2.0 * sigma ** 2))
    g = g / g.sum()
    return g.astype(np.float32)


def _banded_h(K, H):
    """(OH, H): G[o, o+k] = g[k].  G @ X = valid 1-D gaussian filter along H."""
    g = _gaussian_1d(K)
    OH = H - K + 1
    m = np.zeros((OH, H), dtype=np.float32)
    for k in range(K):
        m[np.arange(OH), np.arange(OH) + k] = g[k]
    return m


def _banded_w_blockdiag(K, W, nc):
    """(nc*W, nc*OW) block-diagonal: per plane n, B[nW+o+k, nOW+o] = g[k].
    Y @ B = valid 1-D gaussian filter along W inside each plane's lane block."""
    g = _gaussian_1d(K)
    OW = W - K + 1
    blk = np.zeros((W, OW), dtype=np.float32)
    for k in range(K):
        blk[np.arange(OW) + k, np.arange(OW)] = g[k]
    m = np.zeros((nc * W, nc * OW), dtype=np.float32)
    for n in range(nc):
        m[n * W:(n + 1) * W, n * OW:(n + 1) * OW] = blk
    return m


def _pool_h(H):
    OH = H // 2
    m = np.zeros((OH, H), dtype=np.float32)
    m[np.arange(OH), 2 * np.arange(OH)] = 0.5
    m[np.arange(OH), 2 * np.arange(OH) + 1] = 0.5
    return m


def _pool_w_blockdiag(W, nc):
    OW = W // 2
    blk = np.zeros((W, OW), dtype=np.float32)
    blk[2 * np.arange(OW), np.arange(OW)] = 0.5
    blk[2 * np.arange(OW) + 1, np.arange(OW)] = 0.5
    m = np.zeros((nc * W, nc * OW), dtype=np.float32)
    for n in range(nc):
        m[n * W:(n + 1) * W, n * OW:(n + 1) * OW] = blk
    return m


# ----------------------------------------------------------------------------
# per-level fused kernel (SSIM + optional 2x2 avg-pool for the next level)
# ----------------------------------------------------------------------------
def _level_body(x1_ref, x2_ref, gh_ref, bw_ref, ret_ref, cs_ref):
    x1 = x1_ref[...]            # (H, NC*W) float32
    x2 = x2_ref[...]
    gh = gh_ref[...]            # (OH, H)
    bw = bw_ref[...]            # (NC*W, NC*OW)

    # dynamic range L exactly as in the torch reference (val_range=None branch)
    max_val = jnp.where(jnp.max(x1) > 128.0, 255.0, 1.0)
    min_val = jnp.where(jnp.min(x1) < -0.5, -1.0, 0.0)
    L = max_val - min_val
    C1 = (0.01 * L) ** 2
    C2 = (0.03 * L) ** 2

    def conv(z):
        # depthwise "valid" gaussian conv, batched over all planes, on the MXU
        t = jnp.dot(gh, z, preferred_element_type=jnp.float32)     # (OH, NC*W)
        return jnp.dot(t, bw, preferred_element_type=jnp.float32)  # (OH, NC*OW)

    mu1 = conv(x1)
    mu2 = conv(x2)
    mu1_sq = mu1 * mu1
    mu2_sq = mu2 * mu2
    mu1_mu2 = mu1 * mu2
    sigma1_sq = conv(x1 * x1) - mu1_sq
    sigma2_sq = conv(x2 * x2) - mu2_sq
    sigma12 = conv(x1 * x2) - mu1_mu2

    v1 = 2.0 * sigma12 + C2
    v2 = sigma1_sq + sigma2_sq + C2
    inv_v2 = pl.reciprocal(v2)                         # EUP, shared
    cs_map = v1 * inv_v2
    inv_d1 = pl.reciprocal(mu1_sq + mu2_sq + C1)
    ssim_map = (2.0 * mu1_mu2 + C1) * cs_map * inv_d1

    # size_average=True path of the reference
    ret_ref[...] = jnp.broadcast_to(jnp.mean(ssim_map), (1, 1))
    cs_ref[...] = jnp.broadcast_to(jnp.mean(cs_map), (1, 1))


def _make_level_kernel(with_pool):
    if with_pool:
        def kernel(x1_ref, x2_ref, gh_ref, bw_ref, ph_ref, pw_ref,
                   ret_ref, cs_ref, p1_ref, p2_ref):
            _level_body(x1_ref, x2_ref, gh_ref, bw_ref, ret_ref, cs_ref)
            # fused avg_pool2d(2,2) for the next level: P_h @ X @ B_pw
            x1 = x1_ref[...]
            x2 = x2_ref[...]
            ph = ph_ref[...]            # (H//2, H)
            pw = pw_ref[...]            # (NC*W, NC*(W//2)) block-diagonal
            p1_ref[...] = jnp.dot(
                jnp.dot(ph, x1, preferred_element_type=jnp.float32), pw,
                preferred_element_type=jnp.float32)
            p2_ref[...] = jnp.dot(
                jnp.dot(ph, x2, preferred_element_type=jnp.float32), pw,
                preferred_element_type=jnp.float32)
        return kernel

    def kernel(x1_ref, x2_ref, gh_ref, bw_ref, ret_ref, cs_ref):
        _level_body(x1_ref, x2_ref, gh_ref, bw_ref, ret_ref, cs_ref)
    return kernel


def _ssim_level_call(x1, x2, nc, H, W, window_size, do_pool):
    """x1, x2: (H, nc*W) float32 arrays.  Returns (ssim, cs, pooled1, pooled2)."""
    K = min(window_size, H, W)           # real_size = min(window_size, H, W)
    OH = H - K + 1
    lanes = nc * W

    gh = jnp.asarray(_banded_h(K, H))
    bw = jnp.asarray(_banded_w_blockdiag(K, W, nc))

    inputs = [x1, x2, gh, bw]
    out_shapes = [jax.ShapeDtypeStruct((1, 1), jnp.float32),
                  jax.ShapeDtypeStruct((1, 1), jnp.float32)]
    if do_pool:
        ph = jnp.asarray(_pool_h(H))
        pw = jnp.asarray(_pool_w_blockdiag(W, nc))
        inputs += [ph, pw]
        pooled_shape = (H // 2, nc * (W // 2))
        out_shapes += [jax.ShapeDtypeStruct(pooled_shape, jnp.float32),
                       jax.ShapeDtypeStruct(pooled_shape, jnp.float32)]

    vmem_spec = pl.BlockSpec(memory_space=pltpu.MemorySpace.VMEM)

    # rough footprint: inputs (double-buffered) + intermediates + constants
    est = 4 * (20 * H * lanes + 8 * OH * lanes) + 4 * int(gh.size + bw.size)
    est += 2 << 20
    vmem_limit = int(min(max(est, 32 * 2 ** 20), 48 * 2 ** 20))

    outs = pl.pallas_call(
        _make_level_kernel(do_pool),
        out_shape=tuple(out_shapes),
        in_specs=[vmem_spec] * len(inputs),
        out_specs=tuple([vmem_spec] * len(out_shapes)),
        compiler_params=pltpu.CompilerParams(vmem_limit_bytes=vmem_limit),
    )(*inputs)

    if do_pool:
        ret, cs, p1, p2 = outs
        return ret[0, 0], cs[0, 0], p1, p2
    ret, cs = outs
    return ret[0, 0], cs[0, 0], None, None


# ----------------------------------------------------------------------------
# MS-SSIM driver: 5 scales, per-scale glue (stack/pow/prod of 5 scalars) in JAX
# ----------------------------------------------------------------------------
def msssim_pallas(img1, img2, window_size=11, size_average=True):
    # The module only exercises the size_average=True path.
    n, c, h, w = img1.shape
    nc = n * c
    levels = int(MSSSIM_WEIGHTS.shape[0])
    weights = jnp.asarray(MSSSIM_WEIGHTS)

    # kernel layout: (H, N*C*W) — each plane occupies a contiguous lane block
    x1 = jnp.transpose(img1.astype(jnp.float32), (2, 0, 1, 3)).reshape(h, nc * w)
    x2 = jnp.transpose(img2.astype(jnp.float32), (2, 0, 1, 3)).reshape(h, nc * w)

    mssim, mcs = [], []
    cur_h, cur_w = h, w
    for lvl in range(levels):
        do_pool = lvl < levels - 1       # final pool in the reference is unused
        sim, cs, x1n, x2n = _ssim_level_call(
            x1, x2, nc, cur_h, cur_w, window_size, do_pool)
        mssim.append(sim)
        mcs.append(cs)
        if do_pool:
            x1, x2 = x1n, x2n
            cur_h //= 2
            cur_w //= 2

    mssim = jnp.stack(mssim)
    mcs = jnp.stack(mcs)
    pow1 = mcs ** weights
    pow2 = mssim ** weights
    # NOTE: matches the reference exactly: prod(pow1[:-1] * pow2[-1])
    output = jnp.prod(pow1[:-1] * pow2[-1])
    return output


class MSSSIM:
    def __init__(self, window_size=11, size_average=True, channel=1):
        self.window_size = window_size
        self.size_average = size_average
        self.channel = channel

    def __call__(self, img1, img2):
        return msssim_pallas(img1, img2, window_size=self.window_size,
                             size_average=self.size_average)


if __name__ == "__main__":
    key = jax.random.PRNGKey(0)
    k1, k2 = jax.random.split(key)
    n, c, h, w = 2, 3, 32, 32   # spatial 32 so all 5 MS-SSIM scales are valid
    img1 = jax.random.uniform(k1, (n, c, h, w), dtype=jnp.float32)
    noise = jax.random.uniform(k2, (n, c, h, w), dtype=jnp.float32)
    img2 = jnp.clip(img1 + 0.1 * (noise - 0.5), 0.0, 1.0)

    model = MSSSIM(window_size=11, size_average=True, channel=c)
    fn = jax.jit(lambda a, b: model(a, b))
    out = fn(img1, img2)
    out = jax.block_until_ready(out)
    print("KERNEL_OK")
</pallas_src>

<mosaic_0001>
module attributes {stable_mosaic.version = 11 : i64} {
  func.func @kernel(%arg0: memref<32x192xf32, #tpu.memory_space<vmem>>, %arg1: memref<32x192xf32, #tpu.memory_space<vmem>>, %arg2: memref<22x32xf32, #tpu.memory_space<vmem>>, %arg3: memref<192x132xf32, #tpu.memory_space<vmem>>, %arg4: memref<16x32xf32, #tpu.memory_space<vmem>>, %arg5: memref<192x96xf32, #tpu.memory_space<vmem>>, %arg6: memref<1x1xf32, #tpu.memory_space<vmem>>, %arg7: memref<1x1xf32, #tpu.memory_space<vmem>>, %arg8: memref<16x96xf32, #tpu.memory_space<vmem>>, %arg9: memref<16x96xf32, #tpu.memory_space<vmem>>) attributes {dimension_semantics = [], scalar_prefetch = 0 : i64, scratch_operands = 0 : i64, tpu.core_type = #tpu.core_type<tc>} {
    %c0 = arith.constant 0 : index
    %c0_0 = arith.constant 0 : index
    %0 = vector.load %arg0[%c0, %c0_0] : memref<32x192xf32, #tpu.memory_space<vmem>>, vector<32x192xf32>
    %c0_1 = arith.constant 0 : index
    %c0_2 = arith.constant 0 : index
    %1 = vector.load %arg1[%c0_1, %c0_2] : memref<32x192xf32, #tpu.memory_space<vmem>>, vector<32x192xf32>
    %c0_3 = arith.constant 0 : index
    %c0_4 = arith.constant 0 : index
    %2 = vector.load %arg2[%c0_3, %c0_4] : memref<22x32xf32, #tpu.memory_space<vmem>>, vector<22x32xf32>
    %c0_5 = arith.constant 0 : index
    %c0_6 = arith.constant 0 : index
    %3 = vector.load %arg3[%c0_5, %c0_6] : memref<192x132xf32, #tpu.memory_space<vmem>>, vector<192x132xf32>
    %4 = vector.shape_cast %0 : vector<32x192xf32> to vector<1x32x192xf32>
    %cst = arith.constant dense<0xFF800000> : vector<1xf32>
    %5 = vector.multi_reduction <maximumf>, %4, %cst [1, 2] : vector<1x32x192xf32> to vector<1xf32>
    %6 = vector.shape_cast %5 : vector<1xf32> to vector<1x1x1xf32>
    %7 = vector.extract %6[0, 0, 0] : f32 from vector<1x1x1xf32>
    %cst_7 = arith.constant 1.280000e+02 : f32
    %8 = arith.cmpf ogt, %7, %cst_7 : f32
    %cst_8 = arith.constant 2.550000e+02 : f32
    %cst_9 = arith.constant 1.000000e+00 : f32
    %9 = arith.select %8, %cst_8, %cst_9 : f32
    %10 = vector.shape_cast %0 : vector<32x192xf32> to vector<1x32x192xf32>
    %cst_10 = arith.constant dense<0x7F800000> : vector<1xf32>
    %11 = vector.multi_reduction <minimumf>, %10, %cst_10 [1, 2] : vector<1x32x192xf32> to vector<1xf32>
    %12 = vector.shape_cast %11 : vector<1xf32> to vector<1x1x1xf32>
    %13 = vector.extract %12[0, 0, 0] : f32 from vector<1x1x1xf32>
    %cst_11 = arith.constant -5.000000e-01 : f32
    %14 = arith.cmpf olt, %13, %cst_11 : f32
    %cst_12 = arith.constant -1.000000e+00 : f32
    %cst_13 = arith.constant 0.000000e+00 : f32
    %15 = arith.select %14, %cst_12, %cst_13 : f32
    %16 = arith.subf %9, %15 : f32
    %cst_14 = arith.constant 0.00999999977 : f32
    %17 = arith.mulf %cst_14, %16 : f32
    %18 = arith.mulf %17, %17 : f32
    %cst_15 = arith.constant 3.000000e-02 : f32
    %19 = arith.mulf %cst_15, %16 : f32
    %20 = arith.mulf %19, %19 : f32
    %cst_16 = arith.constant dense<0.000000e+00> : vector<22x192xf32>
    %21 = tpu.matmul %2, %0, %cst_16 {dimension_numbers = #tpu.dot_dimension_numbers<[1], [0], [0], [1], [0, 0, 1, 1], [], []>} : vector<22x32xf32>, vector<32x192xf32>, vector<22x192xf32> -> vector<22x192xf32>
    %cst_17 = arith.constant dense<0.000000e+00> : vector<22x132xf32>
    %22 = tpu.matmul %21, %3, %cst_17 {dimension_numbers = #tpu.dot_dimension_numbers<[1], [0], [0], [1], [0, 0, 1, 1], [], []>} : vector<22x192xf32>, vector<192x132xf32>, vector<22x132xf32> -> vector<22x132xf32>
    %cst_18 = arith.constant dense<0.000000e+00> : vector<22x192xf32>
    %23 = tpu.matmul %2, %1, %cst_18 {dimension_numbers = #tpu.dot_dimension_numbers<[1], [0], [0], [1], [0, 0, 1, 1], [], []>} : vector<22x32xf32>, vector<32x192xf32>, vector<22x192xf32> -> vector<22x192xf32>
    %cst_19 = arith.constant dense<0.000000e+00> : vector<22x132xf32>
    %24 = tpu.matmul %23, %3, %cst_19 {dimension_numbers = #tpu.dot_dimension_numbers<[1], [0], [0], [1], [0, 0, 1, 1], [], []>} : vector<22x192xf32>, vector<192x132xf32>, vector<22x132xf32> -> vector<22x132xf32>
    %25 = arith.mulf %22, %22 : vector<22x132xf32>
    %26 = arith.mulf %24, %24 : vector<22x132xf32>
    %27 = arith.mulf %22, %24 : vector<22x132xf32>
    %28 = arith.mulf %0, %0 : vector<32x192xf32>
    %cst_20 = arith.constant dense<0.000000e+00> : vector<22x192xf32>
    %29 = tpu.matmul %2, %28, %cst_20 {dimension_numbers = #tpu.dot_dimension_numbers<[1], [0], [0], [1], [0, 0, 1, 1], [], []>} : vector<22x32xf32>, vector<32x192xf32>, vector<22x192xf32> -> vector<22x192xf32>
    %cst_21 = arith.constant dense<0.000000e+00> : vector<22x132xf32>
    %30 = tpu.matmul %29, %3, %cst_21 {dimension_numbers = #tpu.dot_dimension_numbers<[1], [0], [0], [1], [0, 0, 1, 1], [], []>} : vector<22x192xf32>, vector<192x132xf32>, vector<22x132xf32> -> vector<22x132xf32>
    %31 = arith.subf %30, %25 : vector<22x132xf32>
    %32 = arith.mulf %1, %1 : vector<32x192xf32>
    %cst_22 = arith.constant dense<0.000000e+00> : vector<22x192xf32>
    %33 = tpu.matmul %2, %32, %cst_22 {dimension_numbers = #tpu.dot_dimension_numbers<[1], [0], [0], [1], [0, 0, 1, 1], [], []>} : vector<22x32xf32>, vector<32x192xf32>, vector<22x192xf32> -> vector<22x192xf32>
    %cst_23 = arith.constant dense<0.000000e+00> : vector<22x132xf32>
    %34 = tpu.matmul %33, %3, %cst_23 {dimension_numbers = #tpu.dot_dimension_numbers<[1], [0], [0], [1], [0, 0, 1, 1], [], []>} : vector<22x192xf32>, vector<192x132xf32>, vector<22x132xf32> -> vector<22x132xf32>
    %35 = arith.subf %34, %26 : vector<22x132xf32>
    %36 = arith.mulf %0, %1 : vector<32x192xf32>
    %cst_24 = arith.constant dense<0.000000e+00> : vector<22x192xf32>
    %37 = tpu.matmul %2, %36, %cst_24 {dimension_numbers = #tpu.dot_dimension_numbers<[1], [0], [0], [1], [0, 0, 1, 1], [], []>} : vector<22x32xf32>, vector<32x192xf32>, vector<22x192xf32> -> vector<22x192xf32>
    %cst_25 = arith.constant dense<0.000000e+00> : vector<22x132xf32>
    %38 = tpu.matmul %37, %3, %cst_25 {dimension_numbers = #tpu.dot_dimension_numbers<[1], [0], [0], [1], [0, 0, 1, 1], [], []>} : vector<22x192xf32>, vector<192x132xf32>, vector<22x132xf32> -> vector<22x132xf32>
    %39 = arith.subf %38, %27 : vector<22x132xf32>
    %cst_26 = arith.constant 2.000000e+00 : f32
    %40 = vector.broadcast %cst_26 : f32 to vector<22x132xf32>
    %41 = arith.mulf %40, %39 : vector<22x132xf32>
    %42 = vector.broadcast %20 : f32 to vector<22x132xf32>
    %43 = arith.addf %41, %42 : vector<22x132xf32>
    %44 = arith.addf %31, %35 : vector<22x132xf32>
    %45 = vector.broadcast %20 : f32 to vector<22x132xf32>
    %46 = arith.addf %44, %45 : vector<22x132xf32>
    %47 = tpu.reciprocal %46 : vector<22x132xf32> -> vector<22x132xf32>
    %48 = arith.mulf %43, %47 : vector<22x132xf32>
    %49 = arith.addf %25, %26 : vector<22x132xf32>
    %50 = vector.broadcast %18 : f32 to vector<22x132xf32>
    %51 = arith.addf %49, %50 : vector<22x132xf32>
    %52 = tpu.reciprocal %51 : vector<22x132xf32> -> vector<22x132xf32>
    %cst_27 = arith.constant 2.000000e+00 : f32
    %53 = vector.broadcast %cst_27 : f32 to vector<22x132xf32>
    %54 = arith.mulf %53, %27 : vector<22x132xf32>
    %55 = vector.broadcast %18 : f32 to vector<22x132xf32>
    %56 = arith.addf %54, %55 : vector<22x132xf32>
    %57 = arith.mulf %56, %48 : vector<22x132xf32>
    %58 = arith.mulf %57, %52 : vector<22x132xf32>
    %59 = vector.shape_cast %58 : vector<22x132xf32> to vector<1x22x132xf32>
    %cst_28 = arith.constant dense<0.000000e+00> : vector<1xf32>
    %60 = vector.multi_reduction <add>, %59, %cst_28 [1, 2] : vector<1x22x132xf32> to vector<1xf32>
    %61 = vector.shape_cast %60 : vector<1xf32> to vector<1x1x1xf32>
    %62 = vector.extract %61[0, 0, 0] : f32 from vector<1x1x1xf32>
    %cst_29 = arith.constant 2.904000e+03 : f32
    %63 = arith.divf %62, %cst_29 : f32
    %64 = vector.broadcast %63 : f32 to vector<1x1xf32>
    %c0_30 = arith.constant 0 : index
    %c0_31 = arith.constant 0 : index
    %65 = vector.load %arg6[%c0_30, %c0_31] : memref<1x1xf32, #tpu.memory_space<vmem>>, vector<1x1xf32>
    tpu.vector_store %arg6[%c0_30, %c0_31], %64 {strides = array<i32>} : memref<1x1xf32, #tpu.memory_space<vmem>>, vector<1x1xf32>,
    %66 = vector.shape_cast %48 : vector<22x132xf32> to vector<1x22x132xf32>
    %cst_32 = arith.constant dense<0.000000e+00> : vector<1xf32>
    %67 = vector.multi_reduction <add>, %66, %cst_32 [1, 2] : vector<1x22x132xf32> to vector<1xf32>
    %68 = vector.shape_cast %67 : vector<1xf32> to vector<1x1x1xf32>
    %69 = vector.extract %68[0, 0, 0] : f32 from vector<1x1x1xf32>
    %cst_33 = arith.constant 2.904000e+03 : f32
    %70 = arith.divf %69, %cst_33 : f32
    %71 = vector.broadcast %70 : f32 to vector<1x1xf32>
    %c0_34 = arith.constant 0 : index
    %c0_35 = arith.constant 0 : index
    %72 = vector.load %arg7[%c0_34, %c0_35] : memref<1x1xf32, #tpu.memory_space<vmem>>, vector<1x1xf32>
    tpu.vector_store %arg7[%c0_34, %c0_35], %71 {strides = array<i32>} : memref<1x1xf32, #tpu.memory_space<vmem>>, vector<1x1xf32>,
    %c0_36 = arith.constant 0 : index
    %c0_37 = arith.constant 0 : index
    %73 = vector.load %arg0[%c0_36, %c0_37] : memref<32x192xf32, #tpu.memory_space<vmem>>, vector<32x192xf32>
    %c0_38 = arith.constant 0 : index
    %c0_39 = arith.constant 0 : index
    %74 = vector.load %arg1[%c0_38, %c0_39] : memref<32x192xf32, #tpu.memory_space<vmem>>, vector<32x192xf32>
    %c0_40 = arith.constant 0 : index
    %c0_41 = arith.constant 0 : index
    %75 = vector.load %arg4[%c0_40, %c0_41] : memref<16x32xf32, #tpu.memory_space<vmem>>, vector<16x32xf32>
    %c0_42 = arith.constant 0 : index
    %c0_43 = arith.constant 0 : index
    %76 = vector.load %arg5[%c0_42, %c0_43] : memref<192x96xf32, #tpu.memory_space<vmem>>, vector<192x96xf32>
    %cst_44 = arith.constant dense<0.000000e+00> : vector<16x192xf32>
    %77 = tpu.matmul %75, %73, %cst_44 {dimension_numbers = #tpu.dot_dimension_numbers<[1], [0], [0], [1], [0, 0, 1, 1], [], []>} : vector<16x32xf32>, vector<32x192xf32>, vector<16x192xf32> -> vector<16x192xf32>
    %cst_45 = arith.constant dense<0.000000e+00> : vector<16x96xf32>
    %78 = tpu.matmul %77, %76, %cst_45 {dimension_numbers = #tpu.dot_dimension_numbers<[1], [0], [0], [1], [0, 0, 1, 1], [], []>} : vector<16x192xf32>, vector<192x96xf32>, vector<16x96xf32> -> vector<16x96xf32>
    %c0_46 = arith.constant 0 : index
    %c0_47 = arith.constant 0 : index
    %79 = vector.load %arg8[%c0_46, %c0_47] : memref<16x96xf32, #tpu.memory_space<vmem>>, vector<16x96xf32>
    tpu.vector_store %arg8[%c0_46, %c0_47], %78 {strides = array<i32>} : memref<16x96xf32, #tpu.memory_space<vmem>>, vector<16x96xf32>,
    %cst_48 = arith.constant dense<0.000000e+00> : vector<16x192xf32>
    %80 = tpu.matmul %75, %74, %cst_48 {dimension_numbers = #tpu.dot_dimension_numbers<[1], [0], [0], [1], [0, 0, 1, 1], [], []>} : vector<16x32xf32>, vector<32x192xf32>, vector<16x192xf32> -> vector<16x192xf32>
    %cst_49 = arith.constant dense<0.000000e+00> : vector<16x96xf32>
    %81 = tpu.matmul %80, %76, %cst_49 {dimension_numbers = #tpu.dot_dimension_numbers<[1], [0], [0], [1], [0, 0, 1, 1], [], []>} : vector<16x192xf32>, vector<192x96xf32>, vector<16x96xf32> -> vector<16x96xf32>
    %c0_50 = arith.constant 0 : index
    %c0_51 = arith.constant 0 : index
    %82 = vector.load %arg9[%c0_50, %c0_51] : memref<16x96xf32, #tpu.memory_space<vmem>>, vector<16x96xf32>
    tpu.vector_store %arg9[%c0_50, %c0_51], %81 {strides = array<i32>} : memref<16x96xf32, #tpu.memory_space<vmem>>, vector<16x96xf32>,
    return
  }
}

module attributes {stable_mosaic.version = 11 : i64} {
  func.func @kernel(%arg0: memref<8x48xf32, #tpu.memory_space<vmem>>, %arg1: memref<8x48xf32, #tpu.memory_space<vmem>>, %arg2: memref<1x8xf32, #tpu.memory_space<vmem>>, %arg3: memref<48x6xf32, #tpu.memory_space<vmem>>, %arg4: memref<4x8xf32, #tpu.memory_space<vmem>>, %arg5: memref<48x24xf32, #tpu.memory_space<vmem>>, %arg6: memref<1x1xf32, #tpu.memory_space<vmem>>, %arg7: memref<1x1xf32, #tpu.memory_space<vmem>>, %arg8: memref<4x24xf32, #tpu.memory_space<vmem>>, %arg9: memref<4x24xf32, #tpu.memory_space<vmem>>) attributes {dimension_semantics = [], scalar_prefetch = 0 : i64, scratch_operands = 0 : i64, tpu.core_type = #tpu.core_type<tc>} {
    %c0 = arith.constant 0 : index
    %c0_0 = arith.constant 0 : index
    %0 = vector.load %arg0[%c0, %c0_0] : memref<8x48xf32, #tpu.memory_space<vmem>>, vector<8x48xf32>
    %c0_1 = arith.constant 0 : index
    %c0_2 = arith.constant 0 : index
    %1 = vector.load %arg1[%c0_1, %c0_2] : memref<8x48xf32, #tpu.memory_space<vmem>>, vector<8x48xf32>
    %c0_3 = arith.constant 0 : index
    %c0_4 = arith.constant 0 : index
    %2 = vector.load %arg2[%c0_3, %c0_4] : memref<1x8xf32, #tpu.memory_space<vmem>>, vector<1x8xf32>
    %c0_5 = arith.constant 0 : index
    %c0_6 = arith.constant 0 : index
    %3 = vector.load %arg3[%c0_5, %c0_6] : memref<48x6xf32, #tpu.memory_space<vmem>>, vector<48x6xf32>
    %4 = vector.shape_cast %0 : vector<8x48xf32> to vector<1x8x48xf32>
    %cst = arith.constant dense<0xFF800000> : vector<1xf32>
    %5 = vector.multi_reduction <maximumf>, %4, %cst [1, 2] : vector<1x8x48xf32> to vector<1xf32>
    %6 = vector.shape_cast %5 : vector<1xf32> to vector<1x1x1xf32>
    %7 = vector.extract %6[0, 0, 0] : f32 from vector<1x1x1xf32>
    %cst_7 = arith.constant 1.280000e+02 : f32
    %8 = arith.cmpf ogt, %7, %cst_7 : f32
    %cst_8 = arith.constant 2.550000e+02 : f32
    %cst_9 = arith.constant 1.000000e+00 : f32
    %9 = arith.select %8, %cst_8, %cst_9 : f32
    %10 = vector.shape_cast %0 : vector<8x48xf32> to vector<1x8x48xf32>
    %cst_10 = arith.constant dense<0x7F800000> : vector<1xf32>
    %11 = vector.multi_reduction <minimumf>, %10, %cst_10 [1, 2] : vector<1x8x48xf32> to vector<1xf32>
    %12 = vector.shape_cast %11 : vector<1xf32> to vector<1x1x1xf32>
    %13 = vector.extract %12[0, 0, 0] : f32 from vector<1x1x1xf32>
    %cst_11 = arith.constant -5.000000e-01 : f32
    %14 = arith.cmpf olt, %13, %cst_11 : f32
    %cst_12 = arith.constant -1.000000e+00 : f32
    %cst_13 = arith.constant 0.000000e+00 : f32
    %15 = arith.select %14, %cst_12, %cst_13 : f32
    %16 = arith.subf %9, %15 : f32
    %cst_14 = arith.constant 0.00999999977 : f32
    %17 = arith.mulf %cst_14, %16 : f32
    %18 = arith.mulf %17, %17 : f32
    %cst_15 = arith.constant 3.000000e-02 : f32
    %19 = arith.mulf %cst_15, %16 : f32
    %20 = arith.mulf %19, %19 : f32
    %cst_16 = arith.constant dense<0.000000e+00> : vector<1x48xf32>
    %21 = tpu.matmul %2, %0, %cst_16 {dimension_numbers = #tpu.dot_dimension_numbers<[1], [0], [0], [1], [0, 0, 1, 1], [], []>} : vector<1x8xf32>, vector<8x48xf32>, vector<1x48xf32> -> vector<1x48xf32>
    %cst_17 = arith.constant dense<0.000000e+00> : vector<1x6xf32>
    %22 = tpu.matmul %21, %3, %cst_17 {dimension_numbers = #tpu.dot_dimension_numbers<[1], [0], [0], [1], [0, 0, 1, 1], [], []>} : vector<1x48xf32>, vector<48x6xf32>, vector<1x6xf32> -> vector<1x6xf32>
    %cst_18 = arith.constant dense<0.000000e+00> : vector<1x48xf32>
    %23 = tpu.matmul %2, %1, %cst_18 {dimension_numbers = #tpu.dot_dimension_numbers<[1], [0], [0], [1], [0, 0, 1, 1], [], []>} : vector<1x8xf32>, vector<8x48xf32>, vector<1x48xf32> -> vector<1x48xf32>
    %cst_19 = arith.constant dense<0.000000e+00> : vector<1x6xf32>
    %24 = tpu.matmul %23, %3, %cst_19 {dimension_numbers = #tpu.dot_dimension_numbers<[1], [0], [0], [1], [0, 0, 1, 1], [], []>} : vector<1x48xf32>, vector<48x6xf32>, vector<1x6xf32> -> vector<1x6xf32>
    %25 = arith.mulf %22, %22 : vector<1x6xf32>
    %26 = arith.mulf %24, %24 : vector<1x6xf32>
    %27 = arith.mulf %22, %24 : vector<1x6xf32>
    %28 = arith.mulf %0, %0 : vector<8x48xf32>
    %cst_20 = arith.constant dense<0.000000e+00> : vector<1x48xf32>
    %29 = tpu.matmul %2, %28, %cst_20 {dimension_numbers = #tpu.dot_dimension_numbers<[1], [0], [0], [1], [0, 0, 1, 1], [], []>} : vector<1x8xf32>, vector<8x48xf32>, vector<1x48xf32> -> vector<1x48xf32>
    %cst_21 = arith.constant dense<0.000000e+00> : vector<1x6xf32>
    %30 = tpu.matmul %29, %3, %cst_21 {dimension_numbers = #tpu.dot_dimension_numbers<[1], [0], [0], [1], [0, 0, 1, 1], [], []>} : vector<1x48xf32>, vector<48x6xf32>, vector<1x6xf32> -> vector<1x6xf32>
    %31 = arith.subf %30, %25 : vector<1x6xf32>
    %32 = arith.mulf %1, %1 : vector<8x48xf32>
    %cst_22 = arith.constant dense<0.000000e+00> : vector<1x48xf32>
    %33 = tpu.matmul %2, %32, %cst_22 {dimension_numbers = #tpu.dot_dimension_numbers<[1], [0], [0], [1], [0, 0, 1, 1], [], []>} : vector<1x8xf32>, vector<8x48xf32>, vector<1x48xf32> -> vector<1x48xf32>
    %cst_23 = arith.constant dense<0.000000e+00> : vector<1x6xf32>
    %34 = tpu.matmul %33, %3, %cst_23 {dimension_numbers = #tpu.dot_dimension_numbers<[1], [0], [0], [1], [0, 0, 1, 1], [], []>} : vector<1x48xf32>, vector<48x6xf32>, vector<1x6xf32> -> vector<1x6xf32>
    %35 = arith.subf %34, %26 : vector<1x6xf32>
    %36 = arith.mulf %0, %1 : vector<8x48xf32>
    %cst_24 = arith.constant dense<0.000000e+00> : vector<1x48xf32>
    %37 = tpu.matmul %2, %36, %cst_24 {dimension_numbers = #tpu.dot_dimension_numbers<[1], [0], [0], [1], [0, 0, 1, 1], [], []>} : vector<1x8xf32>, vector<8x48xf32>, vector<1x48xf32> -> vector<1x48xf32>
    %cst_25 = arith.constant dense<0.000000e+00> : vector<1x6xf32>
    %38 = tpu.matmul %37, %3, %cst_25 {dimension_numbers = #tpu.dot_dimension_numbers<[1], [0], [0], [1], [0, 0, 1, 1], [], []>} : vector<1x48xf32>, vector<48x6xf32>, vector<1x6xf32> -> vector<1x6xf32>
    %39 = arith.subf %38, %27 : vector<1x6xf32>
    %cst_26 = arith.constant 2.000000e+00 : f32
    %40 = vector.broadcast %cst_26 : f32 to vector<1x6xf32>
    %41 = arith.mulf %40, %39 : vector<1x6xf32>
    %42 = vector.broadcast %20 : f32 to vector<1x6xf32>
    %43 = arith.addf %41, %42 : vector<1x6xf32>
    %44 = arith.addf %31, %35 : vector<1x6xf32>
    %45 = vector.broadcast %20 : f32 to vector<1x6xf32>
    %46 = arith.addf %44, %45 : vector<1x6xf32>
    %47 = tpu.reciprocal %46 : vector<1x6xf32> -> vector<1x6xf32>
    %48 = arith.mulf %43, %47 : vector<1x6xf32>
    %49 = arith.addf %25, %26 : vector<1x6xf32>
    %50 = vector.broadcast %18 : f32 to vector<1x6xf32>
    %51 = arith.addf %49, %50 : vector<1x6xf32>
    %52 = tpu.reciprocal %51 : vector<1x6xf32> -> vector<1x6xf32>
    %cst_27 = arith.constant 2.000000e+00 : f32
    %53 = vector.broadcast %cst_27 : f32 to vector<1x6xf32>
    %54 = arith.mulf %53, %27 : vector<1x6xf32>
    %55 = vector.broadcast %18 : f32 to vector<1x6xf32>
    %56 = arith.addf %54, %55 : vector<1x6xf32>
    %57 = arith.mulf %56, %48 : vector<1x6xf32>
    %58 = arith.mulf %57, %52 : vector<1x6xf32>
    %59 = vector.shape_cast %58 : vector<1x6xf32> to vector<1x1x6xf32>
    %cst_28 = arith.constant dense<0.000000e+00> : vector<1xf32>
    %60 = vector.multi_reduction <add>, %59, %cst_28 [1, 2] : vector<1x1x6xf32> to vector<1xf32>
    %61 = vector.shape_cast %60 : vector<1xf32> to vector<1x1x1xf32>
    %62 = vector.extract %61[0, 0, 0] : f32 from vector<1x1x1xf32>
    %cst_29 = arith.constant 6.000000e+00 : f32
    %63 = arith.divf %62, %cst_29 : f32
    %64 = vector.broadcast %63 : f32 to vector<1x1xf32>
    %c0_30 = arith.constant 0 : index
    %c0_31 = arith.constant 0 : index
    %65 = vector.load %arg6[%c0_30, %c0_31] : memref<1x1xf32, #tpu.memory_space<vmem>>, vector<1x1xf32>
    tpu.vector_store %arg6[%c0_30, %c0_31], %64 {strides = array<i32>} : memref<1x1xf32, #tpu.memory_space<vmem>>, vector<1x1xf32>,
    %66 = vector.shape_cast %48 : vector<1x6xf32> to vector<1x1x6xf32>
    %cst_32 = arith.constant dense<0.000000e+00> : vector<1xf32>
    %67 = vector.multi_reduction <add>, %66, %cst_32 [1, 2] : vector<1x1x6xf32> to vector<1xf32>
    %68 = vector.shape_cast %67 : vector<1xf32> to vector<1x1x1xf32>
    %69 = vector.extract %68[0, 0, 0] : f32 from vector<1x1x1xf32>
    %cst_33 = arith.constant 6.000000e+00 : f32
    %70 = arith.divf %69, %cst_33 : f32
    %71 = vector.broadcast %70 : f32 to vector<1x1xf32>
    %c0_34 = arith.constant 0 : index
    %c0_35 = arith.constant 0 : index
    %72 = vector.load %arg7[%c0_34, %c0_35] : memref<1x1xf32, #tpu.memory_space<vmem>>, vector<1x1xf32>
    tpu.vector_store %arg7[%c0_34, %c0_35], %71 {strides = array<i32>} : memref<1x1xf32, #tpu.memory_space<vmem>>, vector<1x1xf32>,
    %c0_36 = arith.constant 0 : index
    %c0_37 = arith.constant 0 : index
    %73 = vector.load %arg0[%c0_36, %c0_37] : memref<8x48xf32, #tpu.memory_space<vmem>>, vector<8x48xf32>
    %c0_38 = arith.constant 0 : index
    %c0_39 = arith.constant 0 : index
    %74 = vector.load %arg1[%c0_38, %c0_39] : memref<8x48xf32, #tpu.memory_space<vmem>>, vector<8x48xf32>
    %c0_40 = arith.constant 0 : index
    %c0_41 = arith.constant 0 : index
    %75 = vector.load %arg4[%c0_40, %c0_41] : memref<4x8xf32, #tpu.memory_space<vmem>>, vector<4x8xf32>
    %c0_42 = arith.constant 0 : index
    %c0_43 = arith.constant 0 : index
    %76 = vector.load %arg5[%c0_42, %c0_43] : memref<48x24xf32, #tpu.memory_space<vmem>>, vector<48x24xf32>
    %cst_44 = arith.constant dense<0.000000e+00> : vector<4x48xf32>
    %77 = tpu.matmul %75, %73, %cst_44 {dimension_numbers = #tpu.dot_dimension_numbers<[1], [0], [0], [1], [0, 0, 1, 1], [], []>} : vector<4x8xf32>, vector<8x48xf32>, vector<4x48xf32> -> vector<4x48xf32>
    %cst_45 = arith.constant dense<0.000000e+00> : vector<4x24xf32>
    %78 = tpu.matmul %77, %76, %cst_45 {dimension_numbers = #tpu.dot_dimension_numbers<[1], [0], [0], [1], [0, 0, 1, 1], [], []>} : vector<4x48xf32>, vector<48x24xf32>, vector<4x24xf32> -> vector<4x24xf32>
    %c0_46 = arith.constant 0 : index
    %c0_47 = arith.constant 0 : index
    %79 = vector.load %arg8[%c0_46, %c0_47] : memref<4x24xf32, #tpu.memory_space<vmem>>, vector<4x24xf32>
    tpu.vector_store %arg8[%c0_46, %c0_47], %78 {strides = array<i32>} : memref<4x24xf32, #tpu.memory_space<vmem>>, vector<4x24xf32>,
    %cst_48 = arith.constant dense<0.000000e+00> : vector<4x48xf32>
    %80 = tpu.matmul %75, %74, %cst_48 {dimension_numbers = #tpu.dot_dimension_numbers<[1], [0], [0], [1], [0, 0, 1, 1], [], []>} : vector<4x8xf32>, vector<8x48xf32>, vector<4x48xf32> -> vector<4x48xf32>
    %cst_49 = arith.constant dense<0.000000e+00> : vector<4x24xf32>
    %81 = tpu.matmul %80, %76, %cst_49 {dimension_numbers = #tpu.dot_dimension_numbers<[1], [0], [0], [1], [0, 0, 1, 1], [], []>} : vector<4x48xf32>, vector<48x24xf32>, vector<4x24xf32> -> vector<4x24xf32>
    %c0_50 = arith.constant 0 : index
    %c0_51 = arith.constant 0 : index
    %82 = vector.load %arg9[%c0_50, %c0_51] : memref<4x24xf32, #tpu.memory_space<vmem>>, vector<4x24xf32>
    tpu.vector_store %arg9[%c0_50, %c0_51], %81 {strides = array<i32>} : memref<4x24xf32, #tpu.memory_space<vmem>>, vector<4x24xf32>,
    return
  }
}

module attributes {stable_mosaic.version = 11 : i64} {
  func.func @kernel(%arg0: memref<16x96xf32, #tpu.memory_space<vmem>>, %arg1: memref<16x96xf32, #tpu.memory_space<vmem>>, %arg2: memref<6x16xf32, #tpu.memory_space<vmem>>, %arg3: memref<96x36xf32, #tpu.memory_space<vmem>>, %arg4: memref<8x16xf32, #tpu.memory_space<vmem>>, %arg5: memref<96x48xf32, #tpu.memory_space<vmem>>, %arg6: memref<1x1xf32, #tpu.memory_space<vmem>>, %arg7: memref<1x1xf32, #tpu.memory_space<vmem>>, %arg8: memref<8x48xf32, #tpu.memory_space<vmem>>, %arg9: memref<8x48xf32, #tpu.memory_space<vmem>>) attributes {dimension_semantics = [], scalar_prefetch = 0 : i64, scratch_operands = 0 : i64, tpu.core_type = #tpu.core_type<tc>} {
    %c0 = arith.constant 0 : index
    %c0_0 = arith.constant 0 : index
    %0 = vector.load %arg0[%c0, %c0_0] : memref<16x96xf32, #tpu.memory_space<vmem>>, vector<16x96xf32>
    %c0_1 = arith.constant 0 : index
    %c0_2 = arith.constant 0 : index
    %1 = vector.load %arg1[%c0_1, %c0_2] : memref<16x96xf32, #tpu.memory_space<vmem>>, vector<16x96xf32>
    %c0_3 = arith.constant 0 : index
    %c0_4 = arith.constant 0 : index
    %2 = vector.load %arg2[%c0_3, %c0_4] : memref<6x16xf32, #tpu.memory_space<vmem>>, vector<6x16xf32>
    %c0_5 = arith.constant 0 : index
    %c0_6 = arith.constant 0 : index
    %3 = vector.load %arg3[%c0_5, %c0_6] : memref<96x36xf32, #tpu.memory_space<vmem>>, vector<96x36xf32>
    %4 = vector.shape_cast %0 : vector<16x96xf32> to vector<1x16x96xf32>
    %cst = arith.constant dense<0xFF800000> : vector<1xf32>
    %5 = vector.multi_reduction <maximumf>, %4, %cst [1, 2] : vector<1x16x96xf32> to vector<1xf32>
    %6 = vector.shape_cast %5 : vector<1xf32> to vector<1x1x1xf32>
    %7 = vector.extract %6[0, 0, 0] : f32 from vector<1x1x1xf32>
    %cst_7 = arith.constant 1.280000e+02 : f32
    %8 = arith.cmpf ogt, %7, %cst_7 : f32
    %cst_8 = arith.constant 2.550000e+02 : f32
    %cst_9 = arith.constant 1.000000e+00 : f32
    %9 = arith.select %8, %cst_8, %cst_9 : f32
    %10 = vector.shape_cast %0 : vector<16x96xf32> to vector<1x16x96xf32>
    %cst_10 = arith.constant dense<0x7F800000> : vector<1xf32>
    %11 = vector.multi_reduction <minimumf>, %10, %cst_10 [1, 2] : vector<1x16x96xf32> to vector<1xf32>
    %12 = vector.shape_cast %11 : vector<1xf32> to vector<1x1x1xf32>
    %13 = vector.extract %12[0, 0, 0] : f32 from vector<1x1x1xf32>
    %cst_11 = arith.constant -5.000000e-01 : f32
    %14 = arith.cmpf olt, %13, %cst_11 : f32
    %cst_12 = arith.constant -1.000000e+00 : f32
    %cst_13 = arith.constant 0.000000e+00 : f32
    %15 = arith.select %14, %cst_12, %cst_13 : f32
    %16 = arith.subf %9, %15 : f32
    %cst_14 = arith.constant 0.00999999977 : f32
    %17 = arith.mulf %cst_14, %16 : f32
    %18 = arith.mulf %17, %17 : f32
    %cst_15 = arith.constant 3.000000e-02 : f32
    %19 = arith.mulf %cst_15, %16 : f32
    %20 = arith.mulf %19, %19 : f32
    %cst_16 = arith.constant dense<0.000000e+00> : vector<6x96xf32>
    %21 = tpu.matmul %2, %0, %cst_16 {dimension_numbers = #tpu.dot_dimension_numbers<[1], [0], [0], [1], [0, 0, 1, 1], [], []>} : vector<6x16xf32>, vector<16x96xf32>, vector<6x96xf32> -> vector<6x96xf32>
    %cst_17 = arith.constant dense<0.000000e+00> : vector<6x36xf32>
    %22 = tpu.matmul %21, %3, %cst_17 {dimension_numbers = #tpu.dot_dimension_numbers<[1], [0], [0], [1], [0, 0, 1, 1], [], []>} : vector<6x96xf32>, vector<96x36xf32>, vector<6x36xf32> -> vector<6x36xf32>
    %cst_18 = arith.constant dense<0.000000e+00> : vector<6x96xf32>
    %23 = tpu.matmul %2, %1, %cst_18 {dimension_numbers = #tpu.dot_dimension_numbers<[1], [0], [0], [1], [0, 0, 1, 1], [], []>} : vector<6x16xf32>, vector<16x96xf32>, vector<6x96xf32> -> vector<6x96xf32>
    %cst_19 = arith.constant dense<0.000000e+00> : vector<6x36xf32>
    %24 = tpu.matmul %23, %3, %cst_19 {dimension_numbers = #tpu.dot_dimension_numbers<[1], [0], [0], [1], [0, 0, 1, 1], [], []>} : vector<6x96xf32>, vector<96x36xf32>, vector<6x36xf32> -> vector<6x36xf32>
    %25 = arith.mulf %22, %22 : vector<6x36xf32>
    %26 = arith.mulf %24, %24 : vector<6x36xf32>
    %27 = arith.mulf %22, %24 : vector<6x36xf32>
    %28 = arith.mulf %0, %0 : vector<16x96xf32>
    %cst_20 = arith.constant dense<0.000000e+00> : vector<6x96xf32>
    %29 = tpu.matmul %2, %28, %cst_20 {dimension_numbers = #tpu.dot_dimension_numbers<[1], [0], [0], [1], [0, 0, 1, 1], [], []>} : vector<6x16xf32>, vector<16x96xf32>, vector<6x96xf32> -> vector<6x96xf32>
    %cst_21 = arith.constant dense<0.000000e+00> : vector<6x36xf32>
    %30 = tpu.matmul %29, %3, %cst_21 {dimension_numbers = #tpu.dot_dimension_numbers<[1], [0], [0], [1], [0, 0, 1, 1], [], []>} : vector<6x96xf32>, vector<96x36xf32>, vector<6x36xf32> -> vector<6x36xf32>
    %31 = arith.subf %30, %25 : vector<6x36xf32>
    %32 = arith.mulf %1, %1 : vector<16x96xf32>
    %cst_22 = arith.constant dense<0.000000e+00> : vector<6x96xf32>
    %33 = tpu.matmul %2, %32, %cst_22 {dimension_numbers = #tpu.dot_dimension_numbers<[1], [0], [0], [1], [0, 0, 1, 1], [], []>} : vector<6x16xf32>, vector<16x96xf32>, vector<6x96xf32> -> vector<6x96xf32>
    %cst_23 = arith.constant dense<0.000000e+00> : vector<6x36xf32>
    %34 = tpu.matmul %33, %3, %cst_23 {dimension_numbers = #tpu.dot_dimension_numbers<[1], [0], [0], [1], [0, 0, 1, 1], [], []>} : vector<6x96xf32>, vector<96x36xf32>, vector<6x36xf32> -> vector<6x36xf32>
    %35 = arith.subf %34, %26 : vector<6x36xf32>
    %36 = arith.mulf %0, %1 : vector<16x96xf32>
    %cst_24 = arith.constant dense<0.000000e+00> : vector<6x96xf32>
    %37 = tpu.matmul %2, %36, %cst_24 {dimension_numbers = #tpu.dot_dimension_numbers<[1], [0], [0], [1], [0, 0, 1, 1], [], []>} : vector<6x16xf32>, vector<16x96xf32>, vector<6x96xf32> -> vector<6x96xf32>
    %cst_25 = arith.constant dense<0.000000e+00> : vector<6x36xf32>
    %38 = tpu.matmul %37, %3, %cst_25 {dimension_numbers = #tpu.dot_dimension_numbers<[1], [0], [0], [1], [0, 0, 1, 1], [], []>} : vector<6x96xf32>, vector<96x36xf32>, vector<6x36xf32> -> vector<6x36xf32>
    %39 = arith.subf %38, %27 : vector<6x36xf32>
    %cst_26 = arith.constant 2.000000e+00 : f32
    %40 = vector.broadcast %cst_26 : f32 to vector<6x36xf32>
    %41 = arith.mulf %40, %39 : vector<6x36xf32>
    %42 = vector.broadcast %20 : f32 to vector<6x36xf32>
    %43 = arith.addf %41, %42 : vector<6x36xf32>
    %44 = arith.addf %31, %35 : vector<6x36xf32>
    %45 = vector.broadcast %20 : f32 to vector<6x36xf32>
    %46 = arith.addf %44, %45 : vector<6x36xf32>
    %47 = tpu.reciprocal %46 : vector<6x36xf32> -> vector<6x36xf32>
    %48 = arith.mulf %43, %47 : vector<6x36xf32>
    %49 = arith.addf %25, %26 : vector<6x36xf32>
    %50 = vector.broadcast %18 : f32 to vector<6x36xf32>
    %51 = arith.addf %49, %50 : vector<6x36xf32>
    %52 = tpu.reciprocal %51 : vector<6x36xf32> -> vector<6x36xf32>
    %cst_27 = arith.constant 2.000000e+00 : f32
    %53 = vector.broadcast %cst_27 : f32 to vector<6x36xf32>
    %54 = arith.mulf %53, %27 : vector<6x36xf32>
    %55 = vector.broadcast %18 : f32 to vector<6x36xf32>
    %56 = arith.addf %54, %55 : vector<6x36xf32>
    %57 = arith.mulf %56, %48 : vector<6x36xf32>
    %58 = arith.mulf %57, %52 : vector<6x36xf32>
    %59 = vector.shape_cast %58 : vector<6x36xf32> to vector<1x6x36xf32>
    %cst_28 = arith.constant dense<0.000000e+00> : vector<1xf32>
    %60 = vector.multi_reduction <add>, %59, %cst_28 [1, 2] : vector<1x6x36xf32> to vector<1xf32>
    %61 = vector.shape_cast %60 : vector<1xf32> to vector<1x1x1xf32>
    %62 = vector.extract %61[0, 0, 0] : f32 from vector<1x1x1xf32>
    %cst_29 = arith.constant 2.160000e+02 : f32
    %63 = arith.divf %62, %cst_29 : f32
    %64 = vector.broadcast %63 : f32 to vector<1x1xf32>
    %c0_30 = arith.constant 0 : index
    %c0_31 = arith.constant 0 : index
    %65 = vector.load %arg6[%c0_30, %c0_31] : memref<1x1xf32, #tpu.memory_space<vmem>>, vector<1x1xf32>
    tpu.vector_store %arg6[%c0_30, %c0_31], %64 {strides = array<i32>} : memref<1x1xf32, #tpu.memory_space<vmem>>, vector<1x1xf32>,
    %66 = vector.shape_cast %48 : vector<6x36xf32> to vector<1x6x36xf32>
    %cst_32 = arith.constant dense<0.000000e+00> : vector<1xf32>
    %67 = vector.multi_reduction <add>, %66, %cst_32 [1, 2] : vector<1x6x36xf32> to vector<1xf32>
    %68 = vector.shape_cast %67 : vector<1xf32> to vector<1x1x1xf32>
    %69 = vector.extract %68[0, 0, 0] : f32 from vector<1x1x1xf32>
    %cst_33 = arith.constant 2.160000e+02 : f32
    %70 = arith.divf %69, %cst_33 : f32
    %71 = vector.broadcast %70 : f32 to vector<1x1xf32>
    %c0_34 = arith.constant 0 : index
    %c0_35 = arith.constant 0 : index
    %72 = vector.load %arg7[%c0_34, %c0_35] : memref<1x1xf32, #tpu.memory_space<vmem>>, vector<1x1xf32>
    tpu.vector_store %arg7[%c0_34, %c0_35], %71 {strides = array<i32>} : memref<1x1xf32, #tpu.memory_space<vmem>>, vector<1x1xf32>,
    %c0_36 = arith.constant 0 : index
    %c0_37 = arith.constant 0 : index
    %73 = vector.load %arg0[%c0_36, %c0_37] : memref<16x96xf32, #tpu.memory_space<vmem>>, vector<16x96xf32>
    %c0_38 = arith.constant 0 : index
    %c0_39 = arith.constant 0 : index
    %74 = vector.load %arg1[%c0_38, %c0_39] : memref<16x96xf32, #tpu.memory_space<vmem>>, vector<16x96xf32>
    %c0_40 = arith.constant 0 : index
    %c0_41 = arith.constant 0 : index
    %75 = vector.load %arg4[%c0_40, %c0_41] : memref<8x16xf32, #tpu.memory_space<vmem>>, vector<8x16xf32>
    %c0_42 = arith.constant 0 : index
    %c0_43 = arith.constant 0 : index
    %76 = vector.load %arg5[%c0_42, %c0_43] : memref<96x48xf32, #tpu.memory_space<vmem>>, vector<96x48xf32>
    %cst_44 = arith.constant dense<0.000000e+00> : vector<8x96xf32>
    %77 = tpu.matmul %75, %73, %cst_44 {dimension_numbers = #tpu.dot_dimension_numbers<[1], [0], [0], [1], [0, 0, 1, 1], [], []>} : vector<8x16xf32>, vector<16x96xf32>, vector<8x96xf32> -> vector<8x96xf32>
    %cst_45 = arith.constant dense<0.000000e+00> : vector<8x48xf32>
    %78 = tpu.matmul %77, %76, %cst_45 {dimension_numbers = #tpu.dot_dimension_numbers<[1], [0], [0], [1], [0, 0, 1, 1], [], []>} : vector<8x96xf32>, vector<96x48xf32>, vector<8x48xf32> -> vector<8x48xf32>
    %c0_46 = arith.constant 0 : index
    %c0_47 = arith.constant 0 : index
    %79 = vector.load %arg8[%c0_46, %c0_47] : memref<8x48xf32, #tpu.memory_space<vmem>>, vector<8x48xf32>
    tpu.vector_store %arg8[%c0_46, %c0_47], %78 {strides = array<i32>} : memref<8x48xf32, #tpu.memory_space<vmem>>, vector<8x48xf32>,
    %cst_48 = arith.constant dense<0.000000e+00> : vector<8x96xf32>
    %80 = tpu.matmul %75, %74, %cst_48 {dimension_numbers = #tpu.dot_dimension_numbers<[1], [0], [0], [1], [0, 0, 1, 1], [], []>} : vector<8x16xf32>, vector<16x96xf32>, vector<8x96xf32> -> vector<8x96xf32>
    %cst_49 = arith.constant dense<0.000000e+00> : vector<8x48xf32>
    %81 = tpu.matmul %80, %76, %cst_49 {dimension_numbers = #tpu.dot_dimension_numbers<[1], [0], [0], [1], [0, 0, 1, 1], [], []>} : vector<8x96xf32>, vector<96x48xf32>, vector<8x48xf32> -> vector<8x48xf32>
    %c0_50 = arith.constant 0 : index
    %c0_51 = arith.constant 0 : index
    %82 = vector.load %arg9[%c0_50, %c0_51] : memref<8x48xf32, #tpu.memory_space<vmem>>, vector<8x48xf32>
    tpu.vector_store %arg9[%c0_50, %c0_51], %81 {strides = array<i32>} : memref<8x48xf32, #tpu.memory_space<vmem>>, vector<8x48xf32>,
    return
  }
}

module attributes {stable_mosaic.version = 11 : i64} {
  func.func @kernel(%arg0: memref<4x24xf32, #tpu.memory_space<vmem>>, %arg1: memref<4x24xf32, #tpu.memory_space<vmem>>, %arg2: memref<1x4xf32, #tpu.memory_space<vmem>>, %arg3: memref<24x6xf32, #tpu.memory_space<vmem>>, %arg4: memref<2x4xf32, #tpu.memory_space<vmem>>, %arg5: memref<24x12xf32, #tpu.memory_space<vmem>>, %arg6: memref<1x1xf32, #tpu.memory_space<vmem>>, %arg7: memref<1x1xf32, #tpu.memory_space<vmem>>, %arg8: memref<2x12xf32, #tpu.memory_space<vmem>>, %arg9: memref<2x12xf32, #tpu.memory_space<vmem>>) attributes {dimension_semantics = [], scalar_prefetch = 0 : i64, scratch_operands = 0 : i64, tpu.core_type = #tpu.core_type<tc>} {
    %c0 = arith.constant 0 : index
    %c0_0 = arith.constant 0 : index
    %0 = vector.load %arg0[%c0, %c0_0] : memref<4x24xf32, #tpu.memory_space<vmem>>, vector<4x24xf32>
    %c0_1 = arith.constant 0 : index
    %c0_2 = arith.constant 0 : index
    %1 = vector.load %arg1[%c0_1, %c0_2] : memref<4x24xf32, #tpu.memory_space<vmem>>, vector<4x24xf32>
    %c0_3 = arith.constant 0 : index
    %c0_4 = arith.constant 0 : index
    %2 = vector.load %arg2[%c0_3, %c0_4] : memref<1x4xf32, #tpu.memory_space<vmem>>, vector<1x4xf32>
    %c0_5 = arith.constant 0 : index
    %c0_6 = arith.constant 0 : index
    %3 = vector.load %arg3[%c0_5, %c0_6] : memref<24x6xf32, #tpu.memory_space<vmem>>, vector<24x6xf32>
    %4 = vector.shape_cast %0 : vector<4x24xf32> to vector<1x4x24xf32>
    %cst = arith.constant dense<0xFF800000> : vector<1xf32>
    %5 = vector.multi_reduction <maximumf>, %4, %cst [1, 2] : vector<1x4x24xf32> to vector<1xf32>
    %6 = vector.shape_cast %5 : vector<1xf32> to vector<1x1x1xf32>
    %7 = vector.extract %6[0, 0, 0] : f32 from vector<1x1x1xf32>
    %cst_7 = arith.constant 1.280000e+02 : f32
    %8 = arith.cmpf ogt, %7, %cst_7 : f32
    %cst_8 = arith.constant 2.550000e+02 : f32
    %cst_9 = arith.constant 1.000000e+00 : f32
    %9 = arith.select %8, %cst_8, %cst_9 : f32
    %10 = vector.shape_cast %0 : vector<4x24xf32> to vector<1x4x24xf32>
    %cst_10 = arith.constant dense<0x7F800000> : vector<1xf32>
    %11 = vector.multi_reduction <minimumf>, %10, %cst_10 [1, 2] : vector<1x4x24xf32> to vector<1xf32>
    %12 = vector.shape_cast %11 : vector<1xf32> to vector<1x1x1xf32>
    %13 = vector.extract %12[0, 0, 0] : f32 from vector<1x1x1xf32>
    %cst_11 = arith.constant -5.000000e-01 : f32
    %14 = arith.cmpf olt, %13, %cst_11 : f32
    %cst_12 = arith.constant -1.000000e+00 : f32
    %cst_13 = arith.constant 0.000000e+00 : f32
    %15 = arith.select %14, %cst_12, %cst_13 : f32
    %16 = arith.subf %9, %15 : f32
    %cst_14 = arith.constant 0.00999999977 : f32
    %17 = arith.mulf %cst_14, %16 : f32
    %18 = arith.mulf %17, %17 : f32
    %cst_15 = arith.constant 3.000000e-02 : f32
    %19 = arith.mulf %cst_15, %16 : f32
    %20 = arith.mulf %19, %19 : f32
    %cst_16 = arith.constant dense<0.000000e+00> : vector<1x24xf32>
    %21 = tpu.matmul %2, %0, %cst_16 {dimension_numbers = #tpu.dot_dimension_numbers<[1], [0], [0], [1], [0, 0, 1, 1], [], []>} : vector<1x4xf32>, vector<4x24xf32>, vector<1x24xf32> -> vector<1x24xf32>
    %cst_17 = arith.constant dense<0.000000e+00> : vector<1x6xf32>
    %22 = tpu.matmul %21, %3, %cst_17 {dimension_numbers = #tpu.dot_dimension_numbers<[1], [0], [0], [1], [0, 0, 1, 1], [], []>} : vector<1x24xf32>, vector<24x6xf32>, vector<1x6xf32> -> vector<1x6xf32>
    %cst_18 = arith.constant dense<0.000000e+00> : vector<1x24xf32>
    %23 = tpu.matmul %2, %1, %cst_18 {dimension_numbers = #tpu.dot_dimension_numbers<[1], [0], [0], [1], [0, 0, 1, 1], [], []>} : vector<1x4xf32>, vector<4x24xf32>, vector<1x24xf32> -> vector<1x24xf32>
    %cst_19 = arith.constant dense<0.000000e+00> : vector<1x6xf32>
    %24 = tpu.matmul %23, %3, %cst_19 {dimension_numbers = #tpu.dot_dimension_numbers<[1], [0], [0], [1], [0, 0, 1, 1], [], []>} : vector<1x24xf32>, vector<24x6xf32>, vector<1x6xf32> -> vector<1x6xf32>
    %25 = arith.mulf %22, %22 : vector<1x6xf32>
    %26 = arith.mulf %24, %24 : vector<1x6xf32>
    %27 = arith.mulf %22, %24 : vector<1x6xf32>
    %28 = arith.mulf %0, %0 : vector<4x24xf32>
    %cst_20 = arith.constant dense<0.000000e+00> : vector<1x24xf32>
    %29 = tpu.matmul %2, %28, %cst_20 {dimension_numbers = #tpu.dot_dimension_numbers<[1], [0], [0], [1], [0, 0, 1, 1], [], []>} : vector<1x4xf32>, vector<4x24xf32>, vector<1x24xf32> -> vector<1x24xf32>
    %cst_21 = arith.constant dense<0.000000e+00> : vector<1x6xf32>
    %30 = tpu.matmul %29, %3, %cst_21 {dimension_numbers = #tpu.dot_dimension_numbers<[1], [0], [0], [1], [0, 0, 1, 1], [], []>} : vector<1x24xf32>, vector<24x6xf32>, vector<1x6xf32> -> vector<1x6xf32>
    %31 = arith.subf %30, %25 : vector<1x6xf32>
    %32 = arith.mulf %1, %1 : vector<4x24xf32>
    %cst_22 = arith.constant dense<0.000000e+00> : vector<1x24xf32>
    %33 = tpu.matmul %2, %32, %cst_22 {dimension_numbers = #tpu.dot_dimension_numbers<[1], [0], [0], [1], [0, 0, 1, 1], [], []>} : vector<1x4xf32>, vector<4x24xf32>, vector<1x24xf32> -> vector<1x24xf32>
    %cst_23 = arith.constant dense<0.000000e+00> : vector<1x6xf32>
    %34 = tpu.matmul %33, %3, %cst_23 {dimension_numbers = #tpu.dot_dimension_numbers<[1], [0], [0], [1], [0, 0, 1, 1], [], []>} : vector<1x24xf32>, vector<24x6xf32>, vector<1x6xf32> -> vector<1x6xf32>
    %35 = arith.subf %34, %26 : vector<1x6xf32>
    %36 = arith.mulf %0, %1 : vector<4x24xf32>
    %cst_24 = arith.constant dense<0.000000e+00> : vector<1x24xf32>
    %37 = tpu.matmul %2, %36, %cst_24 {dimension_numbers = #tpu.dot_dimension_numbers<[1], [0], [0], [1], [0, 0, 1, 1], [], []>} : vector<1x4xf32>, vector<4x24xf32>, vector<1x24xf32> -> vector<1x24xf32>
    %cst_25 = arith.constant dense<0.000000e+00> : vector<1x6xf32>
    %38 = tpu.matmul %37, %3, %cst_25 {dimension_numbers = #tpu.dot_dimension_numbers<[1], [0], [0], [1], [0, 0, 1, 1], [], []>} : vector<1x24xf32>, vector<24x6xf32>, vector<1x6xf32> -> vector<1x6xf32>
    %39 = arith.subf %38, %27 : vector<1x6xf32>
    %cst_26 = arith.constant 2.000000e+00 : f32
    %40 = vector.broadcast %cst_26 : f32 to vector<1x6xf32>
    %41 = arith.mulf %40, %39 : vector<1x6xf32>
    %42 = vector.broadcast %20 : f32 to vector<1x6xf32>
    %43 = arith.addf %41, %42 : vector<1x6xf32>
    %44 = arith.addf %31, %35 : vector<1x6xf32>
    %45 = vector.broadcast %20 : f32 to vector<1x6xf32>
    %46 = arith.addf %44, %45 : vector<1x6xf32>
    %47 = tpu.reciprocal %46 : vector<1x6xf32> -> vector<1x6xf32>
    %48 = arith.mulf %43, %47 : vector<1x6xf32>
    %49 = arith.addf %25, %26 : vector<1x6xf32>
    %50 = vector.broadcast %18 : f32 to vector<1x6xf32>
    %51 = arith.addf %49, %50 : vector<1x6xf32>
    %52 = tpu.reciprocal %51 : vector<1x6xf32> -> vector<1x6xf32>
    %cst_27 = arith.constant 2.000000e+00 : f32
    %53 = vector.broadcast %cst_27 : f32 to vector<1x6xf32>
    %54 = arith.mulf %53, %27 : vector<1x6xf32>
    %55 = vector.broadcast %18 : f32 to vector<1x6xf32>
    %56 = arith.addf %54, %55 : vector<1x6xf32>
    %57 = arith.mulf %56, %48 : vector<1x6xf32>
    %58 = arith.mulf %57, %52 : vector<1x6xf32>
    %59 = vector.shape_cast %58 : vector<1x6xf32> to vector<1x1x6xf32>
    %cst_28 = arith.constant dense<0.000000e+00> : vector<1xf32>
    %60 = vector.multi_reduction <add>, %59, %cst_28 [1, 2] : vector<1x1x6xf32> to vector<1xf32>
    %61 = vector.shape_cast %60 : vector<1xf32> to vector<1x1x1xf32>
    %62 = vector.extract %61[0, 0, 0] : f32 from vector<1x1x1xf32>
    %cst_29 = arith.constant 6.000000e+00 : f32
    %63 = arith.divf %62, %cst_29 : f32
    %64 = vector.broadcast %63 : f32 to vector<1x1xf32>
    %c0_30 = arith.constant 0 : index
    %c0_31 = arith.constant 0 : index
    %65 = vector.load %arg6[%c0_30, %c0_31] : memref<1x1xf32, #tpu.memory_space<vmem>>, vector<1x1xf32>
    tpu.vector_store %arg6[%c0_30, %c0_31], %64 {strides = array<i32>} : memref<1x1xf32, #tpu.memory_space<vmem>>, vector<1x1xf32>,
    %66 = vector.shape_cast %48 : vector<1x6xf32> to vector<1x1x6xf32>
    %cst_32 = arith.constant dense<0.000000e+00> : vector<1xf32>
    %67 = vector.multi_reduction <add>, %66, %cst_32 [1, 2] : vector<1x1x6xf32> to vector<1xf32>
    %68 = vector.shape_cast %67 : vector<1xf32> to vector<1x1x1xf32>
    %69 = vector.extract %68[0, 0, 0] : f32 from vector<1x1x1xf32>
    %cst_33 = arith.constant 6.000000e+00 : f32
    %70 = arith.divf %69, %cst_33 : f32
    %71 = vector.broadcast %70 : f32 to vector<1x1xf32>
    %c0_34 = arith.constant 0 : index
    %c0_35 = arith.constant 0 : index
    %72 = vector.load %arg7[%c0_34, %c0_35] : memref<1x1xf32, #tpu.memory_space<vmem>>, vector<1x1xf32>
    tpu.vector_store %arg7[%c0_34, %c0_35], %71 {strides = array<i32>} : memref<1x1xf32, #tpu.memory_space<vmem>>, vector<1x1xf32>,
    %c0_36 = arith.constant 0 : index
    %c0_37 = arith.constant 0 : index
    %73 = vector.load %arg0[%c0_36, %c0_37] : memref<4x24xf32, #tpu.memory_space<vmem>>, vector<4x24xf32>
    %c0_38 = arith.constant 0 : index
    %c0_39 = arith.constant 0 : index
    %74 = vector.load %arg1[%c0_38, %c0_39] : memref<4x24xf32, #tpu.memory_space<vmem>>, vector<4x24xf32>
    %c0_40 = arith.constant 0 : index
    %c0_41 = arith.constant 0 : index
    %75 = vector.load %arg4[%c0_40, %c0_41] : memref<2x4xf32, #tpu.memory_space<vmem>>, vector<2x4xf32>
    %c0_42 = arith.constant 0 : index
    %c0_43 = arith.constant 0 : index
    %76 = vector.load %arg5[%c0_42, %c0_43] : memref<24x12xf32, #tpu.memory_space<vmem>>, vector<24x12xf32>
    %cst_44 = arith.constant dense<0.000000e+00> : vector<2x24xf32>
    %77 = tpu.matmul %75, %73, %cst_44 {dimension_numbers = #tpu.dot_dimension_numbers<[1], [0], [0], [1], [0, 0, 1, 1], [], []>} : vector<2x4xf32>, vector<4x24xf32>, vector<2x24xf32> -> vector<2x24xf32>
    %cst_45 = arith.constant dense<0.000000e+00> : vector<2x12xf32>
    %78 = tpu.matmul %77, %76, %cst_45 {dimension_numbers = #tpu.dot_dimension_numbers<[1], [0], [0], [1], [0, 0, 1, 1], [], []>} : vector<2x24xf32>, vector<24x12xf32>, vector<2x12xf32> -> vector<2x12xf32>
    %c0_46 = arith.constant 0 : index
    %c0_47 = arith.constant 0 : index
    %79 = vector.load %arg8[%c0_46, %c0_47] : memref<2x12xf32, #tpu.memory_space<vmem>>, vector<2x12xf32>
    tpu.vector_store %arg8[%c0_46, %c0_47], %78 {strides = array<i32>} : memref<2x12xf32, #tpu.memory_space<vmem>>, vector<2x12xf32>,
    %cst_48 = arith.constant dense<0.000000e+00> : vector<2x24xf32>
    %80 = tpu.matmul %75, %74, %cst_48 {dimension_numbers = #tpu.dot_dimension_numbers<[1], [0], [0], [1], [0, 0, 1, 1], [], []>} : vector<2x4xf32>, vector<4x24xf32>, vector<2x24xf32> -> vector<2x24xf32>
    %cst_49 = arith.constant dense<0.000000e+00> : vector<2x12xf32>
    %81 = tpu.matmul %80, %76, %cst_49 {dimension_numbers = #tpu.dot_dimension_numbers<[1], [0], [0], [1], [0, 0, 1, 1], [], []>} : vector<2x24xf32>, vector<24x12xf32>, vector<2x12xf32> -> vector<2x12xf32>
    %c0_50 = arith.constant 0 : index
    %c0_51 = arith.constant 0 : index
    %82 = vector.load %arg9[%c0_50, %c0_51] : memref<2x12xf32, #tpu.memory_space<vmem>>, vector<2x12xf32>
    tpu.vector_store %arg9[%c0_50, %c0_51], %81 {strides = array<i32>} : memref<2x12xf32, #tpu.memory_space<vmem>>, vector<2x12xf32>,
    return
  }
}

module attributes {stable_mosaic.version = 11 : i64} {
  func.func @kernel(%arg0: memref<2x12xf32, #tpu.memory_space<vmem>>, %arg1: memref<2x12xf32, #tpu.memory_space<vmem>>, %arg2: memref<1x2xf32, #tpu.memory_space<vmem>>, %arg3: memref<12x6xf32, #tpu.memory_space<vmem>>, %arg4: memref<1x1xf32, #tpu.memory_space<vmem>>, %arg5: memref<1x1xf32, #tpu.memory_space<vmem>>) attributes {dimension_semantics = [], scalar_prefetch = 0 : i64, scratch_operands = 0 : i64, tpu.core_type = #tpu.core_type<tc>} {
    %c0 = arith.constant 0 : index
    %c0_0 = arith.constant 0 : index
    %0 = vector.load %arg0[%c0, %c0_0] : memref<2x12xf32, #tpu.memory_space<vmem>>, vector<2x12xf32>
    %c0_1 = arith.constant 0 : index
    %c0_2 = arith.constant 0 : index
    %1 = vector.load %arg1[%c0_1, %c0_2] : memref<2x12xf32, #tpu.memory_space<vmem>>, vector<2x12xf32>
    %c0_3 = arith.constant 0 : index
    %c0_4 = arith.constant 0 : index
    %2 = vector.load %arg2[%c0_3, %c0_4] : memref<1x2xf32, #tpu.memory_space<vmem>>, vector<1x2xf32>
    %c0_5 = arith.constant 0 : index
    %c0_6 = arith.constant 0 : index
    %3 = vector.load %arg3[%c0_5, %c0_6] : memref<12x6xf32, #tpu.memory_space<vmem>>, vector<12x6xf32>
    %4 = vector.shape_cast %0 : vector<2x12xf32> to vector<1x2x12xf32>
    %cst = arith.constant dense<0xFF800000> : vector<1xf32>
    %5 = vector.multi_reduction <maximumf>, %4, %cst [1, 2] : vector<1x2x12xf32> to vector<1xf32>
    %6 = vector.shape_cast %5 : vector<1xf32> to vector<1x1x1xf32>
    %7 = vector.extract %6[0, 0, 0] : f32 from vector<1x1x1xf32>
    %cst_7 = arith.constant 1.280000e+02 : f32
    %8 = arith.cmpf ogt, %7, %cst_7 : f32
    %cst_8 = arith.constant 2.550000e+02 : f32
    %cst_9 = arith.constant 1.000000e+00 : f32
    %9 = arith.select %8, %cst_8, %cst_9 : f32
    %10 = vector.shape_cast %0 : vector<2x12xf32> to vector<1x2x12xf32>
    %cst_10 = arith.constant dense<0x7F800000> : vector<1xf32>
    %11 = vector.multi_reduction <minimumf>, %10, %cst_10 [1, 2] : vector<1x2x12xf32> to vector<1xf32>
    %12 = vector.shape_cast %11 : vector<1xf32> to vector<1x1x1xf32>
    %13 = vector.extract %12[0, 0, 0] : f32 from vector<1x1x1xf32>
    %cst_11 = arith.constant -5.000000e-01 : f32
    %14 = arith.cmpf olt, %13, %cst_11 : f32
    %cst_12 = arith.constant -1.000000e+00 : f32
    %cst_13 = arith.constant 0.000000e+00 : f32
    %15 = arith.select %14, %cst_12, %cst_13 : f32
    %16 = arith.subf %9, %15 : f32
    %cst_14 = arith.constant 0.00999999977 : f32
    %17 = arith.mulf %cst_14, %16 : f32
    %18 = arith.mulf %17, %17 : f32
    %cst_15 = arith.constant 3.000000e-02 : f32
    %19 = arith.mulf %cst_15, %16 : f32
    %20 = arith.mulf %19, %19 : f32
    %cst_16 = arith.constant dense<0.000000e+00> : vector<1x12xf32>
    %21 = tpu.matmul %2, %0, %cst_16 {dimension_numbers = #tpu.dot_dimension_numbers<[1], [0], [0], [1], [0, 0, 1, 1], [], []>} : vector<1x2xf32>, vector<2x12xf32>, vector<1x12xf32> -> vector<1x12xf32>
    %cst_17 = arith.constant dense<0.000000e+00> : vector<1x6xf32>
    %22 = tpu.matmul %21, %3, %cst_17 {dimension_numbers = #tpu.dot_dimension_numbers<[1], [0], [0], [1], [0, 0, 1, 1], [], []>} : vector<1x12xf32>, vector<12x6xf32>, vector<1x6xf32> -> vector<1x6xf32>
    %cst_18 = arith.constant dense<0.000000e+00> : vector<1x12xf32>
    %23 = tpu.matmul %2, %1, %cst_18 {dimension_numbers = #tpu.dot_dimension_numbers<[1], [0], [0], [1], [0, 0, 1, 1], [], []>} : vector<1x2xf32>, vector<2x12xf32>, vector<1x12xf32> -> vector<1x12xf32>
    %cst_19 = arith.constant dense<0.000000e+00> : vector<1x6xf32>
    %24 = tpu.matmul %23, %3, %cst_19 {dimension_numbers = #tpu.dot_dimension_numbers<[1], [0], [0], [1], [0, 0, 1, 1], [], []>} : vector<1x12xf32>, vector<12x6xf32>, vector<1x6xf32> -> vector<1x6xf32>
    %25 = arith.mulf %22, %22 : vector<1x6xf32>
    %26 = arith.mulf %24, %24 : vector<1x6xf32>
    %27 = arith.mulf %22, %24 : vector<1x6xf32>
    %28 = arith.mulf %0, %0 : vector<2x12xf32>
    %cst_20 = arith.constant dense<0.000000e+00> : vector<1x12xf32>
    %29 = tpu.matmul %2, %28, %cst_20 {dimension_numbers = #tpu.dot_dimension_numbers<[1], [0], [0], [1], [0, 0, 1, 1], [], []>} : vector<1x2xf32>, vector<2x12xf32>, vector<1x12xf32> -> vector<1x12xf32>
    %cst_21 = arith.constant dense<0.000000e+00> : vector<1x6xf32>
    %30 = tpu.matmul %29, %3, %cst_21 {dimension_numbers = #tpu.dot_dimension_numbers<[1], [0], [0], [1], [0, 0, 1, 1], [], []>} : vector<1x12xf32>, vector<12x6xf32>, vector<1x6xf32> -> vector<1x6xf32>
    %31 = arith.subf %30, %25 : vector<1x6xf32>
    %32 = arith.mulf %1, %1 : vector<2x12xf32>
    %cst_22 = arith.constant dense<0.000000e+00> : vector<1x12xf32>
    %33 = tpu.matmul %2, %32, %cst_22 {dimension_numbers = #tpu.dot_dimension_numbers<[1], [0], [0], [1], [0, 0, 1, 1], [], []>} : vector<1x2xf32>, vector<2x12xf32>, vector<1x12xf32> -> vector<1x12xf32>
    %cst_23 = arith.constant dense<0.000000e+00> : vector<1x6xf32>
    %34 = tpu.matmul %33, %3, %cst_23 {dimension_numbers = #tpu.dot_dimension_numbers<[1], [0], [0], [1], [0, 0, 1, 1], [], []>} : vector<1x12xf32>, vector<12x6xf32>, vector<1x6xf32> -> vector<1x6xf32>
    %35 = arith.subf %34, %26 : vector<1x6xf32>
    %36 = arith.mulf %0, %1 : vector<2x12xf32>
    %cst_24 = arith.constant dense<0.000000e+00> : vector<1x12xf32>
    %37 = tpu.matmul %2, %36, %cst_24 {dimension_numbers = #tpu.dot_dimension_numbers<[1], [0], [0], [1], [0, 0, 1, 1], [], []>} : vector<1x2xf32>, vector<2x12xf32>, vector<1x12xf32> -> vector<1x12xf32>
    %cst_25 = arith.constant dense<0.000000e+00> : vector<1x6xf32>
    %38 = tpu.matmul %37, %3, %cst_25 {dimension_numbers = #tpu.dot_dimension_numbers<[1], [0], [0], [1], [0, 0, 1, 1], [], []>} : vector<1x12xf32>, vector<12x6xf32>, vector<1x6xf32> -> vector<1x6xf32>
    %39 = arith.subf %38, %27 : vector<1x6xf32>
    %cst_26 = arith.constant 2.000000e+00 : f32
    %40 = vector.broadcast %cst_26 : f32 to vector<1x6xf32>
    %41 = arith.mulf %40, %39 : vector<1x6xf32>
    %42 = vector.broadcast %20 : f32 to vector<1x6xf32>
    %43 = arith.addf %41, %42 : vector<1x6xf32>
    %44 = arith.addf %31, %35 : vector<1x6xf32>
    %45 = vector.broadcast %20 : f32 to vector<1x6xf32>
    %46 = arith.addf %44, %45 : vector<1x6xf32>
    %47 = tpu.reciprocal %46 : vector<1x6xf32> -> vector<1x6xf32>
    %48 = arith.mulf %43, %47 : vector<1x6xf32>
    %49 = arith.addf %25, %26 : vector<1x6xf32>
    %50 = vector.broadcast %18 : f32 to vector<1x6xf32>
    %51 = arith.addf %49, %50 : vector<1x6xf32>
    %52 = tpu.reciprocal %51 : vector<1x6xf32> -> vector<1x6xf32>
    %cst_27 = arith.constant 2.000000e+00 : f32
    %53 = vector.broadcast %cst_27 : f32 to vector<1x6xf32>
    %54 = arith.mulf %53, %27 : vector<1x6xf32>
    %55 = vector.broadcast %18 : f32 to vector<1x6xf32>
    %56 = arith.addf %54, %55 : vector<1x6xf32>
    %57 = arith.mulf %56, %48 : vector<1x6xf32>
    %58 = arith.mulf %57, %52 : vector<1x6xf32>
    %59 = vector.shape_cast %58 : vector<1x6xf32> to vector<1x1x6xf32>
    %cst_28 = arith.constant dense<0.000000e+00> : vector<1xf32>
    %60 = vector.multi_reduction <add>, %59, %cst_28 [1, 2] : vector<1x1x6xf32> to vector<1xf32>
    %61 = vector.shape_cast %60 : vector<1xf32> to vector<1x1x1xf32>
    %62 = vector.extract %61[0, 0, 0] : f32 from vector<1x1x1xf32>
    %cst_29 = arith.constant 6.000000e+00 : f32
    %63 = arith.divf %62, %cst_29 : f32
    %64 = vector.broadcast %63 : f32 to vector<1x1xf32>
    %c0_30 = arith.constant 0 : index
    %c0_31 = arith.constant 0 : index
    %65 = vector.load %arg4[%c0_30, %c0_31] : memref<1x1xf32, #tpu.memory_space<vmem>>, vector<1x1xf32>
    tpu.vector_store %arg4[%c0_30, %c0_31], %64 {strides = array<i32>} : memref<1x1xf32, #tpu.memory_space<vmem>>, vector<1x1xf32>,
    %66 = vector.shape_cast %48 : vector<1x6xf32> to vector<1x1x6xf32>
    %cst_32 = arith.constant dense<0.000000e+00> : vector<1xf32>
    %67 = vector.multi_reduction <add>, %66, %cst_32 [1, 2] : vector<1x1x6xf32> to vector<1xf32>
    %68 = vector.shape_cast %67 : vector<1xf32> to vector<1x1x1xf32>
    %69 = vector.extract %68[0, 0, 0] : f32 from vector<1x1x1xf32>
    %cst_33 = arith.constant 6.000000e+00 : f32
    %70 = arith.divf %69, %cst_33 : f32
    %71 = vector.broadcast %70 : f32 to vector<1x1xf32>
    %c0_34 = arith.constant 0 : index
    %c0_35 = arith.constant 0 : index
    %72 = vector.load %arg5[%c0_34, %c0_35] : memref<1x1xf32, #tpu.memory_space<vmem>>, vector<1x1xf32>
    tpu.vector_store %arg5[%c0_34, %c0_35], %71 {strides = array<i32>} : memref<1x1xf32, #tpu.memory_space<vmem>>, vector<1x1xf32>,
    return
  }
}

</mosaic_0001>

<bundles_post_ra>
// kernel: _lambda_.7
= control target key start
LH: loop header
LB: loop body
LE: loop exit
PB: predicated region body
PF: predicated region fallthrough
CT: control target
= control target key end

     0   :  { %15 = vsyncpa [#allocation3], 0  ;;  %vm68_vm0 = vcmask 64512   ;;  %vm38_vm1 = vcmask 392192   ;;  %s756_s0 = inlined_call_operand.vmem [shape: f32[8,48], index: 0, kind: input, shape index: {}]   ;;  %s757_s1 = inlined_call_operand.vmem [shape: f32[8,48], index: 1, kind: input, shape index: {}]   ;;  %s758_s2 = inlined_call_operand.vmem [shape: f32[1,8], index: 2, kind: input, shape index: {}]   ;;  %s759_s3 = inlined_call_operand.vmem [shape: f32[48,6], index: 3, kind: input, shape index: {}]   ;;  %s760_s4 = inlined_call_operand.vmem [shape: f32[4,8], index: 4, kind: input, shape index: {}]   ;;  %s761_s5 = inlined_call_operand.vmem [shape: f32[48,24], index: 5, kind: input, shape index: {}]   ;;  %s762_s6 = inlined_call_operand.hbm [shape: f32[1,1], index: 6, kind: output, shape index: {0}]   ;;  %s763_s7 = inlined_call_operand.hbm [shape: f32[1,1], index: 7, kind: output, shape index: {1}]   ;;  %s764_s8 = inlined_call_operand.vmem [shape: f32[4,24], index: 8, kind: output, shape index: {2}]   ;;  %s765_s9 = inlined_call_operand.vmem [shape: f32[4,24], index: 9, kind: output, shape index: {3}]  }
   0x1   :  { %v29_v0 = vld [vmem:[%s756_s0] sm:$0xff]  ;;  %v37_v6 = vld [vmem:[%s759_s3 + $0x28] sm:$0xff] }
   0x2   :  { %v666_v1 = vld [vmem:[%s758_s2] sm:$0x1]  ;;  %87 = vmatpush.msra.mxu2 %v29_v0  ;;  %v161_v3 = vmul.f32 %v29_v0, %v29_v0  ;;  %v39_v5 = vsel %vm38_vm1, %v29_v0, -inf }
   0x3   :  { %v671_v2 = vld [vmem:[%s757_s1] sm:$0xff]  ;;  %522 = vmatmul.msk.f32.vlgmr.msra.gmra.mxu2 %vm68_vm0, %v666_v1  ;;  %40 = vmax.xlane.f32.xlu0 %v39_v5 }
   0x4   :  { %v206_v4 = vmul.f32 %v671_v2, %v671_v2 }
   0x5   :  { %16 = vsyncpa [#allocation5], 0  ;;  %130 = vmatpush.msrb.mxu2 %v671_v2  ;;  %177 = vmatpush.msra.mxu0 %v161_v3  ;;  %v36_v7 = vld [vmem:[%s759_s3 + $0x20] sm:$0xff]  ;;  %v35_v8 = vld [vmem:[%s759_s3 + $0x18] sm:$0xff]  ;;  %v51_v9 = vsel %vm38_vm1, %v29_v0, inf  ;;  %v251_v13 = vmul.f32 %v671_v2, %v29_v0  ;;  %vm337_vm10 = vcmask 40960  }
   0x6   :  { %526 = vmatmul.msk.f32.vlgmr.msra.gmra.mxu0 %vm68_vm0, %v666_v1  ;;  %105 = vmatpush.msra.mxu1 %v37_v6  ;;  %v34_v10 = vld [vmem:[%s759_s3 + $0x10] sm:$0xff]  ;;  %v33_v11 = vld [vmem:[%s759_s3 + $0x8] sm:$0xff]  ;;  %v32_v12 = vld [vmem:[%s759_s3] sm:$0xff]  ;;  %vm436_vm12 = vcmask 191488   ;;  %s608_s3 = smov [#allocation2]   ;;  %vm358_vm13 = vcmask 0  }
   0x7   :  { %195 = vmatpush.msra.mxu2 %v37_v6  ;;  %222 = vmatpush.msrb.mxu0 %v206_v4  ;;  %v383_v32 = vld [vmem:[%s760_s4] sm:$0xf]  ;;  %v389_v51 = vld [vmem:[%s761_s5 + $0x28] sm:$0xff]  ;;  %v387_v55 = vld [vmem:[%s761_s5 + $0x18] sm:$0xff]  ;;  %s487_s24 = sshll.u32 %s608_s3, 4  ;;  %s488_s24 = int_to_ptr.vmem [resolvable:$true] %s487_s24 }
   0x8   :  { %148 = vmatpush.msra.mxu3 %v37_v6  ;;  %106 = vmatpush.msra.mxu1 %v36_v7  ;;  %v388_v52 = vld [vmem:[%s761_s5 + $0x20] sm:$0xff]  ;;  %v386_v56 = vld [vmem:[%s761_s5 + $0x10] sm:$0xff]  ;;  %v385_v59 = vld [vmem:[%s761_s5 + $0x8] sm:$0xff] }
   0x9   :  { %196 = vmatpush.msra.mxu2 %v36_v7  ;;  %408 = vmatpush.msra.mxu0 %v29_v0  ;;  %v384_v61 = vld [vmem:[%s761_s5] sm:$0xff] }
   0xa   :  { %149 = vmatpush.msra.mxu3 %v36_v7  ;;  %107 = vmatpush.msra.mxu1 %v35_v8 }
   0xb   :  { %197 = vmatpush.msra.mxu2 %v35_v8  ;;  %52 = vmin.xlane.f32.xlu0 %v51_v9 }
   0xc   :  { %524 = vmatmul.msk.f32.vlgmr.msrb.gmra.mxu2 %vm68_vm0, %v666_v1  ;;  %108 = vmatpush.msra.mxu1 %v34_v10 }
   0xd   :  { %198 = vmatpush.msra.mxu2 %v34_v10  ;;  %150 = vmatpush.msra.mxu3 %v35_v8 }
   0xe   :  { %528 = vmatmul.msk.f32.vlgmr.msrb.gmra.mxu0 %vm68_vm0, %v666_v1  ;;  %109 = vmatpush.msra.mxu1 %v33_v11 }
   0xf   :  { %199 = vmatpush.msra.mxu2 %v33_v11  ;;  %151 = vmatpush.msra.mxu3 %v34_v10 }
  0x10   :  { %110 = vmatpush.msra.mxu1 %v32_v12  ;;  %471 = vmatpush.msrb.mxu0 %v389_v51 }
  0x11   :  { %152 = vmatpush.msra.mxu3 %v33_v11  ;;  %200 = vmatpush.msra.mxu2 %v32_v12 }
  0x12   :  { %240 = vmatpush.msrb.mxu1 %v37_v6  ;;  %472 = vmatpush.msrb.mxu0 %v388_v52 }
  0x13   :  { %153 = vmatpush.msra.mxu3 %v32_v12  ;;  %285 = vmatpush.msrb.mxu2 %v37_v6 }
  0x14   :  { %241 = vmatpush.msrb.mxu1 %v36_v7  ;;  %473 = vmatpush.msrb.mxu0 %v387_v55 }
  0x15   :  { %286 = vmatpush.msrb.mxu2 %v36_v7  ;;  %267 = vmatpush.msrb.mxu3 %v251_v13 }
  0x16   :  { %242 = vmatpush.msrb.mxu1 %v35_v8  ;;  %532 = vmatmul.msk.f32.vlgmr.msra.gmra.mxu0 %vm68_vm0, %v383_v32 }
  0x17   :  { %287 = vmatpush.msrb.mxu2 %v35_v8  ;;  %474 = vmatpush.msrb.mxu0 %v386_v56 }
  0x18   :  { %243 = vmatpush.msrb.mxu1 %v34_v10 }
  0x19   :  { %288 = vmatpush.msrb.mxu2 %v34_v10  ;;  %475 = vmatpush.msrb.mxu0 %v385_v59 }
  0x1a   :  { %244 = vmatpush.msrb.mxu1 %v33_v11 }
  0x1b   :  { %289 = vmatpush.msrb.mxu2 %v33_v11  ;;  %476 = vmatpush.msrb.mxu0 %v384_v61 }
  0x1c   :  { %245 = vmatpush.msrb.mxu1 %v32_v12 }
  0x1d   :  { %290 = vmatpush.msrb.mxu2 %v32_v12 }
  0x76   :  { %v41_v14 = vpop.xlane.xlu0 %40 }
  0x77   :  { %v42_v15 = vrot.slane %v41_v14, 4 }
  0x79   :  { %v43_v16 = vmax.f32 %v41_v14, %v42_v15 }
  0x7b   :  { %v44_v17 = vrot.slane %v43_v16, 2 }
  0x7d   :  { %v45_v18 = vmax.f32 %v43_v16, %v44_v17 }
  0x7e   :  { %v53_v19 = vpop.xlane.xlu0 %52 }
  0x7f   :  { %v54_v20 = vrot.slane %v53_v19, 4  ;;  %v46_v21 = vrot.slane %v45_v18, 1 }
  0x81   :  { %v55_v23 = vmin.f32 %v53_v19, %v54_v20  ;;  %v47_v24 = vmax.f32 %v45_v18, %v46_v21 }
  0x83   :  { %v179_v22 = vpop.f32.mrf.mxu0  ;;  %v56_v25 = vrot.slane %v55_v23, 2  ;;  %536 = vpush %v47_v24  ;;  %v607_v24 = vmov 6.0  }
  0x84   :  { %527 = vmatmul.msk.f32.vlgmr.msra.gmra.mxu2 %vm38_vm1, %v179_v22 }
  0x85   :  { %v57_v27 = vmin.f32 %v55_v23, %v56_v25 }
  0x86   :  { %v89_v26 = vpop.f32.mrf.mxu2 }
  0x87   :  { %523 = vmatmul.msk.f32.vlgmr.msra.gmra.mxu1 %vm38_vm1, %v89_v26  ;;  %v58_v28 = vrot.slane %v57_v27, 1 }
  0x88   :  { %453 = vmatpush.msra.mxu1 %v671_v2 }
  0x89   :  { %v59_v29 = vmin.f32 %v57_v27, %v58_v28 }
  0x8b   :  { %v224_v30 = vpop.f32.mrf.mxu0  ;;  %538 = vpush %v59_v29 }
  0x8f   :  { %v132_v31 = vpop.f32.mrf.mxu2  ;;  %529 = vmatmul.msk.f32.vlgmr.msrb.gmra.mxu1 %vm38_vm1, %v224_v30 }
  0x90   :  { %525 = vmatmul.msk.f32.vlgmr.msra.gmra.mxu3 %vm38_vm1, %v132_v31 }
  0x91   :  { %426 = vmatpush.msra.mxu3 %v389_v51 }
  0x93   :  { %427 = vmatpush.msra.mxu3 %v388_v52  ;;  %v410_v0 = vpop.f32.mrf.mxu0 }
  0x95   :  { %428 = vmatpush.msra.mxu3 %v387_v55 }
  0x97   :  { %534 = vmatmul.msk.f32.vlgmr.msra.gmra.mxu1 %vm68_vm0, %v383_v32  ;;  %429 = vmatpush.msra.mxu3 %v386_v56 }
  0x98   :  { %530 = vmatmul.msk.f32.vlgmr.msrb.gmra.mxu3 %vm68_vm0, %v666_v1 }
  0x99   :  { %430 = vmatpush.msra.mxu3 %v385_v59 }
  0x9b   :  { %431 = vmatpush.msra.mxu3 %v384_v61 }
  0xa0   :  { %533 = vmatmul.msk.f32.vlgmr.msra.gmra.mxu3 %vm38_vm1, %v410_v0 }
  0xb4   :  { %s537_s25 = spop %536 }
  0xb5   :  { %p49_p0 = scmp.gt.f32.partialorder %s537_s25, 128.0 }
  0xb7   :  { %s50_s27 = scalar_select %p49_p0, 255.0, 1.0 }
  0xbc   :  { %s539_s26 = spop %538 }
  0xbd   :  { %p61_p1 = scmp.lt.f32.partialorder %s539_s26, -0.5 }
  0xbf   :  { %s62_s28 = scalar_select %p61_p1, -1.0, 0.0 }
  0xc1   :  { %s63_s29 = ssub.f32 %s50_s27, %s62_s28  ;;  %s489_s28 = sshll.u32 %s762_s6, 4  ;;  %s490_s28 = int_to_ptr.hbm [resolvable:$true] %s489_s28 }
  0xc3   :  { %s66_s30 = smul.f32 0.03, %s63_s29 }
  0xc4   :  { %s64_s4 = smul.f32 0.01, %s63_s29 }
  0xc5   :  { %s718_s10 = smul.f32 %s66_s30, %s66_s30 }
  0xc6   :  { %s720_s11 = smul.f32 %s64_s4, %s64_s4 }
  0xc7   :  { %v297_v43 = vstv %s718_s10 }
  0xc8   :  { %v317_v46 = vstv %s720_s11 }
 0x104   :  { %v112_v35 = vpop.f32.mrf.mxu1 }
 0x105   :  { %v158_v38 = vmul.f32 %v112_v35, %v112_v35 }
 0x107   :  { %v202_v39 = vpop.f32.mrf.mxu2 }
 0x108   :  { %v205_v41 = vsub.f32 %v202_v39, %v158_v38 }
 0x10c   :  { %v247_v37 = vpop.f32.mrf.mxu1 }
 0x113   :  { %v155_v33 = vpop.f32.mrf.mxu3 }
 0x114   :  { %v159_v36 = vmul.f32 %v155_v33, %v155_v33  ;;  %v160_v60 = vmul.f32 %v155_v33, %v112_v35  ;;  %v455_v1 = vpop.f32.mrf.mxu1 }
 0x115   :  { %535 = vmatmul.msk.f32.vlgmr.msrb.gmra.mxu0 %vm38_vm1, %v455_v1 }
 0x116   :  { %v250_v40 = vsub.f32 %v247_v37, %v159_v36  ;;  %v316_v44 = vadd.f32 %v159_v36, %v158_v38  ;;  %v333_v6 = vmul.f32 2.0, %v160_v60 }
 0x118   :  { %v299_v42 = vadd.f32 %v250_v40, %v205_v41  ;;  %v318_v47 = vadd.f32 %v317_v46, %v316_v44  ;;  %v334_v17 = vadd.f32 %v333_v6, %v317_v46 }
 0x11a   :  { %v300_v45 = vadd.f32 %v299_v42, %v297_v43  ;;  %v330_v11 = vand.u32 2147483648, %v318_v47  ;;  %vm324_vm7 = vweird.f32 %v318_v47  ;;  %v328_v13 = vand.u32 2147483647, %v318_v47 }
 0x11b   :  { %v269_v34 = vpop.f32.mrf.mxu3 }
 0x11c   :  { %531 = vmatmul.msk.f32.vlgmr.msrb.gmra.mxu2 %vm38_vm1, %v269_v34  ;;  %549 = vrcp.f32 %v300_v45  ;;  %v312_v3 = vand.u32 2147483648, %v300_v45  ;;  %vm306_vm3 = vweird.f32 %v300_v45  ;;  %v310_v5 = vand.u32 2147483647, %v300_v45 }
 0x11d   :  { %551 = vrcp.f32 %v318_v47  ;;  %v331_v18 = vor.u32 1.1754944e-38, %v330_v11  ;;  %vm329_vm9 = vcmp.eq.f32.partialorder %v328_v13, 8.507059e+37 }
 0x11e   :  { %v313_v10 = vor.u32 1.1754944e-38, %v312_v3  ;;  %vm311_vm6 = vcmp.eq.f32.partialorder %v310_v5, 8.507059e+37  ;;  %553 = vrcp.f32 %v607_v24 }
 0x122   :  { %v550_v48 = vpop.eup %549 }
 0x123   :  { %v302_v49 = vmul.f32 %v550_v48, %v300_v45  ;;  %v552_v50 = vpop.eup %551  ;;  %vm307_vm2 = vweird.f32 %v550_v48  ;;  %v433_v45 = vpop.f32.mrf.mxu3 }
 0x124   :  { %v320_v54 = vmul.f32 %v552_v50, %v318_v47  ;;  %vm308_vm4 = vmor %vm306_vm3, %vm307_vm2  ;;  %vm325_vm5 = vweird.f32 %v552_v50  ;;  %v554_v25 = vpop.eup %553  ;;  %437 = vst.msk [vmem:[%s764_s8] sm:$0xf] %vm436_vm12, %v433_v45  ;;  %s609_s8 = smov [#allocation4]  }
 0x125   :  { %v303_v53 = vsub.f32 1.0, %v302_v49  ;;  %vm326_vm8 = vmor %vm324_vm7, %vm325_vm5  ;;  %v349_v26 = vmul.f32 6.0, %v554_v25  ;;  %vm353_vm11 = vweird.f32 %v554_v25  ;;  %s498_s4 = sshll.u32 %s609_s8, 4  ;;  %s499_s4 = int_to_ptr.vmem [resolvable:$true] %s498_s4 }
 0x126   :  { %v321_v58 = vsub.f32 1.0, %v320_v54 }
 0x127   :  { %v304_v57 = vmul.f32 %v550_v48, %v303_v53  ;;  %v350_v27 = vsub.f32 1.0, %v349_v26 }
 0x128   :  { %v322_v63 = vmul.f32 %v552_v50, %v321_v58 }
 0x129   :  { %v305_v62 = vadd.f32 %v550_v48, %v304_v57  ;;  %v351_v31 = vmul.f32 %v554_v25, %v350_v27 }
 0x12a   :  { %v323_v9 = vadd.f32 %v552_v50, %v322_v63 }
 0x12b   :  { %v309_v8 = vsel %vm308_vm4, %v550_v48, %v305_v62  ;;  %v352_v34 = vadd.f32 %v554_v25, %v351_v31 }
 0x12c   :  { %v314_v14 = vsel %vm311_vm6, %v313_v10, %v309_v8  ;;  %v327_v16 = vsel %vm326_vm8, %v552_v50, %v323_v9 }
 0x12d   :  { %v332_v20 = vsel %vm329_vm9, %v331_v18, %v327_v16  ;;  %v354_v40 = vsel %vm353_vm11, %v554_v25, %v352_v34 }
 0x192   :  { %v478_v46 = vpop.f32.mrf.mxu0 }
 0x193   :  { %481 = vst.msk [vmem:[%s765_s9] sm:$0xf] %vm436_vm12, %v478_v46  ;;  %s500_s9 = sshll.u32 %s763_s7, 4  ;;  %s501_s9 = int_to_ptr.hbm [resolvable:$true] %s500_s9 }
 0x19f   :  { %v292_v2 = vpop.f32.mrf.mxu2 }
 0x1a0   :  { %v295_v4 = vsub.f32 %v292_v2, %v160_v60 }
 0x1a2   :  { %v296_v7 = vmul.f32 2.0, %v295_v4 }
 0x1a4   :  { %v298_v12 = vadd.f32 %v297_v43, %v296_v7 }
 0x1a6   :  { %v315_v15 = vmul.f32 %v314_v14, %v298_v12 }
 0x1a8   :  { %v335_v19 = vmul.f32 %v334_v17, %v315_v15  ;;  %v360_v23 = vsel %vm337_vm10, %v315_v15, 0.0 }
 0x1aa   :  { %v336_v21 = vmul.f32 %v335_v19, %v332_v20 }
 0x1ac   :  { %v338_v22 = vsel %vm337_vm10, %v336_v21, 0.0 }
 0x1ad   :  { %339 = vadd.xlane.f32.xlu1 %v338_v22 }
 0x1b5   :  { %361 = vadd.xlane.f32.xlu1 %v360_v23 }
 0x220   :  { %v340_v28 = vpop.xlane.xlu1 %339 }
 0x221   :  { %v341_v29 = vrot.slane %v340_v28, 4 }
 0x223   :  { %v342_v30 = vadd.f32 %v341_v29, %v340_v28 }
 0x225   :  { %v343_v32 = vrot.slane %v342_v30, 2 }
 0x227   :  { %v344_v33 = vadd.f32 %v343_v32, %v342_v30 }
 0x228   :  { %v362_v35 = vpop.xlane.xlu1 %361 }
 0x229   :  { %v363_v36 = vrot.slane %v362_v35, 4  ;;  %v345_v37 = vrot.slane %v344_v33, 1 }
 0x22b   :  { %v364_v38 = vadd.f32 %v363_v36, %v362_v35  ;;  %v346_v39 = vadd.f32 %v345_v37, %v344_v33 }
 0x22d   :  { %v365_v41 = vrot.slane %v364_v38, 2  ;;  %540 = vpush %v346_v39 }
 0x22e   :  { %542 = vpush %v354_v40 }
 0x22f   :  { %v366_v42 = vadd.f32 %v365_v41, %v364_v38 }
 0x231   :  { %v367_v43 = vrot.slane %v366_v42, 1 }
 0x233   :  { %v368_v44 = vadd.f32 %v367_v43, %v366_v42 }
 0x235   :  { %544 = vpush %v368_v44 }
 0x25e   :  { %s541_s25 = spop %540 }
 0x25f   :  { %s543_s29 = spop %542 }
 0x260   :  { %s356_s30 = smul.f32 %s543_s29, %s541_s25 }
 0x262   :  { %v357_v47 = vstv %s356_s30 }
 0x263   :  { %359 = vst.msk [vmem:[#allocation2] sm:$0x1] %vm358_vm13, %v357_v47 }
 0x264   :  { %492 = dma.vmem_to_hbm [thread:$0]  %s488_s24, 16, %s490_s28, [#allocation3]  }
 0x266   :  { %s545_s12 = spop %544 }
 0x267   :  { %s378_s13 = smul.f32 %s545_s12, %s543_s29 }
 0x269   :  { %v379_v48 = vstv %s378_s13 }
 0x26a   :  { %380 = vst.msk [vmem:[#allocation4] sm:$0x1] %vm358_vm13, %v379_v48 }
 0x26b   :  { %503 = dma.vmem_to_hbm [thread:$0]  %s499_s4, 16, %s501_s9, [#allocation5]  }
 0x26c   :  { %603 = dma.done.wait [#allocation3], 16  }
 0x26d   :  { %604 = vsyncadd [#allocation3], 4294967280 }
 0x26e   :  { %605 = dma.done.wait [#allocation5], 16  }
 0x26f   :  { %606 = vsyncadd [#allocation5], 4294967280 }
 0x270   :  { %520 = vsyncpa [#allocation3], 1 }
 0x271   :  { %521 = vsyncpa [#allocation5], 1 }

// kernel: _lambda_.6
= control target key start
LH: loop header
LB: loop body
LE: loop exit
PB: predicated region body
PF: predicated region fallthrough
CT: control target
= control target key end

     0   :  { %15 = vsyncpa [#allocation3], 0  ;;  %vm46_vm0 = vcmask 785408   ;;  %vm80_vm1 = vcmask 130048   ;;  %s949_s0 = inlined_call_operand.vmem [shape: f32[16,96], index: 0, kind: input, shape index: {}]   ;;  %s950_s1 = inlined_call_operand.vmem [shape: f32[16,96], index: 1, kind: input, shape index: {}]   ;;  %s951_s2 = inlined_call_operand.vmem [shape: f32[6,16], index: 2, kind: input, shape index: {}]   ;;  %s952_s3 = inlined_call_operand.vmem [shape: f32[96,36], index: 3, kind: input, shape index: {}]   ;;  %s953_s4 = inlined_call_operand.vmem [shape: f32[8,16], index: 4, kind: input, shape index: {}]   ;;  %s954_s5 = inlined_call_operand.vmem [shape: f32[96,48], index: 5, kind: input, shape index: {}]   ;;  %s955_s6 = inlined_call_operand.hbm [shape: f32[1,1], index: 6, kind: output, shape index: {0}]   ;;  %s956_s7 = inlined_call_operand.hbm [shape: f32[1,1], index: 7, kind: output, shape index: {1}]   ;;  %s957_s8 = inlined_call_operand.vmem [shape: f32[8,48], index: 8, kind: output, shape index: {2}]   ;;  %s958_s9 = inlined_call_operand.vmem [shape: f32[8,48], index: 9, kind: output, shape index: {3}]  }
   0x1   :  { %v686_v0 = vld [vmem:[%s949_s0 + $0x8] sm:$0xff]  ;;  %v691_v1 = vld [vmem:[%s949_s0] sm:$0xff]  ;;  %v720_v10 = vld [vmem:[%s952_s3 + $0x58] sm:$0xff] }
   0x2   :  { %v696_v2 = vld [vmem:[%s951_s2] sm:$0x3f]  ;;  %98 = vmatpush.msra.mxu2 %v686_v0  ;;  %v702_v3 = vld [vmem:[%s950_s1 + $0x8] sm:$0xff]  ;;  %v47_v5 = vsel %vm46_vm0, %v691_v1, -inf  ;;  %v48_v6 = vsel %vm46_vm0, %v686_v0, -inf  ;;  %111 = vmatpush.msra.mxu1 %v720_v10  ;;  %v727_v11 = vld [vmem:[%s952_s3 + $0x50] sm:$0xff] }
   0x3   :  { %v707_v4 = vld [vmem:[%s950_s1] sm:$0xff]  ;;  %v220_v7 = vmul.f32 %v702_v3, %v702_v3  ;;  %v49_v9 = vmax.f32 %v47_v5, %v48_v6  ;;  %v735_v12 = vld [vmem:[%s952_s3 + $0x48] sm:$0xff] }
   0x4   :  { %v219_v8 = vmul.f32 %v707_v4, %v707_v4  ;;  %99 = vmatpush.msra.mxu2 %v691_v1 }
   0x5   :  { %545 = vmatmul.msk.f32.vlgmr.msra.gmra.mxu2 %vm80_vm1, %v696_v2  ;;  %235 = vmatpush.msra.mxu0 %v220_v7 }
   0x6   :  { %141 = vmatpush.msrb.mxu2 %v702_v3  ;;  %50 = vmax.xlane.f32.xlu0 %v49_v9 }
   0x7   :  { %16 = vsyncpa [#allocation5], 0  ;;  %236 = vmatpush.msra.mxu0 %v219_v8  ;;  %v61_v13 = vsel %vm46_vm0, %v691_v1, inf  ;;  %v62_v14 = vsel %vm46_vm0, %v686_v0, inf  ;;  %112 = vmatpush.msra.mxu1 %v727_v11  ;;  %v748_v15 = vld [vmem:[%s952_s3 + $0x40] sm:$0xff]  ;;  %v755_v17 = vld [vmem:[%s952_s3 + $0x38] sm:$0xff]  ;;  %v266_v25 = vmul.f32 %v702_v3, %v686_v0  ;;  %v265_v26 = vmul.f32 %v707_v4, %v691_v1 }
   0x8   :  { %142 = vmatpush.msrb.mxu2 %v707_v4  ;;  %551 = vmatmul.msk.f32.vlgmr.msra.gmra.mxu0 %vm80_vm1, %v696_v2  ;;  %v63_v16 = vmin.f32 %v61_v13, %v62_v14  ;;  %v764_v18 = vld [vmem:[%s952_s3 + $0x30] sm:$0xff]  ;;  %v774_v19 = vld [vmem:[%s952_s3 + $0x28] sm:$0xff]  ;;  %v782_v20 = vld [vmem:[%s952_s3 + $0x20] sm:$0xff]  ;;  %v174_v27 = vmul.f32 %v686_v0, %v686_v0  ;;  %v173_v28 = vmul.f32 %v691_v1, %v691_v1  ;;  %vm352_vm10 = vcmask 291840   ;;  %s631_s26 = smov [#allocation2]   ;;  %s512_s10 = sshll.u32 %s955_s6, 4  ;;  %s513_s10 = int_to_ptr.hbm [resolvable:$true] %s512_s10 }
   0x9   :  { %113 = vmatpush.msra.mxu1 %v735_v12  ;;  %154 = vmatpush.msra.mxu3 %v720_v10  ;;  %v791_v21 = vld [vmem:[%s952_s3 + $0x18] sm:$0xff]  ;;  %v800_v22 = vld [vmem:[%s952_s3 + $0x10] sm:$0xff]  ;;  %v809_v23 = vld [vmem:[%s952_s3 + $0x8] sm:$0xff]  ;;  %vm459_vm12 = vcmask 392192   ;;  %s510_s27 = sshll.u32 %s631_s26, 4  ;;  %vm373_vm13 = vcmask 0   ;;  %s511_s27 = int_to_ptr.vmem [resolvable:$true] %s510_s27 }
   0xa   :  { %248 = vmatpush.msrb.mxu0 %v720_v10  ;;  %202 = vmatpush.msra.mxu2 %v720_v10  ;;  %v34_v24 = vld [vmem:[%s952_s3] sm:$0xff]  ;;  %v408_v9 = vld [vmem:[%s954_s5 + $0x38] sm:$0xff] }
   0xb   :  { %114 = vmatpush.msra.mxu1 %v748_v15  ;;  %155 = vmatpush.msra.mxu3 %v727_v11  ;;  %v400_v54 = vld [vmem:[%s953_s4] sm:$0xff] }
   0xc   :  { %249 = vmatpush.msrb.mxu0 %v727_v11  ;;  %203 = vmatpush.msra.mxu2 %v727_v11  ;;  %v409_v6 = vld [vmem:[%s954_s5 + $0x40] sm:$0xff] }
   0xd   :  { %547 = vmatmul.msk.f32.vlgmr.msrb.gmra.mxu2 %vm80_vm1, %v696_v2  ;;  %115 = vmatpush.msra.mxu1 %v755_v17 }
   0xe   :  { %64 = vmin.xlane.f32.xlu0 %v63_v16  ;;  %156 = vmatpush.msra.mxu3 %v735_v12  ;;  %v406_v16 = vld [vmem:[%s954_s5 + $0x28] sm:$0xff] }
   0xf   :  { %116 = vmatpush.msra.mxu1 %v764_v18  ;;  %250 = vmatpush.msrb.mxu0 %v735_v12 }
  0x10   :  { %157 = vmatpush.msra.mxu3 %v748_v15  ;;  %204 = vmatpush.msra.mxu2 %v735_v12 }
  0x11   :  { %117 = vmatpush.msra.mxu1 %v774_v19  ;;  %251 = vmatpush.msrb.mxu0 %v748_v15 }
  0x12   :  { %158 = vmatpush.msra.mxu3 %v755_v17  ;;  %205 = vmatpush.msra.mxu2 %v748_v15 }
  0x13   :  { %118 = vmatpush.msra.mxu1 %v782_v20  ;;  %252 = vmatpush.msrb.mxu0 %v755_v17 }
  0x14   :  { %159 = vmatpush.msra.mxu3 %v764_v18  ;;  %206 = vmatpush.msra.mxu2 %v755_v17 }
  0x15   :  { %119 = vmatpush.msra.mxu1 %v791_v21  ;;  %253 = vmatpush.msrb.mxu0 %v764_v18 }
  0x16   :  { %160 = vmatpush.msra.mxu3 %v774_v19  ;;  %207 = vmatpush.msra.mxu2 %v764_v18 }
  0x17   :  { %120 = vmatpush.msra.mxu1 %v800_v22  ;;  %254 = vmatpush.msrb.mxu0 %v774_v19 }
  0x18   :  { %161 = vmatpush.msra.mxu3 %v782_v20  ;;  %208 = vmatpush.msra.mxu2 %v774_v19 }
  0x19   :  { %121 = vmatpush.msra.mxu1 %v809_v23  ;;  %255 = vmatpush.msrb.mxu0 %v782_v20 }
  0x1a   :  { %162 = vmatpush.msra.mxu3 %v791_v21  ;;  %209 = vmatpush.msra.mxu2 %v782_v20 }
  0x1b   :  { %256 = vmatpush.msrb.mxu0 %v791_v21  ;;  %122 = vmatpush.msra.mxu1 %v34_v24 }
  0x1c   :  { %163 = vmatpush.msra.mxu3 %v800_v22  ;;  %210 = vmatpush.msra.mxu2 %v791_v21 }
  0x1d   :  { %257 = vmatpush.msrb.mxu0 %v800_v22  ;;  %281 = vmatpush.msrb.mxu1 %v266_v25 }
  0x1e   :  { %164 = vmatpush.msra.mxu3 %v809_v23  ;;  %211 = vmatpush.msra.mxu2 %v800_v22 }
  0x1f   :  { %258 = vmatpush.msrb.mxu0 %v809_v23  ;;  %282 = vmatpush.msrb.mxu1 %v265_v26 }
  0x20   :  { %212 = vmatpush.msra.mxu2 %v809_v23  ;;  %165 = vmatpush.msra.mxu3 %v34_v24 }
  0x21   :  { %259 = vmatpush.msrb.mxu0 %v34_v24 }
  0x22   :  { %213 = vmatpush.msra.mxu2 %v34_v24  ;;  %189 = vmatpush.msrb.mxu3 %v174_v27  ;;  %v404_v27 = vld [vmem:[%s954_s5 + $0x18] sm:$0xff] }
  0x24   :  { %430 = vmatpush.msrb.mxu2 %v686_v0  ;;  %190 = vmatpush.msrb.mxu3 %v173_v28 }
  0x26   :  { %431 = vmatpush.msrb.mxu2 %v691_v1  ;;  %v412_v1 = vld [vmem:[%s954_s5 + $0x58] sm:$0xff] }
  0x27   :  { %488 = vmatpush.msra.mxu0 %v412_v1 }
  0x79   :  { %v51_v29 = vpop.xlane.xlu0 %50 }
  0x7a   :  { %v52_v30 = vrot.slane %v51_v29, 4 }
  0x7c   :  { %v53_v31 = vmax.f32 %v51_v29, %v52_v30 }
  0x7e   :  { %v54_v32 = vrot.slane %v53_v31, 2 }
  0x80   :  { %v55_v33 = vmax.f32 %v53_v31, %v54_v32  ;;  %v403_v32 = vld [vmem:[%s954_s5 + $0x10] sm:$0xff] }
  0x81   :  { %v65_v34 = vpop.xlane.xlu0 %64 }
  0x82   :  { %v66_v35 = vrot.slane %v65_v34, 4  ;;  %v56_v36 = vrot.slane %v55_v33, 1 }
  0x84   :  { %v67_v37 = vmin.f32 %v65_v34, %v66_v35  ;;  %v57_v38 = vmax.f32 %v55_v33, %v56_v36 }
  0x85   :  { %v238_v39 = vpop.f32.mrf.mxu0 }
  0x86   :  { %552 = vmatmul.msk.f32.vlgmr.msrb.gmra.mxu0 %vm46_vm0, %v238_v39  ;;  %v68_v40 = vrot.slane %v67_v37, 2  ;;  %559 = vpush %v57_v38 }
  0x88   :  { %v101_v41 = vpop.f32.mrf.mxu2  ;;  %v69_v42 = vmin.f32 %v67_v37, %v68_v40  ;;  %v402_v37 = vld [vmem:[%s954_s5 + $0x8] sm:$0xff]  ;;  %v401_v40 = vld [vmem:[%s954_s5] sm:$0xff] }
  0x89   :  { %546 = vmatmul.msk.f32.vlgmr.msra.gmra.mxu1 %vm46_vm0, %v101_v41 }
  0x8a   :  { %v70_v43 = vrot.slane %v69_v42, 1  ;;  %443 = vmatpush.msra.mxu1 %v412_v1 }
  0x8c   :  { %v71_v44 = vmin.f32 %v69_v42, %v70_v43 }
  0x8e   :  { %561 = vpush %v71_v44 }
  0x90   :  { %v144_v45 = vpop.f32.mrf.mxu2 }
  0x91   :  { %548 = vmatmul.msk.f32.vlgmr.msra.gmra.mxu3 %vm46_vm0, %v144_v45  ;;  %553 = vmatmul.msk.f32.vlgmr.msrb.gmra.mxu1 %vm80_vm1, %v696_v2  ;;  %v630_v45 = vmov 216.0  }
  0x92   :  { %294 = vmatpush.msra.mxu3 %v720_v10 }
  0x94   :  { %295 = vmatpush.msra.mxu3 %v727_v11 }
  0x96   :  { %296 = vmatpush.msra.mxu3 %v735_v12  ;;  %v407_v12 = vld [vmem:[%s954_s5 + $0x30] sm:$0xff] }
  0x98   :  { %297 = vmatpush.msra.mxu3 %v748_v15 }
  0x99   :  { %549 = vmatmul.msk.f32.vlgmr.msrb.gmra.mxu3 %vm80_vm1, %v696_v2  ;;  %v411_v2 = vld [vmem:[%s954_s5 + $0x50] sm:$0xff] }
  0x9a   :  { %298 = vmatpush.msra.mxu3 %v755_v17  ;;  %444 = vmatpush.msra.mxu1 %v411_v2 }
  0x9b   :  { %489 = vmatpush.msra.mxu0 %v411_v2 }
  0x9c   :  { %299 = vmatpush.msra.mxu3 %v764_v18 }
  0x9e   :  { %300 = vmatpush.msra.mxu3 %v774_v19 }
  0xa0   :  { %301 = vmatpush.msra.mxu3 %v782_v20 }
  0xa2   :  { %302 = vmatpush.msra.mxu3 %v791_v21  ;;  %v405_v21 = vld [vmem:[%s954_s5 + $0x20] sm:$0xff] }
  0xa4   :  { %303 = vmatpush.msra.mxu3 %v800_v22 }
  0xa6   :  { %304 = vmatpush.msra.mxu3 %v809_v23 }
  0xa8   :  { %305 = vmatpush.msra.mxu3 %v34_v24 }
  0xb7   :  { %s560_s2 = spop %559 }
  0xb8   :  { %p59_p0 = scmp.gt.f32.partialorder %s560_s2, 128.0 }
  0xba   :  { %s60_s19 = scalar_select %p59_p0, 255.0, 1.0 }
  0xbf   :  { %s562_s1 = spop %561 }
  0xc0   :  { %p73_p1 = scmp.lt.f32.partialorder %s562_s1, -0.5 }
  0xc2   :  { %s74_s20 = scalar_select %p73_p1, -1.0, 0.0 }
  0xc4   :  { %s75_s21 = ssub.f32 %s60_s19, %s74_s20 }
  0xc6   :  { %s76_s22 = smul.f32 0.01, %s75_s21 }
  0xc7   :  { %s78_s4 = smul.f32 0.03, %s75_s21 }
  0xc8   :  { %s871_s23 = smul.f32 %s76_s22, %s76_s22 }
  0xc9   :  { %s879_s24 = smul.f32 %s78_s4, %s78_s4 }
  0xca   :  { %v332_v55 = vstv %s871_s23 }
  0xcb   :  { %v312_v62 = vstv %s879_s24 }
 0x103   :  { %v261_v57 = vpop.f32.mrf.mxu0 }
 0x106   :  { %v124_v46 = vpop.f32.mrf.mxu1 }
 0x107   :  { %v170_v49 = vmul.f32 %v124_v46, %v124_v46 }
 0x10e   :  { %v284_v47 = vpop.f32.mrf.mxu1 }
 0x10f   :  { %554 = vmatmul.msk.f32.vlgmr.msra.gmra.mxu3 %vm46_vm0, %v284_v47 }
 0x114   :  { %v167_v48 = vpop.f32.mrf.mxu3 }
 0x115   :  { %v171_v50 = vmul.f32 %v167_v48, %v167_v48  ;;  %v861_v51 = vmul.f32 %v167_v48, %v124_v46 }
 0x117   :  { %v331_v52 = vadd.f32 %v171_v50, %v170_v49  ;;  %v264_v59 = vsub.f32 %v261_v57, %v171_v50  ;;  %v348_v20 = vmul.f32 2.0, %v861_v51 }
 0x119   :  { %v876_v56 = vadd.f32 %v332_v55, %v331_v52  ;;  %v349_v35 = vadd.f32 %v348_v20, %v332_v55 }
 0x11b   :  { %572 = vrcp.f32 %v876_v56  ;;  %vm339_vm6 = vweird.f32 %v876_v56  ;;  %v345_v26 = vand.u32 2147483648, %v876_v56  ;;  %v343_v30 = vand.u32 2147483647, %v876_v56 }
 0x11c   :  { %v192_v53 = vpop.f32.mrf.mxu3 }
 0x11d   :  { %550 = vmatmul.msk.f32.vlgmr.msra.gmra.mxu2 %vm46_vm0, %v192_v53  ;;  %v346_v36 = vor.u32 1.1754944e-38, %v345_v26  ;;  %vm344_vm9 = vcmp.eq.f32.partialorder %v343_v30, 8.507059e+37 }
 0x11e   :  { %475 = vmatpush.msra.mxu2 %v702_v3 }
 0x120   :  { %476 = vmatpush.msra.mxu2 %v707_v4  ;;  %v410_v4 = vld [vmem:[%s954_s5 + $0x48] sm:$0xff] }
 0x121   :  { %v882_v63 = vpop.eup %572  ;;  %445 = vmatpush.msra.mxu1 %v410_v4  ;;  %490 = vmatpush.msra.mxu0 %v410_v4 }
 0x122   :  { %v335_v3 = vmul.f32 %v882_v63, %v876_v56  ;;  %vm340_vm4 = vweird.f32 %v882_v63 }
 0x123   :  { %446 = vmatpush.msra.mxu1 %v409_v6  ;;  %491 = vmatpush.msra.mxu0 %v409_v6  ;;  %vm341_vm8 = vmor %vm339_vm6, %vm340_vm4 }
 0x124   :  { %v336_v7 = vsub.f32 1.0, %v335_v3 }
 0x125   :  { %555 = vmatmul.msk.f32.vlgmr.msrb.gmra.mxu2 %vm80_vm1, %v400_v54  ;;  %447 = vmatpush.msra.mxu1 %v408_v9 }
 0x126   :  { %v337_v14 = vmul.f32 %v882_v63, %v336_v7  ;;  %492 = vmatpush.msra.mxu0 %v408_v9 }
 0x127   :  { %448 = vmatpush.msra.mxu1 %v407_v12 }
 0x128   :  { %493 = vmatpush.msra.mxu0 %v407_v12  ;;  %v338_v24 = vadd.f32 %v882_v63, %v337_v14 }
 0x129   :  { %449 = vmatpush.msra.mxu1 %v406_v16 }
 0x12a   :  { %494 = vmatpush.msra.mxu0 %v406_v16  ;;  %v342_v34 = vsel %vm341_vm8, %v882_v63, %v338_v24 }
 0x12b   :  { %450 = vmatpush.msra.mxu1 %v405_v21  ;;  %v347_v39 = vsel %vm344_vm9, %v346_v36, %v342_v34 }
 0x12c   :  { %495 = vmatpush.msra.mxu0 %v405_v21 }
 0x12d   :  { %557 = vmatmul.msk.f32.vlgmr.msra.gmra.mxu2 %vm80_vm1, %v400_v54  ;;  %451 = vmatpush.msra.mxu1 %v404_v27 }
 0x12e   :  { %496 = vmatpush.msra.mxu0 %v404_v27 }
 0x12f   :  { %452 = vmatpush.msra.mxu1 %v403_v32 }
 0x130   :  { %497 = vmatpush.msra.mxu0 %v403_v32 }
 0x131   :  { %453 = vmatpush.msra.mxu1 %v402_v37 }
 0x132   :  { %498 = vmatpush.msra.mxu0 %v402_v37 }
 0x133   :  { %454 = vmatpush.msra.mxu1 %v401_v40 }
 0x134   :  { %499 = vmatpush.msra.mxu0 %v401_v40 }
 0x192   :  { %v307_v5 = vpop.f32.mrf.mxu3 }
 0x193   :  { %v310_v10 = vsub.f32 %v307_v5, %v861_v51 }
 0x195   :  { %v311_v17 = vmul.f32 2.0, %v310_v10 }
 0x197   :  { %v313_v28 = vadd.f32 %v312_v62, %v311_v17 }
 0x1a0   :  { %v215_v58 = vpop.f32.mrf.mxu2 }
 0x1a1   :  { %v218_v60 = vsub.f32 %v215_v58, %v170_v49 }
 0x1a3   :  { %v314_v61 = vadd.f32 %v264_v59, %v218_v60 }
 0x1a5   :  { %v315_v0 = vadd.f32 %v314_v61, %v312_v62 }
 0x1a7   :  { %574 = vrcp.f32 %v315_v0  ;;  %v327_v15 = vand.u32 2147483648, %v315_v0  ;;  %v325_v19 = vand.u32 2147483647, %v315_v0  ;;  %vm321_vm3 = vweird.f32 %v315_v0 }
 0x1a8   :  { %v433_v22 = vpop.f32.mrf.mxu2  ;;  %576 = vrcp.f32 %v630_v45 }
 0x1a9   :  { %v328_v25 = vor.u32 1.1754944e-38, %v327_v15  ;;  %vm326_vm7 = vcmp.eq.f32.partialorder %v325_v19, 8.507059e+37  ;;  %556 = vmatmul.msk.f32.vlgmr.msra.gmra.mxu1 %vm46_vm0, %v433_v22 }
 0x1ad   :  { %v575_v8 = vpop.eup %574 }
 0x1ae   :  { %v317_v11 = vmul.f32 %v575_v8, %v315_v0  ;;  %vm322_vm2 = vweird.f32 %v575_v8  ;;  %v577_v46 = vpop.eup %576 }
 0x1af   :  { %vm323_vm5 = vmor %vm321_vm3, %vm322_vm2  ;;  %v364_v47 = vmul.f32 216.0, %v577_v46  ;;  %vm368_vm11 = vweird.f32 %v577_v46 }
 0x1b0   :  { %v318_v13 = vsub.f32 1.0, %v317_v11  ;;  %v478_v42 = vpop.f32.mrf.mxu2 }
 0x1b1   :  { %558 = vmatmul.msk.f32.vlgmr.msra.gmra.mxu0 %vm46_vm0, %v478_v42  ;;  %v365_v48 = vsub.f32 1.0, %v364_v47 }
 0x1b2   :  { %v319_v18 = vmul.f32 %v575_v8, %v318_v13 }
 0x1b3   :  { %v366_v52 = vmul.f32 %v577_v46, %v365_v48 }
 0x1b4   :  { %v320_v23 = vadd.f32 %v575_v8, %v319_v18 }
 0x1b5   :  { %v367_v55 = vadd.f32 %v577_v46, %v366_v52 }
 0x1b6   :  { %v324_v29 = vsel %vm323_vm5, %v575_v8, %v320_v23 }
 0x1b7   :  { %v329_v31 = vsel %vm326_vm7, %v328_v25, %v324_v29  ;;  %v369_v61 = vsel %vm368_vm11, %v577_v46, %v367_v55 }
 0x1b8   :  { %v330_v33 = vmul.f32 %v329_v31, %v313_v28 }
 0x1ba   :  { %v350_v38 = vmul.f32 %v349_v35, %v330_v33  ;;  %v375_v44 = vsel %vm352_vm10, %v330_v33, 0.0 }
 0x1bc   :  { %v351_v41 = vmul.f32 %v350_v38, %v347_v39 }
 0x1be   :  { %v353_v43 = vsel %vm352_vm10, %v351_v41, 0.0 }
 0x1bf   :  { %354 = vadd.xlane.f32.xlu1 %v353_v43 }
 0x1c7   :  { %376 = vadd.xlane.f32.xlu1 %v375_v44 }
 0x226   :  { %v456_v2 = vpop.f32.mrf.mxu1 }
 0x227   :  { %460 = vst.msk [vmem:[%s957_s8] sm:$0xff] %vm459_vm12, %v456_v2  ;;  %s632_s8 = smov [#allocation4]  }
 0x228   :  { %s521_s13 = sshll.u32 %s632_s8, 4  ;;  %s522_s13 = int_to_ptr.vmem [resolvable:$true] %s521_s13 }
 0x22e   :  { %v501_v3 = vpop.f32.mrf.mxu0 }
 0x22f   :  { %504 = vst.msk [vmem:[%s958_s9] sm:$0xff] %vm459_vm12, %v501_v3  ;;  %s523_s9 = sshll.u32 %s956_s7, 4  ;;  %s524_s9 = int_to_ptr.hbm [resolvable:$true] %s523_s9 }
 0x232   :  { %v355_v49 = vpop.xlane.xlu1 %354 }
 0x233   :  { %v356_v50 = vrot.slane %v355_v49, 4 }
 0x235   :  { %v357_v51 = vadd.f32 %v356_v50, %v355_v49 }
 0x237   :  { %v358_v53 = vrot.slane %v357_v51, 2 }
 0x239   :  { %v359_v54 = vadd.f32 %v358_v53, %v357_v51 }
 0x23a   :  { %v377_v56 = vpop.xlane.xlu1 %376 }
 0x23b   :  { %v378_v57 = vrot.slane %v377_v56, 4  ;;  %v360_v58 = vrot.slane %v359_v54, 1 }
 0x23d   :  { %v379_v59 = vadd.f32 %v378_v57, %v377_v56  ;;  %v361_v60 = vadd.f32 %v360_v58, %v359_v54 }
 0x23f   :  { %v380_v62 = vrot.slane %v379_v59, 2  ;;  %563 = vpush %v361_v60 }
 0x240   :  { %565 = vpush %v369_v61 }
 0x241   :  { %v381_v63 = vadd.f32 %v380_v62, %v379_v59 }
 0x243   :  { %v382_v0 = vrot.slane %v381_v63, 1 }
 0x245   :  { %v383_v1 = vadd.f32 %v382_v0, %v381_v63 }
 0x247   :  { %567 = vpush %v383_v1 }
 0x270   :  { %s564_s28 = spop %563 }
 0x271   :  { %s566_s11 = spop %565 }
 0x272   :  { %s371_s12 = smul.f32 %s566_s11, %s564_s28 }
 0x274   :  { %v372_v4 = vstv %s371_s12 }
 0x275   :  { %374 = vst.msk [vmem:[#allocation2] sm:$0x1] %vm373_vm13, %v372_v4 }
 0x276   :  { %515 = dma.vmem_to_hbm [thread:$0]  %s511_s27, 16, %s513_s10, [#allocation3]  }
 0x278   :  { %s568_s16 = spop %567 }
 0x279   :  { %s393_s17 = smul.f32 %s568_s16, %s566_s11 }
 0x27b   :  { %v394_v5 = vstv %s393_s17 }
 0x27c   :  { %395 = vst.msk [vmem:[#allocation4] sm:$0x1] %vm373_vm13, %v394_v5 }
 0x27d   :  { %526 = dma.vmem_to_hbm [thread:$0]  %s522_s13, 16, %s524_s9, [#allocation5]  }
 0x27e   :  { %626 = dma.done.wait [#allocation3], 16  }
 0x27f   :  { %627 = vsyncadd [#allocation3], 4294967280 }
 0x280   :  { %628 = dma.done.wait [#allocation5], 16  }
 0x281   :  { %629 = vsyncadd [#allocation5], 4294967280 }
 0x282   :  { %543 = vsyncpa [#allocation3], 1 }
 0x283   :  { %544 = vsyncpa [#allocation5], 1 }

// kernel: _lambda_.5
= control target key start
LH: loop header
LB: loop body
LE: loop exit
PB: predicated region body
PF: predicated region fallthrough
CT: control target
= control target key end

     0   :  { %15 = vsyncpa [#allocation3], 0  ;;  %vm146_vm0 = vcmask 261120   ;;  %s3446_s0 = inlined_call_operand.vmem [shape: f32[32,192], index: 0, kind: input, shape index: {}]   ;;  %s3447_s1 = inlined_call_operand.vmem [shape: f32[32,192], index: 1, kind: input, shape index: {}]   ;;  %s3448_s2 = inlined_call_operand.vmem [shape: f32[22,32], index: 2, kind: input, shape index: {}]   ;;  %s3449_s3 = inlined_call_operand.vmem [shape: f32[192,132], index: 3, kind: input, shape index: {}]   ;;  %s3450_s4 = inlined_call_operand.vmem [shape: f32[16,32], index: 4, kind: input, shape index: {}]   ;;  %s3451_s5 = inlined_call_operand.vmem [shape: f32[192,96], index: 5, kind: input, shape index: {}]   ;;  %s3452_s6 = inlined_call_operand.hbm [shape: f32[1,1], index: 6, kind: output, shape index: {0}]   ;;  %s3453_s7 = inlined_call_operand.hbm [shape: f32[1,1], index: 7, kind: output, shape index: {1}]   ;;  %s3454_s8 = inlined_call_operand.vmem [shape: f32[16,96], index: 8, kind: output, shape index: {2}]   ;;  %s3455_s9 = inlined_call_operand.vmem [shape: f32[16,96], index: 9, kind: output, shape index: {3}]  }
   0x1   :  { %v1872_v0 = vld [vmem:[%s3446_s0 + $0x30] sm:$0xff]  ;;  %v1877_v1 = vld [vmem:[%s3446_s0 + $0x38] sm:$0xff]  ;;  %v1882_v2 = vld [vmem:[%s3446_s0 + $0x20] sm:$0xff] }
   0x2   :  { %168 = vmatpush.msra.mxu0 %v1872_v0  ;;  %194 = vmatpush.msra.mxu1 %v1877_v1  ;;  %v1889_v3 = vld [vmem:[%s3446_s0 + $0x28] sm:$0xff]  ;;  %v1894_v4 = vld [vmem:[%s3446_s0 + $0x10] sm:$0xff]  ;;  %v1899_v5 = vld [vmem:[%s3446_s0 + $0x18] sm:$0xff] }
   0x3   :  { %v1906_v6 = vld [vmem:[%s3449_s3 + $0xf0] sm:$0xff]  ;;  %v1911_v7 = vld [vmem:[%s3446_s0] sm:$0xff]  ;;  %v1916_v8 = vld [vmem:[%s3446_s0 + $0x8] sm:$0xff] }
   0x4   :  { %169 = vmatpush.msra.mxu0 %v1882_v2  ;;  %195 = vmatpush.msra.mxu1 %v1889_v3  ;;  %3511 = vst [vmem:[#allocation8_spill] sm:$0xff] %v1916_v8  ;;  %v1922_v9 = vld [vmem:[%s3449_s3 + $0xe0] sm:$0xff]  ;;  %v1934_v11 = vld [vmem:[%s3449_s3 + $0xf8] sm:$0xff]  ;;  %v1940_v12 = vld [vmem:[%s3449_s3 + $0xd0] sm:$0xff] }
   0x5   :  { %217 = vmatpush.msra.mxu2 %v1906_v6  ;;  %v1929_v10 = vld [vmem:[%s3448_s2] sm:$0xff]  ;;  %3512 = vst [vmem:[#allocation9_spill] sm:$0xff] %v1934_v11  ;;  %v1951_v13 = vld [vmem:[%s3449_s3 + $0xe8] sm:$0xff]  ;;  %v1963_v15 = vld [vmem:[%s3449_s3 + $0xd8] sm:$0xff] }
   0x6   :  { %170 = vmatpush.msra.mxu0 %v1894_v4  ;;  %196 = vmatpush.msra.mxu1 %v1899_v5  ;;  %3513 = vst [vmem:[#allocation10_spill] sm:$0xff] %v1951_v13  ;;  %v1956_v14 = vld [vmem:[%s3449_s3 + $0xc0] sm:$0xff]  ;;  %v1968_v16 = vld [vmem:[%s3449_s3 + $0x170] sm:$0xff]  ;;  %v1979_v18 = vld [vmem:[%s3449_s3 + $0x178] sm:$0xff] }
   0x7   :  { %218 = vmatpush.msra.mxu2 %v1922_v9  ;;  %3514 = vst [vmem:[#allocation11_spill] sm:$0xff] %v1963_v15  ;;  %v1973_v17 = vld [vmem:[%s3449_s3 + $0xb0] sm:$0xff]  ;;  %251 = vmatpush.msra.mxu3 %v1968_v16  ;;  %v1984_v19 = vld [vmem:[%s3449_s3 + $0x160] sm:$0xff]  ;;  %v1991_v20 = vld [vmem:[%s3449_s3 + $0x168] sm:$0xff] }
   0x8   :  { %171 = vmatpush.msra.mxu0 %v1911_v7  ;;  %197 = vmatpush.msra.mxu1 %v1916_v8  ;;  %3515 = vst [vmem:[#allocation12_spill] sm:$0xff] %v1979_v18  ;;  %v1996_v21 = vld [vmem:[%s3449_s3 + $0xc8] sm:$0xff]  ;;  %v2001_v22 = vld [vmem:[%s3449_s3 + $0xa0] sm:$0xff]  ;;  %v2008_v23 = vld [vmem:[%s3449_s3 + $0x150] sm:$0xff] }
   0x9   :  { %1628 = vmatmul.msk.f32.vlgmr.msra.gmra.mxu0 %vm146_vm0, %v1929_v10  ;;  %1631 = vmatmul.msk.f32.vlgmr.msra.gmra.mxu1 %vm146_vm0, %v1929_v10  ;;  %3516 = vst [vmem:[#allocation13_spill] sm:$0xff] %v1991_v20  ;;  %v2013_v24 = vld [vmem:[%s3448_s2 + $0x8] sm:$0xff]  ;;  %v2020_v25 = vld [vmem:[%s3449_s3 + $0xb8] sm:$0xff]  ;;  %v2025_v26 = vld [vmem:[%s3449_s3 + $0x90] sm:$0xff] }
   0xa   :  { %269 = vmatpush.msrb.mxu0 %v1934_v11  ;;  %219 = vmatpush.msra.mxu2 %v1940_v12  ;;  %3517 = vst [vmem:[#allocation14_spill] sm:$0xff] %v1996_v21  ;;  %v2034_v27 = vld [vmem:[%s3449_s3 + $0x158] sm:$0xff]  ;;  %v2039_v28 = vld [vmem:[%s3449_s3 + $0x140] sm:$0xff]  ;;  %v2048_v29 = vld [vmem:[%s3449_s3 + $0xa8] sm:$0xff] }
   0xb   :  { %303 = vmatpush.msrb.mxu1 %v1979_v18  ;;  %252 = vmatpush.msra.mxu3 %v1984_v19  ;;  %3518 = vst [vmem:[#allocation15_spill] sm:$0xff] %v2008_v23  ;;  %v2053_v30 = vld [vmem:[%s3449_s3 + $0x80] sm:$0xff]  ;;  %v2060_v31 = vld [vmem:[%s3449_s3 + $0x148] sm:$0xff]  ;;  %v2065_v32 = vld [vmem:[%s3449_s3 + $0x130] sm:$0xff] }
   0xc   :  { %270 = vmatpush.msrb.mxu0 %v1951_v13  ;;  %220 = vmatpush.msra.mxu2 %v1956_v14  ;;  %3519 = vst [vmem:[#allocation16_spill] sm:$0xff] %v2020_v25  ;;  %v2070_v33 = vld [vmem:[%s3449_s3 + $0x98] sm:$0xff]  ;;  %v2075_v34 = vld [vmem:[%s3449_s3 + $0x70] sm:$0xff] }
   0xd   :  { %304 = vmatpush.msrb.mxu1 %v1991_v20  ;;  %253 = vmatpush.msra.mxu3 %v2008_v23  ;;  %3520 = vst [vmem:[#allocation17_spill] sm:$0xff] %v2034_v27 }
   0xe   :  { %271 = vmatpush.msrb.mxu0 %v1963_v15  ;;  %221 = vmatpush.msra.mxu2 %v1973_v17  ;;  %3521 = vst [vmem:[#allocation18_spill] sm:$0xff] %v2039_v28 }
   0xf   :  { %3522 = vst [vmem:[#allocation19_spill] sm:$0xff] %v2065_v32  ;;  %305 = vmatpush.msrb.mxu1 %v2034_v27  ;;  %254 = vmatpush.msra.mxu3 %v2039_v28 }
  0x10   :  { %272 = vmatpush.msrb.mxu0 %v1996_v21  ;;  %222 = vmatpush.msra.mxu2 %v2001_v22 }
  0x11   :  { %1629 = vmatmul.msk.f32.gmra.mxu0 %vm146_vm0, %v2013_v24  ;;  %1632 = vmatmul.msk.f32.gmra.mxu1 %vm146_vm0, %v2013_v24 }
  0x12   :  { %273 = vmatpush.msrb.mxu0 %v2020_v25  ;;  %223 = vmatpush.msra.mxu2 %v2025_v26 }
  0x13   :  { %16 = vsyncpa [#allocation5], 0  ;;  %v2084_v35 = vld [vmem:[%s3449_s3 + $0x138] sm:$0xff]  ;;  %v2089_v36 = vld [vmem:[%s3449_s3 + $0x120] sm:$0xff]  ;;  %306 = vmatpush.msrb.mxu1 %v2060_v31  ;;  %255 = vmatpush.msra.mxu3 %v2065_v32  ;;  %vm96_vm1 = vcmask 523264   ;;  %s1817_s29 = smov [#allocation2]  }
  0x14   :  { %274 = vmatpush.msrb.mxu0 %v2048_v29  ;;  %224 = vmatpush.msra.mxu2 %v2053_v30  ;;  %3523 = vst [vmem:[#allocation20_spill] sm:$0xff] %v2089_v36  ;;  %v2094_v37 = vld [vmem:[%s3449_s3 + $0x88] sm:$0xff]  ;;  %v2099_v38 = vld [vmem:[%s3449_s3 + $0x60] sm:$0xff]  ;;  %v2106_v39 = vld [vmem:[%s3448_s2 + $0x10] sm:$0x3f]  ;;  %s1593_s30 = sshll.u32 %s1817_s29, 4  ;;  %s1594_s30 = int_to_ptr.vmem [resolvable:$true] %s1593_s30 }
  0x15   :  { %3524 = vst [vmem:[#allocation21_spill] sm:$0xff] %v2094_v37  ;;  %v2113_v40 = vld [vmem:[%s3449_s3 + $0x78] sm:$0xff]  ;;  %v2118_v41 = vld [vmem:[%s3449_s3 + $0x50] sm:$0xff]  ;;  %307 = vmatpush.msrb.mxu1 %v2084_v35  ;;  %256 = vmatpush.msra.mxu3 %v2089_v36  ;;  %v2127_v42 = vld [vmem:[%s3449_s3 + $0x128] sm:$0xff]  ;;  %s1818_s12 = smov [#allocation4]  }
  0x16   :  { %275 = vmatpush.msrb.mxu0 %v2070_v33  ;;  %225 = vmatpush.msra.mxu2 %v2075_v34  ;;  %3525 = vst [vmem:[#allocation22_spill] sm:$0xff] %v2113_v40  ;;  %v2132_v43 = vld [vmem:[%s3449_s3 + $0x110] sm:$0xff]  ;;  %v2141_v44 = vld [vmem:[%s3449_s3 + $0x68] sm:$0xff]  ;;  %v2146_v45 = vld [vmem:[%s3449_s3 + $0x40] sm:$0xff]  ;;  %s1604_s13 = sshll.u32 %s1818_s12, 4  ;;  %s1605_s13 = int_to_ptr.vmem [resolvable:$true] %s1604_s13 }
  0x17   :  { %3526 = vst [vmem:[#allocation23_spill] sm:$0xff] %v2132_v43  ;;  %v2153_v46 = vld [vmem:[%s3449_s3 + $0x118] sm:$0xff]  ;;  %v2163_v48 = vld [vmem:[%s3449_s3 + $0x30] sm:$0xff]  ;;  %308 = vmatpush.msrb.mxu1 %v2127_v42  ;;  %257 = vmatpush.msra.mxu3 %v2132_v43  ;;  %v2172_v49 = vld [vmem:[%s3449_s3 + $0x48] sm:$0xff] }
  0x18   :  { %276 = vmatpush.msrb.mxu0 %v2094_v37  ;;  %226 = vmatpush.msra.mxu2 %v2099_v38  ;;  %3527 = vst [vmem:[#allocation24_spill] sm:$0xff] %v2141_v44  ;;  %v2158_v47 = vld [vmem:[%s3449_s3 + $0x58] sm:$0xff]  ;;  %v2177_v50 = vld [vmem:[%s3449_s3 + $0x20] sm:$0xff]  ;;  %v2190_v52 = vld [vmem:[%s3449_s3 + $0x10] sm:$0xff] }
  0x19   :  { %1630 = vmatmul.msk.f32.gmra.mxu0 %vm146_vm0, %v2106_v39  ;;  %1633 = vmatmul.msk.f32.gmra.mxu1 %vm146_vm0, %v2106_v39  ;;  %3528 = vst [vmem:[#allocation25_spill] sm:$0xff] %v2158_v47  ;;  %v2185_v51 = vld [vmem:[%s3449_s3 + $0x38] sm:$0xff]  ;;  %v2197_v53 = vld [vmem:[%s3449_s3 + $0x28] sm:$0xff]  ;;  %v2211_v55 = vld [vmem:[%s3449_s3] sm:$0xff] }
  0x1a   :  { %277 = vmatpush.msrb.mxu0 %v2113_v40  ;;  %227 = vmatpush.msra.mxu2 %v2118_v41  ;;  %v2204_v54 = vld [vmem:[%s3449_s3 + $0x18] sm:$0xff]  ;;  %3529 = vst [vmem:[#allocation26_spill] sm:$0xff] %v2211_v55  ;;  %v2216_v56 = vld [vmem:[%s3449_s3 + $0x100] sm:$0xff]  ;;  %v2221_v57 = vld [vmem:[%s3449_s3 + $0x8] sm:$0xff] }
  0x1b   :  { %309 = vmatpush.msrb.mxu1 %v2153_v46  ;;  %3530 = vst [vmem:[#allocation27_spill] sm:$0xff] %v2216_v56  ;;  %258 = vmatpush.msra.mxu3 %v2216_v56  ;;  %v2228_v58 = vld [vmem:[%s3449_s3 + $0x108] sm:$0xff]  ;;  %v2235_v59 = vld [vmem:[%s3447_s1 + $0x30] sm:$0xff]  ;;  %v2240_v60 = vld [vmem:[%s3447_s1 + $0x20] sm:$0xff] }
  0x1c   :  { %278 = vmatpush.msrb.mxu0 %v2141_v44  ;;  %228 = vmatpush.msra.mxu2 %v2146_v45  ;;  %3531 = vst [vmem:[#allocation28_spill] sm:$0xff] %v2235_v59  ;;  %v2255_v61 = vld [vmem:[%s3447_s1 + $0x10] sm:$0xff]  ;;  %v2269_v62 = vld [vmem:[%s3447_s1] sm:$0xff]  ;;  %v2274_v63 = vld [vmem:[%s3447_s1 + $0x38] sm:$0xff] }
  0x1d   :  { %310 = vmatpush.msrb.mxu1 %v2228_v58  ;;  %3532 = vst [vmem:[#allocation29_spill] sm:$0xff] %v2240_v60  ;;  %333 = vmatpush.msrb.mxu3 %v2235_v59  ;;  %v120_v59 = vsel %vm96_vm1, %v1899_v5, inf }
  0x1e   :  { %279 = vmatpush.msrb.mxu0 %v2158_v47  ;;  %229 = vmatpush.msra.mxu2 %v2163_v48  ;;  %3533 = vst [vmem:[#allocation30_spill] sm:$0xff] %v2255_v61 }
  0x1f   :  { %334 = vmatpush.msrb.mxu3 %v2240_v60  ;;  %3534 = vst [vmem:[#allocation31_spill] sm:$0xff] %v2269_v62  ;;  %359 = vmatpush.msra.mxu1 %v2274_v63 }
  0x20   :  { %280 = vmatpush.msrb.mxu0 %v2172_v49  ;;  %230 = vmatpush.msra.mxu2 %v2177_v50  ;;  %3535 = vst [vmem:[#allocation32_spill] sm:$0xff] %v2274_v63  ;;  %v2296_v63 = vld [vmem:[%s3447_s1 + $0x18] sm:$0xff] }
  0x21   :  { %335 = vmatpush.msrb.mxu3 %v2255_v61  ;;  %v2285_v61 = vld [vmem:[%s3447_s1 + $0x28] sm:$0xff]  ;;  %3537 = vst [vmem:[#allocation34_spill] sm:$0xff] %v2296_v63 }
  0x22   :  { %281 = vmatpush.msrb.mxu0 %v2185_v51  ;;  %231 = vmatpush.msra.mxu2 %v2190_v52  ;;  %3536 = vst [vmem:[#allocation33_spill] sm:$0xff] %v2285_v61 }
  0x23   :  { %336 = vmatpush.msrb.mxu3 %v2269_v62  ;;  %360 = vmatpush.msra.mxu1 %v2285_v61  ;;  %v2302_v61 = vld [vmem:[%s3447_s1 + $0x8] sm:$0xff] }
  0x24   :  { %282 = vmatpush.msrb.mxu0 %v2197_v53  ;;  %232 = vmatpush.msra.mxu2 %v2211_v55  ;;  %3538 = vst [vmem:[#allocation35_spill] sm:$0xff] %v2302_v61 }
  0x25   :  { %361 = vmatpush.msra.mxu1 %v2296_v63  ;;  %v98_v63 = vsel %vm96_vm1, %v1899_v5, -inf }
  0x26   :  { %283 = vmatpush.msrb.mxu0 %v2204_v54  ;;  %382 = vmatpush.msrb.mxu2 %v1906_v6 }
  0x27   :  { %362 = vmatpush.msra.mxu1 %v2302_v61  ;;  %v97_v61 = vsel %vm96_vm1, %v1916_v8, -inf }
  0x28   :  { %284 = vmatpush.msrb.mxu0 %v2221_v57  ;;  %383 = vmatpush.msrb.mxu2 %v1922_v9 }
  0x2a   :  { %416 = vmatpush.msra.mxu0 %v1968_v16  ;;  %384 = vmatpush.msrb.mxu2 %v1940_v12 }
  0x2c   :  { %417 = vmatpush.msra.mxu0 %v1984_v19  ;;  %385 = vmatpush.msrb.mxu2 %v1956_v14 }
  0x2e   :  { %418 = vmatpush.msra.mxu0 %v2008_v23  ;;  %386 = vmatpush.msrb.mxu2 %v1973_v17 }
  0x30   :  { %419 = vmatpush.msra.mxu0 %v2039_v28  ;;  %387 = vmatpush.msrb.mxu2 %v2001_v22 }
  0x32   :  { %420 = vmatpush.msra.mxu0 %v2065_v32  ;;  %388 = vmatpush.msrb.mxu2 %v2025_v26 }
  0x34   :  { %421 = vmatpush.msra.mxu0 %v2089_v36  ;;  %389 = vmatpush.msrb.mxu2 %v2053_v30 }
  0x36   :  { %422 = vmatpush.msra.mxu0 %v2132_v43  ;;  %390 = vmatpush.msrb.mxu2 %v2075_v34 }
  0x38   :  { %423 = vmatpush.msra.mxu0 %v2216_v56  ;;  %391 = vmatpush.msrb.mxu2 %v2099_v38 }
  0x3a   :  { %392 = vmatpush.msrb.mxu2 %v2118_v41 }
  0x3c   :  { %393 = vmatpush.msrb.mxu2 %v2146_v45 }
  0x3e   :  { %394 = vmatpush.msrb.mxu2 %v2163_v48 }
  0x40   :  { %395 = vmatpush.msrb.mxu2 %v2177_v50 }
  0x42   :  { %396 = vmatpush.msrb.mxu2 %v2190_v52 }
  0x44   :  { %397 = vmatpush.msrb.mxu2 %v2211_v55  ;;  %v125_v55 = vsel %vm96_vm1, %v1877_v1, inf }
  0x86   :  { %v173_v62 = vpop.f32.mrf.mxu0  ;;  %v199_v60 = vpop.f32.mrf.mxu1 }
  0x87   :  { %233 = vmatmul.f32.vlgmr.msra.gmra.mxu2 %v173_v62  ;;  %1634 = vmatmul.msk.f32.vlgmr.msra.gmra.mxu3 %vm96_vm1, %v199_v60 }
  0x88   :  { %285 = vmatmul.f32.vlgmr.msrb.gmra.mxu0 %v173_v62  ;;  %1637 = vmatmul.msk.f32.vlgmr.msrb.gmra.mxu1 %vm96_vm1, %v199_v60 }
  0x89   :  { %434 = vmatpush.msra.mxu3 %v1934_v11  ;;  %1700 = vmatpush.msra.mxu2 %v1968_v16  ;;  %v119_v11 = vsel %vm96_vm1, %v1916_v8, inf  ;;  %v126_v8 = vmin.f32 %v120_v59, %v125_v55 }
  0x8a   :  { %468 = vmatpush.msrb.mxu1 %v1979_v18  ;;  %v99_v18 = vmax.f32 %v1911_v7, %v1882_v2 }
  0x8b   :  { %435 = vmatpush.msra.mxu3 %v1951_v13  ;;  %1701 = vmatpush.msra.mxu2 %v1984_v19  ;;  %v102_v13 = vmax.f32 %v1894_v4, %v1872_v0 }
  0x8c   :  { %469 = vmatpush.msrb.mxu1 %v1991_v20  ;;  %v100_v20 = vsel %vm96_vm1, %v1889_v3, -inf }
  0x8d   :  { %436 = vmatpush.msra.mxu3 %v1963_v15  ;;  %1702 = vmatpush.msra.mxu2 %v2008_v23  ;;  %v101_v15 = vmax.f32 %v97_v61, %v100_v20  ;;  %v122_v20 = vsel %vm96_vm1, %v1889_v3, inf }
  0x8e   :  { %v176_v60 = vpop.f32.mrf.mxu0  ;;  %v202_v62 = vpop.f32.mrf.mxu1  ;;  %470 = vmatpush.msrb.mxu1 %v2034_v27  ;;  %v123_v27 = vmin.f32 %v119_v11, %v122_v20 }
  0x8f   :  { %236 = vmatmul.f32.gmra.mxu2 %v176_v60  ;;  %1635 = vmatmul.msk.f32.gmra.mxu3 %vm96_vm1, %v202_v62  ;;  %v105_v61 = vmax.f32 %v99_v18, %v101_v15 }
  0x90   :  { %288 = vmatmul.f32.gmra.mxu0 %v176_v60  ;;  %1638 = vmatmul.msk.f32.gmra.mxu1 %vm96_vm1, %v202_v62  ;;  %v103_v60 = vsel %vm96_vm1, %v1877_v1, -inf }
  0x91   :  { %437 = vmatpush.msra.mxu3 %v1996_v21  ;;  %v104_v62 = vmax.f32 %v98_v63, %v103_v60  ;;  %1703 = vmatpush.msra.mxu2 %v2039_v28  ;;  %v121_v60 = vmin.f32 %v1911_v7, %v1882_v2  ;;  %v124_v21 = vmin.f32 %v1894_v4, %v1872_v0 }
  0x92   :  { %471 = vmatpush.msrb.mxu1 %v2060_v31 }
  0x93   :  { %438 = vmatpush.msra.mxu3 %v2020_v25  ;;  %v106_v63 = vmax.f32 %v102_v13, %v104_v62  ;;  %1704 = vmatpush.msra.mxu2 %v2065_v32  ;;  %v127_v11 = vmin.f32 %v121_v60, %v123_v27  ;;  %v128_v13 = vmin.f32 %v124_v21, %v126_v8  ;;  %v3539_v8 = vld [vmem:[#allocation26_spill] sm:$0xff] }
  0x94   :  { %472 = vmatpush.msrb.mxu1 %v2084_v35 }
  0x95   :  { %439 = vmatpush.msra.mxu3 %v2048_v29  ;;  %v107_v25 = vmax.f32 %v105_v61, %v106_v63  ;;  %1705 = vmatpush.msra.mxu2 %v2089_v36  ;;  %v129_v55 = vmin.f32 %v127_v11, %v128_v13  ;;  %v510_v11 = vmul.f32 %v1872_v0, %v1872_v0 }
  0x96   :  { %v179_v15 = vpop.f32.mrf.mxu0  ;;  %v205_v18 = vpop.f32.mrf.mxu1  ;;  %473 = vmatpush.msrb.mxu1 %v2127_v42  ;;  %v508_v13 = vmul.f32 %v1882_v2, %v1882_v2  ;;  %v509_v2 = vmul.f32 %v1889_v3, %v1889_v3  ;;  %v3546_v3 = vld [vmem:[#allocation9_spill] sm:$0xff] }
  0x97   :  { %239 = vmatmul.f32.gmra.mxu2 %v179_v15  ;;  %1636 = vmatmul.msk.f32.gmra.mxu3 %vm96_vm1, %v205_v18 }
  0x98   :  { %291 = vmatmul.f32.gmra.mxu0 %v179_v15  ;;  %1639 = vmatmul.msk.f32.gmra.mxu1 %vm96_vm1, %v205_v18  ;;  %v3543_v15 = vld [vmem:[#allocation28_spill] sm:$0xff] }
  0x99   :  { %108 = vmax.xlane.f32.xlu0 %v107_v25  ;;  %440 = vmatpush.msra.mxu3 %v2070_v33  ;;  %v689_v18 = vmul.f32 %v3543_v15, %v3543_v15 }
  0x9a   :  { %1706 = vmatpush.msra.mxu2 %v2132_v43  ;;  %474 = vmatpush.msrb.mxu1 %v2153_v46 }
  0x9b   :  { %441 = vmatpush.msra.mxu3 %v2094_v37  ;;  %524 = vmatpush.msrb.mxu0 %v510_v11 }
  0x9c   :  { %1707 = vmatpush.msra.mxu2 %v2216_v56  ;;  %475 = vmatpush.msrb.mxu1 %v2228_v58 }
  0x9d   :  { %442 = vmatpush.msra.mxu3 %v2113_v40  ;;  %525 = vmatpush.msrb.mxu0 %v508_v13 }
  0x9f   :  { %1640 = vmatmul.msk.f32.vlgmr.msrb.gmra.mxu3 %vm146_vm0, %v1929_v10 }
  0xa0   :  { %1643 = vmatmul.msk.f32.vlgmr.msra.gmra.mxu1 %vm146_vm0, %v1929_v10  ;;  %443 = vmatpush.msra.mxu3 %v2141_v44 }
  0xa1   :  { %130 = vmin.xlane.f32.xlu0 %v129_v55  ;;  %607 = vmatpush.msra.mxu1 %v1968_v16 }
  0xa2   :  { %444 = vmatpush.msra.mxu3 %v2158_v47 }
  0xa3   :  { %608 = vmatpush.msra.mxu1 %v1984_v19 }
  0xa4   :  { %445 = vmatpush.msra.mxu3 %v2172_v49 }
  0xa5   :  { %609 = vmatpush.msra.mxu1 %v2008_v23 }
  0xa6   :  { %446 = vmatpush.msra.mxu3 %v2185_v51 }
  0xa7   :  { %1641 = vmatmul.msk.f32.gmra.mxu3 %vm146_vm0, %v2013_v24  ;;  %610 = vmatpush.msra.mxu1 %v2039_v28 }
  0xa8   :  { %1644 = vmatmul.msk.f32.gmra.mxu1 %vm146_vm0, %v2013_v24  ;;  %447 = vmatpush.msra.mxu3 %v2197_v53 }
  0xa9   :  { %611 = vmatpush.msra.mxu1 %v2065_v32 }
  0xaa   :  { %448 = vmatpush.msra.mxu3 %v2204_v54 }
  0xab   :  { %612 = vmatpush.msra.mxu1 %v2089_v36 }
  0xac   :  { %449 = vmatpush.msra.mxu3 %v2221_v57 }
  0xad   :  { %613 = vmatpush.msra.mxu1 %v2132_v43 }
  0xae   :  { %573 = vmatpush.msrb.mxu3 %v1906_v6 }
  0xaf   :  { %1642 = vmatmul.msk.f32.gmra.mxu3 %vm146_vm0, %v2106_v39  ;;  %614 = vmatpush.msra.mxu1 %v2216_v56 }
  0xb0   :  { %1645 = vmatmul.msk.f32.gmra.mxu1 %vm146_vm0, %v2106_v39  ;;  %574 = vmatpush.msrb.mxu3 %v1922_v9 }
  0xb2   :  { %575 = vmatpush.msrb.mxu3 %v1940_v12 }
  0xb4   :  { %576 = vmatpush.msrb.mxu3 %v1956_v14 }
  0xb6   :  { %577 = vmatpush.msrb.mxu3 %v1973_v17 }
  0xb8   :  { %578 = vmatpush.msrb.mxu3 %v2001_v22 }
  0xba   :  { %579 = vmatpush.msrb.mxu3 %v2025_v26 }
  0xbc   :  { %580 = vmatpush.msrb.mxu3 %v2053_v30 }
  0xbe   :  { %581 = vmatpush.msrb.mxu3 %v2075_v34 }
  0xc0   :  { %582 = vmatpush.msrb.mxu3 %v2099_v38 }
  0xc2   :  { %583 = vmatpush.msrb.mxu3 %v2118_v41 }
  0xc4   :  { %584 = vmatpush.msrb.mxu3 %v2146_v45 }
  0xc6   :  { %585 = vmatpush.msrb.mxu3 %v2163_v48 }
  0xc8   :  { %586 = vmatpush.msrb.mxu3 %v2177_v50 }
  0xca   :  { %587 = vmatpush.msrb.mxu3 %v2190_v52 }
  0xcc   :  { %588 = vmatpush.msrb.mxu3 %v3539_v8 }
 0x105   :  { %v2402_v21 = vpop.f32.mrf.mxu1 }
 0x10a   :  { %v2404_v25 = vpop.f32.mrf.mxu2  ;;  %v2406_v27 = vpop.f32.mrf.mxu3 }
 0x10b   :  { %3540 = vst [vmem:[#allocation26_spill] sm:$0xff] %v2404_v25 }
 0x10c   :  { %3541 = vst [vmem:[#allocation36_spill] sm:$0xff] %v2406_v27  ;;  %v506_v27 = vmul.f32 %v1894_v4, %v1894_v4  ;;  %v504_v4 = vmul.f32 %v1911_v7, %v1911_v7 }
 0x10d   :  { %v2408_v59 = vpop.f32.mrf.mxu1 }
 0x10e   :  { %526 = vmatpush.msrb.mxu0 %v506_v27  ;;  %v3545_v27 = vld [vmem:[#allocation8_spill] sm:$0xff] }
 0x10f   :  { %v505_v13 = vmul.f32 %v3545_v27, %v3545_v27  ;;  %v3551_v27 = vld [vmem:[#allocation12_spill] sm:$0xff] }
 0x110   :  { %527 = vmatpush.msrb.mxu0 %v504_v4  ;;  %v109_v4 = vpop.xlane.xlu0 %108 }
 0x112   :  { %v237_v62 = vpop.f32.mrf.mxu2  ;;  %v263_v20 = vpop.f32.mrf.mxu3 }
 0x113   :  { %v2410_v61 = vadd.f32 %v263_v20, %v237_v62  ;;  %v3544_v62 = vld [vmem:[#allocation32_spill] sm:$0xff] }
 0x114   :  { %v690_v20 = vmul.f32 %v3544_v62, %v3544_v62 }
 0x115   :  { %v2412_v63 = vpop.f32.mrf.mxu1 }
 0x116   :  { %3542 = vst [vmem:[#allocation37_spill] sm:$0xff] %v2412_v63  ;;  %v511_v63 = vmul.f32 %v1877_v1, %v1877_v1 }
 0x11a   :  { %v2414_v60 = vpop.f32.mrf.mxu3 }
 0x11d   :  { %v364_v55 = vpop.f32.mrf.mxu1 }
 0x11e   :  { %1646 = vmatmul.msk.f32.vlgmr.msra.gmra.mxu0 %vm96_vm1, %v364_v55  ;;  %1649 = vmatmul.msk.f32.vlgmr.msrb.gmra.mxu1 %vm96_vm1, %v364_v55  ;;  %v3549_v55 = vld [vmem:[#allocation14_spill] sm:$0xff] }
 0x11f   :  { %703 = vmatpush.msrb.mxu1 %v689_v18  ;;  %v507_v18 = vmul.f32 %v1899_v5, %v1899_v5  ;;  %625 = vmatpush.msra.mxu0 %v3546_v3  ;;  %v3548_v5 = vld [vmem:[#allocation11_spill] sm:$0xff] }
 0x122   :  { %v338_v25 = vpop.f32.mrf.mxu3 }
 0x123   :  { %398 = vmatmul.f32.vlgmr.msrb.gmra.mxu2 %v338_v25  ;;  %450 = vmatmul.f32.vlgmr.msra.gmra.mxu3 %v338_v25  ;;  %v3547_v25 = vld [vmem:[#allocation10_spill] sm:$0xff] }
 0x124   :  { %550 = vmatpush.msrb.mxu2 %v511_v63  ;;  %729 = vmatpush.msra.mxu3 %v690_v20  ;;  %v3550_v20 = vld [vmem:[#allocation16_spill] sm:$0xff] }
 0x125   :  { %v367_v11 = vpop.f32.mrf.mxu1  ;;  %626 = vmatpush.msra.mxu0 %v3547_v25 }
 0x126   :  { %1650 = vmatmul.msk.f32.gmra.mxu1 %vm96_vm1, %v367_v11  ;;  %551 = vmatpush.msrb.mxu2 %v509_v2 }
 0x127   :  { %1652 = vmatmul.msk.f32.vlgmr.msrb.gmra.mxu0 %vm146_vm0, %v1929_v10 }
 0x128   :  { %552 = vmatpush.msrb.mxu2 %v507_v18  ;;  %627 = vmatpush.msra.mxu0 %v3548_v5  ;;  %v110_v18 = vrot.slane %v109_v4, 4 }
 0x12a   :  { %v341_v7 = vpop.f32.mrf.mxu3  ;;  %553 = vmatpush.msrb.mxu2 %v505_v13  ;;  %628 = vmatpush.msra.mxu0 %v3549_v55  ;;  %v111_v13 = vmax.f32 %v109_v4, %v110_v18 }
 0x12b   :  { %401 = vmatmul.f32.gmra.mxu2 %v341_v7  ;;  %453 = vmatmul.f32.gmra.mxu3 %v341_v7  ;;  %v3552_v7 = vld [vmem:[#allocation13_spill] sm:$0xff] }
 0x12c   :  { %629 = vmatpush.msra.mxu0 %v3550_v20 }
 0x12d   :  { %v370_v63 = vpop.f32.mrf.mxu1 }
 0x12e   :  { %1651 = vmatmul.msk.f32.gmra.mxu1 %vm96_vm1, %v370_v63  ;;  %630 = vmatpush.msra.mxu0 %v2048_v29 }
 0x12f   :  { %1653 = vmatmul.msk.f32.gmra.mxu0 %vm146_vm0, %v2013_v24 }
 0x130   :  { %631 = vmatpush.msra.mxu0 %v2070_v33 }
 0x132   :  { %v344_v2 = vpop.f32.mrf.mxu3  ;;  %632 = vmatpush.msra.mxu0 %v2094_v37  ;;  %v3553_v37 = vld [vmem:[#allocation17_spill] sm:$0xff] }
 0x133   :  { %404 = vmatmul.f32.gmra.mxu2 %v344_v2  ;;  %456 = vmatmul.f32.gmra.mxu3 %v344_v2  ;;  %v112_v2 = vrot.slane %v111_v13, 2 }
 0x134   :  { %633 = vmatpush.msra.mxu0 %v2113_v40 }
 0x135   :  { %v113_v40 = vmax.f32 %v111_v13, %v112_v2 }
 0x136   :  { %634 = vmatpush.msra.mxu0 %v2141_v44 }
 0x137   :  { %1654 = vmatmul.msk.f32.gmra.mxu0 %vm146_vm0, %v2106_v39 }
 0x138   :  { %635 = vmatpush.msra.mxu0 %v2158_v47  ;;  %v114_v47 = vrot.slane %v113_v40, 1 }
 0x13a   :  { %636 = vmatpush.msra.mxu0 %v2172_v49  ;;  %v115_v18 = vmax.f32 %v113_v40, %v114_v47  ;;  %v286_v47 = vpop.f32.mrf.mxu0 }
 0x13b   :  { %1647 = vmatmul.msk.f32.vlgmr.msra.gmra.mxu2 %vm96_vm1, %v367_v11  ;;  %v131_v11 = vpop.xlane.xlu0 %130 }
 0x13c   :  { %659 = vmatpush.msra.mxu2 %v3551_v27  ;;  %637 = vmatpush.msra.mxu0 %v2185_v51  ;;  %v132_v44 = vrot.slane %v131_v11, 4  ;;  %1708 = vpush %v115_v18  ;;  %v240_v18 = vpop.f32.mrf.mxu2 }
 0x13e   :  { %660 = vmatpush.msra.mxu2 %v3552_v7  ;;  %638 = vmatpush.msra.mxu0 %v2197_v53  ;;  %v133_v4 = vmin.f32 %v131_v11, %v132_v44 }
 0x140   :  { %661 = vmatpush.msra.mxu2 %v3553_v37  ;;  %639 = vmatpush.msra.mxu0 %v2204_v54  ;;  %v134_v13 = vrot.slane %v133_v4, 2 }
 0x142   :  { %662 = vmatpush.msra.mxu2 %v2060_v31  ;;  %640 = vmatpush.msra.mxu0 %v2221_v57  ;;  %v289_v2 = vpop.f32.mrf.mxu0 }
 0x143   :  { %1648 = vmatmul.msk.f32.gmra.mxu2 %vm96_vm1, %v370_v63  ;;  %v135_v63 = vmin.f32 %v133_v4, %v134_v13  ;;  %v868_v13 = vmul.f32 %v3543_v15, %v1872_v0 }
 0x144   :  { %663 = vmatpush.msra.mxu2 %v2084_v35  ;;  %786 = vmatpush.msrb.mxu0 %v1968_v16 }
 0x145   :  { %v136_v40 = vrot.slane %v135_v63, 1 }
 0x146   :  { %664 = vmatpush.msra.mxu2 %v2127_v42  ;;  %787 = vmatpush.msrb.mxu0 %v1984_v19 }
 0x147   :  { %v137_v44 = vmin.f32 %v135_v63, %v136_v40 }
 0x148   :  { %665 = vmatpush.msra.mxu2 %v2153_v46  ;;  %788 = vmatpush.msrb.mxu0 %v2008_v23 }
 0x149   :  { %1710 = vpush %v137_v44  ;;  %v313_v44 = vadd.f32 %v2402_v21, %v286_v47  ;;  %v316_v47 = vadd.f32 %v2408_v59, %v289_v2 }
 0x14a   :  { %666 = vmatpush.msra.mxu2 %v2228_v58  ;;  %789 = vmatpush.msrb.mxu0 %v2039_v28  ;;  %v2502_v11 = vpop.f32.mrf.mxu0 }
 0x14b   :  { %1655 = vmatmul.msk.f32.vlgmr.msrb.gmra.mxu2 %vm146_vm0, %v1929_v10  ;;  %3554 = vst [vmem:[#allocation28_spill] sm:$0xff] %v2502_v11  ;;  %v2509_v28 = vmul.f32 %v313_v44, %v313_v44 }
 0x14c   :  { %752 = vmatpush.msrb.mxu2 %v1906_v6  ;;  %790 = vmatpush.msrb.mxu0 %v2065_v32 }
 0x14d   :  { %3556 = vst [vmem:[#allocation8_spill] sm:$0xff] %v2509_v28 }
 0x14e   :  { %753 = vmatpush.msrb.mxu2 %v1922_v9  ;;  %791 = vmatpush.msrb.mxu0 %v2089_v36 }
 0x150   :  { %754 = vmatpush.msrb.mxu2 %v1940_v12  ;;  %792 = vmatpush.msrb.mxu0 %v2132_v43 }
 0x152   :  { %755 = vmatpush.msrb.mxu2 %v1956_v14  ;;  %793 = vmatpush.msrb.mxu0 %v2216_v56 }
 0x153   :  { %1656 = vmatmul.msk.f32.gmra.mxu2 %vm146_vm0, %v2013_v24 }
 0x154   :  { %756 = vmatpush.msrb.mxu2 %v1973_v17 }
 0x156   :  { %757 = vmatpush.msrb.mxu2 %v2001_v22 }
 0x158   :  { %758 = vmatpush.msrb.mxu2 %v2025_v26 }
 0x15a   :  { %759 = vmatpush.msrb.mxu2 %v2053_v30 }
 0x15b   :  { %1657 = vmatmul.msk.f32.gmra.mxu2 %vm146_vm0, %v2106_v39 }
 0x15c   :  { %760 = vmatpush.msrb.mxu2 %v2075_v34 }
 0x15e   :  { %761 = vmatpush.msrb.mxu2 %v2099_v38 }
 0x160   :  { %762 = vmatpush.msrb.mxu2 %v2118_v41 }
 0x162   :  { %763 = vmatpush.msrb.mxu2 %v2146_v45 }
 0x164   :  { %764 = vmatpush.msrb.mxu2 %v2163_v48 }
 0x166   :  { %765 = vmatpush.msrb.mxu2 %v2177_v50 }
 0x168   :  { %766 = vmatpush.msrb.mxu2 %v2190_v52 }
 0x16a   :  { %767 = vmatpush.msrb.mxu2 %v3539_v8 }
 0x19b   :  { %v425_v4 = vpop.f32.mrf.mxu0  ;;  %v477_v63 = vpop.f32.mrf.mxu1 }
 0x1a3   :  { %v480_v15 = vpop.f32.mrf.mxu1 }
 0x1a4   :  { %v529_v40 = vpop.f32.mrf.mxu0 }
 0x1a5   :  { %589 = vmatmul.f32.vlgmr.msrb.gmra.mxu3 %v529_v40  ;;  %641 = vmatmul.f32.vlgmr.msra.gmra.mxu0 %v529_v40 }
 0x1a6   :  { %v399_v56 = vpop.f32.mrf.mxu2  ;;  %v451_v43 = vpop.f32.mrf.mxu3  ;;  %882 = vmatpush.msra.mxu0 %v868_v13 }
 0x1a7   :  { %v2507_v36 = vadd.f32 %v425_v4, %v399_v56  ;;  %v478_v32 = vadd.f32 %v477_v63, %v451_v43  ;;  %v3560_v43 = vld [vmem:[#allocation33_spill] sm:$0xff] }
 0x1a8   :  { %v688_v4 = vmul.f32 %v3560_v43, %v3560_v43  ;;  %v3561_v63 = vld [vmem:[#allocation29_spill] sm:$0xff] }
 0x1a9   :  { %3555 = vst [vmem:[#allocation32_spill] sm:$0xff] %v2507_v36  ;;  %v2511_v11 = vmul.f32 %v478_v32, %v478_v32  ;;  %v2513_v23 = vmul.f32 %v478_v32, %v313_v44  ;;  %v687_v32 = vmul.f32 %v3561_v63, %v3561_v63  ;;  %v2524_v44 = vmul.f32 %v316_v47, %v316_v47  ;;  %v3564_v36 = vld [vmem:[#allocation35_spill] sm:$0xff] }
 0x1aa   :  { %730 = vmatpush.msra.mxu3 %v688_v4 }
 0x1ab   :  { %3557 = vst [vmem:[#allocation9_spill] sm:$0xff] %v2511_v11  ;;  %v2517_v0 = vadd.f32 %v2511_v11, %v2509_v28  ;;  %704 = vmatpush.msrb.mxu1 %v687_v32  ;;  %v684_v11 = vmul.f32 %v3564_v36, %v3564_v36  ;;  %v3565_v28 = vld [vmem:[#allocation30_spill] sm:$0xff]  ;;  %v3566_v32 = vld [vmem:[#allocation31_spill] sm:$0xff] }
 0x1ac   :  { %3558 = vst [vmem:[#allocation10_spill] sm:$0xff] %v2513_v23  ;;  %v532_v21 = vpop.f32.mrf.mxu0 }
 0x1ad   :  { %3559 = vst [vmem:[#allocation11_spill] sm:$0xff] %v2517_v0  ;;  %592 = vmatmul.f32.gmra.mxu3 %v532_v21  ;;  %644 = vmatmul.f32.gmra.mxu0 %v532_v21  ;;  %v3563_v21 = vld [vmem:[#allocation34_spill] sm:$0xff] }
 0x1ae   :  { %v402_v40 = vpop.f32.mrf.mxu2  ;;  %v454_v13 = vpop.f32.mrf.mxu3 }
 0x1af   :  { %v481_v56 = vadd.f32 %v480_v15, %v454_v13  ;;  %v686_v13 = vmul.f32 %v3563_v21, %v3563_v21 }
 0x1b1   :  { %v2526_v23 = vmul.f32 %v481_v56, %v481_v56  ;;  %v2528_v0 = vmul.f32 %v481_v56, %v316_v47  ;;  %v685_v47 = vmul.f32 %v3565_v28, %v3565_v28  ;;  %731 = vmatpush.msra.mxu3 %v686_v13 }
 0x1b3   :  { %3562 = vst [vmem:[#allocation14_spill] sm:$0xff] %v2528_v0  ;;  %v2532_v59 = vadd.f32 %v2526_v23, %v2524_v44  ;;  %705 = vmatpush.msrb.mxu1 %v685_v47  ;;  %732 = vmatpush.msra.mxu3 %v684_v11  ;;  %v2549_v0 = vmul.f32 %v2410_v61, %v2410_v61 }
 0x1b4   :  { %v535_v2 = vpop.f32.mrf.mxu0 }
 0x1b5   :  { %595 = vmatmul.f32.gmra.mxu3 %v535_v2  ;;  %647 = vmatmul.f32.gmra.mxu0 %v535_v2  ;;  %v683_v2 = vmul.f32 %v3566_v32, %v3566_v32 }
 0x1b6   :  { %v405_v15 = vpop.f32.mrf.mxu2  ;;  %838 = vmatpush.msrb.mxu3 %v3551_v27 }
 0x1b7   :  { %706 = vmatpush.msrb.mxu1 %v683_v2 }
 0x1b8   :  { %839 = vmatpush.msrb.mxu3 %v3552_v7 }
 0x1ba   :  { %840 = vmatpush.msrb.mxu3 %v3553_v37  ;;  %v267_v37 = vadd.f32 %v2414_v60, %v240_v18  ;;  %v869_v18 = vmul.f32 %v3544_v62, %v1877_v1 }
 0x1bc   :  { %841 = vmatpush.msrb.mxu3 %v2060_v31 }
 0x1bd   :  { %1667 = vmatmul.msk.f32.vlgmr.msra.gmra.mxu3 %vm146_vm0, %v1929_v10 }
 0x1be   :  { %v428_v56 = vpop.f32.mrf.mxu2  ;;  %842 = vmatpush.msrb.mxu3 %v2084_v35 }
 0x1bf   :  { %v429_v4 = vadd.f32 %v428_v56, %v402_v40 }
 0x1c0   :  { %843 = vmatpush.msrb.mxu3 %v2127_v42 }
 0x1c1   :  { %v2551_v13 = vmul.f32 %v429_v4, %v429_v4  ;;  %v2554_v27 = vmul.f32 %v429_v4, %v2410_v61  ;;  %v2567_v61 = vmul.f32 %v267_v37, %v267_v37 }
 0x1c2   :  { %844 = vmatpush.msrb.mxu3 %v2153_v46 }
 0x1c3   :  { %v2559_v7 = vadd.f32 %v2551_v13, %v2549_v0 }
 0x1c4   :  { %845 = vmatpush.msrb.mxu3 %v2228_v58 }
 0x1c5   :  { %1668 = vmatmul.msk.f32.gmra.mxu3 %vm146_vm0, %v2013_v24 }
 0x1c6   :  { %v431_v11 = vpop.f32.mrf.mxu2  ;;  %931 = vmatpush.msra.mxu3 %v1906_v6 }
 0x1c7   :  { %v432_v40 = vadd.f32 %v431_v11, %v405_v15 }
 0x1c8   :  { %932 = vmatpush.msra.mxu3 %v1922_v9  ;;  %v3567_v9 = vld [vmem:[#allocation21_spill] sm:$0xff] }
 0x1c9   :  { %v2569_v47 = vmul.f32 %v432_v40, %v432_v40  ;;  %v2571_v56 = vmul.f32 %v432_v40, %v267_v37  ;;  %v3577_v40 = vld [vmem:[#allocation8_spill] sm:$0xff] }
 0x1ca   :  { %933 = vmatpush.msra.mxu3 %v1940_v12  ;;  %v3568_v12 = vld [vmem:[#allocation22_spill] sm:$0xff] }
 0x1cb   :  { %v2576_v60 = vadd.f32 %v2569_v47, %v2567_v61 }
 0x1cc   :  { %934 = vmatpush.msra.mxu3 %v1956_v14  ;;  %v3569_v14 = vld [vmem:[#allocation24_spill] sm:$0xff] }
 0x1cd   :  { %1669 = vmatmul.msk.f32.gmra.mxu3 %vm146_vm0, %v2106_v39 }
 0x1ce   :  { %v555_v15 = vpop.f32.mrf.mxu2  ;;  %935 = vmatpush.msra.mxu3 %v1973_v17  ;;  %v3570_v17 = vld [vmem:[#allocation25_spill] sm:$0xff] }
 0x1cf   :  { %1658 = vmatmul.msk.f32.vlgmr.msra.gmra.mxu1 %vm96_vm1, %v555_v15  ;;  %1661 = vmatmul.msk.f32.vlgmr.msra.gmra.mxu2 %vm96_vm1, %v555_v15 }
 0x1d0   :  { %804 = vmatpush.msra.mxu1 %v3546_v3  ;;  %908 = vmatpush.msra.mxu2 %v869_v18 }
 0x1d1   :  { %936 = vmatpush.msra.mxu3 %v2001_v22  ;;  %v3572_v22 = vld [vmem:[#allocation18_spill] sm:$0xff] }
 0x1d2   :  { %805 = vmatpush.msra.mxu1 %v3547_v25  ;;  %v1748_v25 = vld [vmem:[%s3446_s0 + $0x20] sm:$0xff] }
 0x1d3   :  { %937 = vmatpush.msra.mxu3 %v2025_v26  ;;  %v3573_v26 = vld [vmem:[#allocation19_spill] sm:$0xff] }
 0x1d4   :  { %806 = vmatpush.msra.mxu1 %v3548_v5  ;;  %v866_v5 = vmul.f32 %v1748_v25, %v3561_v63 }
 0x1d5   :  { %938 = vmatpush.msra.mxu3 %v2053_v30  ;;  %v3574_v30 = vld [vmem:[#allocation20_spill] sm:$0xff] }
 0x1d6   :  { %v558_v1 = vpop.f32.mrf.mxu2  ;;  %807 = vmatpush.msra.mxu1 %v3549_v55  ;;  %v1749_v55 = vld [vmem:[%s3446_s0 + $0x18] sm:$0xff]  ;;  %883 = vmatpush.msra.mxu0 %v866_v5 }
 0x1d7   :  { %1659 = vmatmul.msk.f32.gmra.mxu1 %vm96_vm1, %v558_v1  ;;  %1662 = vmatmul.msk.f32.gmra.mxu2 %vm96_vm1, %v558_v1  ;;  %v1751_v1 = vld [vmem:[%s3446_s0 + $0x8] sm:$0xff]  ;;  %v1760_v5 = vld [vmem:[%s3449_s3 + $0x178] sm:$0xff] }
 0x1d8   :  { %808 = vmatpush.msra.mxu1 %v3550_v20  ;;  %939 = vmatpush.msra.mxu3 %v2075_v34  ;;  %v3575_v34 = vld [vmem:[#allocation23_spill] sm:$0xff]  ;;  %v865_v20 = vmul.f32 %v1749_v55, %v3563_v21  ;;  %v1750_v21 = vld [vmem:[%s3446_s0 + $0x10] sm:$0xff]  ;;  %v1761_v55 = vld [vmem:[%s3449_s3 + $0x168] sm:$0xff] }
 0x1d9   :  { %v864_v15 = vmul.f32 %v1750_v21, %v3565_v28 }
 0x1da   :  { %809 = vmatpush.msra.mxu1 %v2048_v29  ;;  %940 = vmatpush.msra.mxu3 %v2099_v38  ;;  %v3576_v38 = vld [vmem:[#allocation27_spill] sm:$0xff] }
 0x1db   :  { %884 = vmatpush.msra.mxu0 %v864_v15  ;;  %v3581_v15 = vld [vmem:[#allocation32_spill] sm:$0xff] }
 0x1dc   :  { %810 = vmatpush.msra.mxu1 %v2070_v33  ;;  %941 = vmatpush.msra.mxu3 %v2118_v41 }
 0x1de   :  { %v561_v6 = vpop.f32.mrf.mxu2  ;;  %811 = vmatpush.msra.mxu1 %v3567_v9  ;;  %942 = vmatpush.msra.mxu3 %v2146_v45 }
 0x1df   :  { %1660 = vmatmul.msk.f32.gmra.mxu1 %vm96_vm1, %v561_v6  ;;  %1663 = vmatmul.msk.f32.gmra.mxu2 %vm96_vm1, %v561_v6  ;;  %v863_v6 = vmul.f32 %v1751_v1, %v3564_v36  ;;  %v2762_v1 = vmul.f32 %v3581_v15, %v3581_v15 }
 0x1e0   :  { %812 = vmatpush.msra.mxu1 %v3568_v12  ;;  %943 = vmatpush.msra.mxu3 %v2163_v48  ;;  %v2638_v48 = vpop.f32.mrf.mxu1 }
 0x1e2   :  { %813 = vmatpush.msra.mxu1 %v3569_v14  ;;  %944 = vmatpush.msra.mxu3 %v2177_v50  ;;  %v1747_v50 = vld [vmem:[%s3446_s0 + $0x28] sm:$0xff] }
 0x1e4   :  { %814 = vmatpush.msra.mxu1 %v3570_v17  ;;  %945 = vmatpush.msra.mxu3 %v2190_v52  ;;  %v867_v52 = vmul.f32 %v1747_v50, %v3560_v43 }
 0x1e6   :  { %815 = vmatpush.msra.mxu1 %v2172_v49  ;;  %946 = vmatpush.msra.mxu3 %v3539_v8 }
 0x1e7   :  { %1664 = vmatmul.msk.f32.vlgmr.msrb.gmra.mxu1 %vm146_vm0, %v1929_v10  ;;  %v3571_v10 = vld [vmem:[#allocation15_spill] sm:$0xff]  ;;  %909 = vmatpush.msra.mxu2 %v867_v52 }
 0x1e8   :  { %816 = vmatpush.msra.mxu1 %v2185_v51  ;;  %v1756_v52 = vld [vmem:[%s3449_s3 + $0xd8] sm:$0xff] }
 0x1e9   :  { %910 = vmatpush.msra.mxu2 %v865_v20  ;;  %v1762_v20 = vld [vmem:[%s3449_s3 + $0x158] sm:$0xff] }
 0x1ea   :  { %817 = vmatpush.msra.mxu1 %v2197_v53 }
 0x1eb   :  { %911 = vmatpush.msra.mxu2 %v863_v6 }
 0x1ec   :  { %818 = vmatpush.msra.mxu1 %v2204_v54 }
 0x1ee   :  { %819 = vmatpush.msra.mxu1 %v2221_v57 }
 0x1ef   :  { %1665 = vmatmul.msk.f32.gmra.mxu1 %vm146_vm0, %v2013_v24  ;;  %v2634_v24 = vpop.f32.mrf.mxu3 }
 0x1f0   :  { %965 = vmatpush.msrb.mxu1 %v1968_v16 }
 0x1f2   :  { %966 = vmatpush.msrb.mxu1 %v1984_v19 }
 0x1f4   :  { %967 = vmatpush.msrb.mxu1 %v3571_v10  ;;  %v1752_v10 = vld [vmem:[%s3446_s0] sm:$0xff] }
 0x1f6   :  { %968 = vmatpush.msrb.mxu1 %v3572_v22  ;;  %v862_v22 = vmul.f32 %v1752_v10, %v3566_v32  ;;  %v1754_v32 = vld [vmem:[%s3449_s3 + $0xf8] sm:$0xff] }
 0x1f7   :  { %1666 = vmatmul.msk.f32.gmra.mxu1 %vm146_vm0, %v2106_v39 }
 0x1f8   :  { %969 = vmatpush.msrb.mxu1 %v3573_v26  ;;  %885 = vmatpush.msra.mxu0 %v862_v22 }
 0x1fa   :  { %970 = vmatpush.msrb.mxu1 %v3574_v30 }
 0x1fc   :  { %971 = vmatpush.msrb.mxu1 %v3575_v34  ;;  %v1753_v34 = vld [vmem:[%s3448_s2] sm:$0xff] }
 0x1fe   :  { %972 = vmatpush.msrb.mxu1 %v3576_v38 }
 0x222   :  { %v642_v43 = vpop.f32.mrf.mxu0 }
 0x228   :  { %v590_v16 = vpop.f32.mrf.mxu3 }
 0x22a   :  { %v645_v30 = vpop.f32.mrf.mxu0 }
 0x230   :  { %v593_v41 = vpop.f32.mrf.mxu3 }
 0x238   :  { %v596_v19 = vpop.f32.mrf.mxu3 }
 0x240   :  { %v734_v45 = vpop.f32.mrf.mxu3 }
 0x241   :  { %1673 = vmatmul.msk.f32.vlgmr.msrb.gmra.mxu3 %vm96_vm1, %v734_v45  ;;  %1670 = vmatmul.msk.f32.vlgmr.msrb.gmra.mxu0 %vm96_vm1, %v734_v45  ;;  %v1755_v45 = vld [vmem:[%s3449_s3 + $0xe8] sm:$0xff] }
 0x242   :  { %983 = vmatpush.msrb.mxu0 %v1754_v32 }
 0x244   :  { %984 = vmatpush.msrb.mxu0 %v1755_v45  ;;  %v1345_v45 = vld [vmem:[%s3446_s0 + $0x30] sm:$0xff] }
 0x246   :  { %985 = vmatpush.msrb.mxu0 %v1756_v52  ;;  %v1344_v52 = vld [vmem:[%s3446_s0 + $0x28] sm:$0xff] }
 0x248   :  { %v737_v8 = vpop.f32.mrf.mxu3 }
 0x249   :  { %1674 = vmatmul.msk.f32.gmra.mxu3 %vm96_vm1, %v737_v8  ;;  %1671 = vmatmul.msk.f32.gmra.mxu0 %vm96_vm1, %v737_v8  ;;  %v1757_v8 = vld [vmem:[%s3449_s3 + $0xc8] sm:$0xff] }
 0x24a   :  { %986 = vmatpush.msrb.mxu0 %v1757_v8 }
 0x24c   :  { %v616_v62 = vpop.f32.mrf.mxu1 }
 0x24d   :  { %v2646_v3 = vadd.f32 %v616_v62, %v590_v16  ;;  %v1759_v62 = vld [vmem:[%s3449_s3 + $0xb8] sm:$0xff] }
 0x24e   :  { %987 = vmatpush.msrb.mxu0 %v1759_v62  ;;  %v1355_v62 = vld [vmem:[%s3450_s4] sm:$0xff] }
 0x250   :  { %v740_v4 = vpop.f32.mrf.mxu3  ;;  %988 = vmatpush.msrb.mxu0 %v2048_v29 }
 0x251   :  { %1675 = vmatmul.msk.f32.gmra.mxu3 %vm96_vm1, %v740_v4  ;;  %1672 = vmatmul.msk.f32.gmra.mxu0 %vm96_vm1, %v740_v4 }
 0x252   :  { %v668_v2 = vpop.f32.mrf.mxu2  ;;  %989 = vmatpush.msrb.mxu0 %v2070_v33  ;;  %v2742_v33 = vpop.f32.mrf.mxu0 }
 0x253   :  { %v2658_v37 = vadd.f32 %v668_v2, %v642_v43 }
 0x254   :  { %v619_v11 = vpop.f32.mrf.mxu1  ;;  %990 = vmatpush.msrb.mxu0 %v3567_v9  ;;  %v3579_v9 = vld [vmem:[#allocation36_spill] sm:$0xff] }
 0x255   :  { %v678_v63 = vsub.f32 %v2658_v37, %v3577_v40  ;;  %v2662_v18 = vadd.f32 %v619_v11, %v593_v41 }
 0x256   :  { %991 = vmatpush.msrb.mxu0 %v3568_v12 }
 0x257   :  { %v679_v26 = vsub.f32 %v2662_v18, %v2549_v0  ;;  %v1354_v18 = vld [vmem:[%s3447_s1 + $0x38] sm:$0xff] }
 0x258   :  { %992 = vmatpush.msrb.mxu0 %v3569_v14  ;;  %v3580_v14 = vld [vmem:[#allocation9_spill] sm:$0xff] }
 0x259   :  { %1676 = vmatmul.msk.f32.vlgmr.msra.gmra.mxu0 %vm146_vm0, %v1753_v34 }
 0x25a   :  { %v671_v28 = vpop.f32.mrf.mxu2  ;;  %993 = vmatpush.msrb.mxu0 %v3570_v17 }
 0x25b   :  { %v2682_v36 = vadd.f32 %v671_v28, %v645_v30 }
 0x25c   :  { %v622_v38 = vpop.f32.mrf.mxu1  ;;  %994 = vmatpush.msrb.mxu0 %v2172_v49 }
 0x25d   :  { %v680_v16 = vsub.f32 %v2682_v36, %v2524_v44  ;;  %v2689_v41 = vadd.f32 %v622_v38, %v596_v19  ;;  %v1758_v19 = vld [vmem:[%s3448_s2 + $0x8] sm:$0xff]  ;;  %v1342_v36 = vld [vmem:[%s3446_s0 + $0x18] sm:$0xff] }
 0x25e   :  { %995 = vmatpush.msrb.mxu0 %v2185_v51 }
 0x25f   :  { %v681_v50 = vsub.f32 %v2689_v41, %v2567_v61  ;;  %v1351_v61 = vld [vmem:[%s3447_s1 + $0x20] sm:$0xff]  ;;  %v1348_v41 = vld [vmem:[%s3447_s1 + $0x8] sm:$0xff] }
 0x260   :  { %996 = vmatpush.msrb.mxu0 %v2197_v53 }
 0x261   :  { %1677 = vmatmul.msk.f32.gmra.mxu0 %vm146_vm0, %v1758_v19 }
 0x262   :  { %997 = vmatpush.msrb.mxu0 %v2204_v54  ;;  %v2744_v51 = vpop.f32.mrf.mxu2 }
 0x264   :  { %v708_v25 = vpop.f32.mrf.mxu1  ;;  %998 = vmatpush.msrb.mxu0 %v2221_v57 }
 0x265   :  { %768 = vmatmul.f32.vlgmr.msrb.gmra.mxu2 %v708_v25  ;;  %820 = vmatmul.f32.vlgmr.msra.gmra.mxu1 %v708_v25 }
 0x266   :  { %1017 = vmatpush.msrb.mxu2 %v1760_v5  ;;  %1399 = vmatpush.msra.mxu1 %v1345_v45 }
 0x268   :  { %1018 = vmatpush.msrb.mxu2 %v1761_v55 }
 0x269   :  { %1678 = vmatmul.msk.f32.gmra.mxu0 %vm146_vm0, %v2106_v39 }
 0x26a   :  { %1019 = vmatpush.msrb.mxu2 %v1762_v20  ;;  %v1353_v20 = vld [vmem:[%s3447_s1 + $0x30] sm:$0xff] }
 0x26c   :  { %v711_v43 = vpop.f32.mrf.mxu1  ;;  %1020 = vmatpush.msrb.mxu2 %v2060_v31  ;;  %v1763_v31 = vld [vmem:[%s3448_s2 + $0x10] sm:$0x3f] }
 0x26d   :  { %771 = vmatmul.f32.gmra.mxu2 %v711_v43  ;;  %823 = vmatmul.f32.gmra.mxu1 %v711_v43  ;;  %v1356_v43 = vld [vmem:[%s3450_s4 + $0x8] sm:$0xff] }
 0x26e   :  { %1021 = vmatpush.msrb.mxu2 %v2084_v35 }
 0x270   :  { %1022 = vmatpush.msrb.mxu2 %v2127_v42 }
 0x272   :  { %1023 = vmatpush.msrb.mxu2 %v2153_v46 }
 0x274   :  { %v714_v29 = vpop.f32.mrf.mxu1  ;;  %1024 = vmatpush.msrb.mxu2 %v2228_v58  ;;  %v3578_v58 = vld [vmem:[#allocation26_spill] sm:$0xff] }
 0x275   :  { %774 = vmatmul.f32.gmra.mxu2 %v714_v29  ;;  %826 = vmatmul.f32.gmra.mxu1 %v714_v29  ;;  %v2748_v12 = vadd.f32 %v3579_v9, %v3578_v58  ;;  %v3583_v58 = vld [vmem:[#allocation28_spill] sm:$0xff]  ;;  %v3584_v9 = vld [vmem:[#allocation37_spill] sm:$0xff] }
 0x277   :  { %v2758_v21 = vmul.f32 %v2748_v12, %v2748_v12 }
 0x279   :  { %v677_v22 = vsub.f32 %v2646_v3, %v2758_v21  ;;  %v1346_v3 = vld [vmem:[%s3446_s0 + $0x38] sm:$0xff] }
 0x27a   :  { %1422 = vmatpush.msrb.mxu3 %v1346_v3 }
 0x27c   :  { %1423 = vmatpush.msrb.mxu3 %v1344_v52 }
 0x27d   :  { %1679 = vmatmul.msk.f32.vlgmr.msra.gmra.mxu2 %vm146_vm0, %v1753_v34 }
 0x27e   :  { %1424 = vmatpush.msrb.mxu3 %v1342_v36 }
 0x285   :  { %1680 = vmatmul.msk.f32.gmra.mxu2 %vm146_vm0, %v1758_v19  ;;  %v1340_v19 = vld [vmem:[%s3446_s0 + $0x8] sm:$0xff] }
 0x286   :  { %1425 = vmatpush.msrb.mxu3 %v1340_v19 }
 0x28d   :  { %1681 = vmatmul.msk.f32.gmra.mxu2 %vm146_vm0, %v1763_v31  ;;  %v1347_v31 = vld [vmem:[%s3447_s1] sm:$0xff] }
 0x2be   :  { %v795_v35 = vpop.f32.mrf.mxu0 }
 0x2c4   :  { %v847_v49 = vpop.f32.mrf.mxu3 }
 0x2c6   :  { %v798_v39 = vpop.f32.mrf.mxu0 }
 0x2cc   :  { %v850_v11 = vpop.f32.mrf.mxu3 }
 0x2ce   :  { %v801_v42 = vpop.f32.mrf.mxu0 }
 0x2d6   :  { %v887_v46 = vpop.f32.mrf.mxu0 }
 0x2d7   :  { %947 = vmatmul.f32.vlgmr.msra.gmra.mxu3 %v887_v46  ;;  %999 = vmatmul.f32.vlgmr.msrb.gmra.mxu0 %v887_v46 }
 0x2d8   :  { %1523 = vmatpush.msra.mxu3 %v1354_v18 }
 0x2de   :  { %v890_v57 = vpop.f32.mrf.mxu0 }
 0x2df   :  { %950 = vmatmul.f32.gmra.mxu3 %v890_v57  ;;  %1002 = vmatmul.f32.gmra.mxu0 %v890_v57  ;;  %v484_v57 = vadd.f32 %v2638_v48, %v2634_v24 }
 0x2e2   :  { %v821_v53 = vpop.f32.mrf.mxu1 }
 0x2e3   :  { %v848_v54 = vadd.f32 %v847_v49, %v821_v53  ;;  %v3582_v53 = vld [vmem:[#allocation11_spill] sm:$0xff] }
 0x2e5   :  { %v857_v17 = vsub.f32 %v848_v54, %v3580_v14  ;;  %v319_v14 = vadd.f32 %v3584_v9, %v3583_v58 }
 0x2e6   :  { %v893_v40 = vpop.f32.mrf.mxu0 }
 0x2e7   :  { %v2754_v4 = vadd.f32 %v857_v17, %v678_v63  ;;  %953 = vmatmul.f32.gmra.mxu3 %v893_v40  ;;  %1005 = vmatmul.f32.gmra.mxu0 %v893_v40 }
 0x2e8   :  { %v769_v2 = vpop.f32.mrf.mxu2 }
 0x2e9   :  { %v796_v6 = vadd.f32 %v795_v35, %v769_v2  ;;  %v2876_v2 = vmul.f32 %v484_v57, %v484_v57 }
 0x2ea   :  { %v824_v10 = vpop.f32.mrf.mxu1 }
 0x2eb   :  { %v856_v30 = vsub.f32 %v796_v6, %v2762_v1  ;;  %v851_v37 = vadd.f32 %v850_v11, %v824_v10  ;;  %v2878_v11 = vmul.f32 %v319_v14, %v319_v14  ;;  %v2895_v6 = vmul.f32 %v3581_v15, %v2748_v12  ;;  %v3585_v15 = vld [vmem:[#allocation10_spill] sm:$0xff] }
 0x2ed   :  { %v2767_v63 = vadd.f32 %v856_v30, %v677_v22  ;;  %v859_v28 = vsub.f32 %v851_v37, %v2526_v23  ;;  %v1343_v23 = vld [vmem:[%s3446_s0 + $0x20] sm:$0xff]  ;;  %v1161_v24 = vadd.f32 %v2876_v2, %v2878_v11  ;;  %v1253_v12 = vmul.f32 2.0, %v2895_v6 }
 0x2ee   :  { %1400 = vmatpush.msra.mxu1 %v1343_v23 }
 0x2ef   :  { %v2773_v34 = vadd.f32 %v859_v28, %v680_v16  ;;  %v1341_v16 = vld [vmem:[%s3446_s0 + $0x10] sm:$0xff]  ;;  %1690 = vmatmul.msk.f32.vlgmr.msrb.gmra.mxu3 %vm146_vm0, %v1355_v62  ;;  %v1254_v28 = vmul.f32 2.0, %v3585_v15 }
 0x2f0   :  { %v772_v32 = vpop.f32.mrf.mxu2  ;;  %1401 = vmatpush.msra.mxu1 %v1341_v16  ;;  %v3586_v16 = vld [vmem:[#allocation14_spill] sm:$0xff] }
 0x2f1   :  { %v799_v38 = vadd.f32 %v798_v39, %v772_v32  ;;  %v1256_v19 = vmul.f32 2.0, %v3586_v16 }
 0x2f3   :  { %v858_v44 = vsub.f32 %v799_v38, %v2551_v13  ;;  %v1339_v13 = vld [vmem:[%s3446_s0] sm:$0xff] }
 0x2f4   :  { %1402 = vmatpush.msra.mxu1 %v1339_v13  ;;  %v853_v13 = vpop.f32.mrf.mxu3 }
 0x2f5   :  { %v2797_v8 = vadd.f32 %v858_v44, %v679_v26  ;;  %v1352_v26 = vld [vmem:[%s3447_s1 + $0x28] sm:$0xff] }
 0x2f6   :  { %1524 = vmatpush.msra.mxu3 %v1352_v26 }
 0x2f7   :  { %1691 = vmatmul.msk.f32.gmra.mxu3 %vm146_vm0, %v1356_v43 }
 0x2f8   :  { %v775_v25 = vpop.f32.mrf.mxu2 }
 0x2f9   :  { %v802_v0 = vadd.f32 %v801_v42, %v775_v25  ;;  %v1156_v42 = vadd.f32 %v2762_v1, %v2758_v21 }
 0x2fb   :  { %v860_v5 = vsub.f32 %v802_v0, %v2569_v47  ;;  %v1350_v47 = vld [vmem:[%s3447_s1 + $0x18] sm:$0xff] }
 0x2fc   :  { %1525 = vmatpush.msra.mxu3 %v1350_v47  ;;  %v827_v47 = vpop.f32.mrf.mxu1 }
 0x2fd   :  { %v2819_v55 = vadd.f32 %v860_v5, %v681_v50  ;;  %v1349_v50 = vld [vmem:[%s3447_s1 + $0x10] sm:$0xff]  ;;  %s1709_s1 = spop %1708 }
 0x2fe   :  { %1526 = vmatpush.msra.mxu3 %v1348_v41  ;;  %s1711_s18 = spop %1710  ;;  %p117_p0 = scmp.gt.f32.partialorder %s1709_s1, 128.0 }
 0x2ff   :  { %1696 = vmatmul.msk.f32.vlgmr.msra.gmra.mxu3 %vm146_vm0, %v1355_v62  ;;  %p139_p1 = scmp.lt.f32.partialorder %s1711_s18, -0.5 }
 0x300   :  { %v913_v29 = vpop.f32.mrf.mxu2  ;;  %s118_s19 = scalar_select %p117_p0, 255.0, 1.0 }
 0x301   :  { %1682 = vmatmul.msk.f32.vlgmr.msrb.gmra.mxu1 %vm96_vm1, %v913_v29  ;;  %1685 = vmatmul.msk.f32.vlgmr.msrb.gmra.mxu2 %vm96_vm1, %v913_v29  ;;  %s140_s20 = scalar_select %p139_p1, -1.0, 0.0  ;;  %v2955_v29 = vmul.f32 %v484_v57, %v319_v14  ;;  %v854_v14 = vadd.f32 %v853_v13, %v827_v47 }
 0x302   :  { %1500 = vmatpush.msrb.mxu1 %v1353_v20 }
 0x303   :  { %s141_s21 = ssub.f32 %s118_s19, %s140_s20 }
 0x304   :  { %1501 = vmatpush.msrb.mxu1 %v1351_v61 }
 0x305   :  { %s142_s22 = smul.f32 0.01, %s141_s21 }
 0x306   :  { %1502 = vmatpush.msrb.mxu1 %v1349_v50  ;;  %s144_s24 = smul.f32 0.03, %s141_s21 }
 0x307   :  { %1697 = vmatmul.msk.f32.gmra.mxu3 %vm146_vm0, %v1356_v43  ;;  %s143_s23 = smul.f32 %s142_s22, %s142_s22 }
 0x308   :  { %v916_v35 = vpop.f32.mrf.mxu2  ;;  %1503 = vmatpush.msrb.mxu1 %v1347_v31  ;;  %s145_s25 = smul.f32 %s144_s24, %s144_s24 }
 0x309   :  { %1683 = vmatmul.msk.f32.gmra.mxu1 %vm96_vm1, %v916_v35  ;;  %1686 = vmatmul.msk.f32.gmra.mxu2 %vm96_vm1, %v916_v35  ;;  %v2857_v46 = vstv %s143_s23 }
 0x30a   :  { %v2860_v49 = vadd.f32 %v2857_v46, %v1156_v42  ;;  %v2864_v54 = vadd.f32 %v2857_v46, %v3582_v53  ;;  %v2874_v17 = vadd.f32 %v2857_v46, %v2532_v59  ;;  %v2887_v48 = vadd.f32 %v2857_v46, %v2559_v7 }
 0x30b   :  { %v2898_v10 = vadd.f32 %v2857_v46, %v1161_v24  ;;  %v2905_v7 = vadd.f32 %v2857_v46, %v2576_v60  ;;  %v2909_v40 = vstv %s145_s25  ;;  %v2930_v44 = vadd.f32 %v1253_v12, %v2857_v46 }
 0x30c   :  { %1721 = vrcp.f32 %v2860_v49  ;;  %v2916_v32 = vadd.f32 %v2767_v63, %v2909_v40  ;;  %v2925_v45 = vadd.f32 %v2754_v4, %v2909_v40  ;;  %v1178_v23 = vand.u32 2147483647, %v2860_v49 }
 0x30d   :  { %1723 = vrcp.f32 %v2864_v54  ;;  %v2933_v63 = vadd.f32 %v1254_v28, %v2857_v46  ;;  %v1180_v36 = vand.u32 2147483648, %v2860_v49  ;;  %vm1174_vm2 = vweird.f32 %v2860_v49 }
 0x30e   :  { %1725 = vrcp.f32 %v2874_v17  ;;  %v1194_v4 = vand.u32 2147483648, %v2864_v54  ;;  %v1192_v0 = vand.u32 2147483647, %v2864_v54  ;;  %vm2949_vm4 = vcmp.eq.f32.partialorder %v1178_v23, 8.507059e+37 }
 0x30f   :  { %1727 = vrcp.f32 %v2887_v48  ;;  %v1181_v61 = vor.u32 1.1754944e-38, %v1180_v36  ;;  %vm1188_vm5 = vweird.f32 %v2864_v54  ;;  %v1220_v41 = vand.u32 2147483647, %v2874_v17 }
 0x310   :  { %v919_v39 = vpop.f32.mrf.mxu2  ;;  %1729 = vrcp.f32 %v2898_v10  ;;  %v2960_v50 = vadd.f32 %v1256_v19, %v2857_v46  ;;  %v2964_v31 = vadd.f32 %v2797_v8, %v2909_v40  ;;  %v1195_v35 = vor.u32 1.1754944e-38, %v1194_v4 }
 0x311   :  { %1684 = vmatmul.msk.f32.gmra.mxu1 %vm96_vm1, %v919_v39  ;;  %1687 = vmatmul.msk.f32.gmra.mxu2 %vm96_vm1, %v919_v39  ;;  %1731 = vrcp.f32 %v2905_v7  ;;  %v1222_v39 = vand.u32 2147483648, %v2874_v17  ;;  %vm2975_vm8 = vcmp.eq.f32.partialorder %v1192_v0, 8.507059e+37  ;;  %vm1216_vm9 = vweird.f32 %v2874_v17 }
 0x312   :  { %v2880_v21 = vpop.eup %1721  ;;  %1733 = vrcp.f32 %v2916_v32  ;;  %vm2997_vm10 = vcmp.eq.f32.partialorder %v1220_v41, 8.507059e+37  ;;  %v675_v28 = vadd.f32 %v2744_v51, %v2742_v33  ;;  %v861_v36 = vsub.f32 %v854_v14, %v2876_v2 }
 0x313   :  { %v2889_v1 = vpop.eup %1723  ;;  %v1170_v59 = vmul.f32 %v2880_v21, %v2860_v49  ;;  %1735 = vrcp.f32 %v2925_v45  ;;  %vm1175_vm3 = vweird.f32 %v2880_v21  ;;  %v1255_v0 = vmul.f32 2.0, %v2554_v27 }
 0x314   :  { %v1184_v22 = vmul.f32 %v2889_v1, %v2864_v54  ;;  %v2907_v30 = vpop.eup %1725  ;;  %vm2969_vm6 = vmor %vm1174_vm2, %vm1175_vm3  ;;  %vm1189_vm7 = vweird.f32 %v2889_v1  ;;  %1737 = vrcp.f32 %v2964_v31  ;;  %v3032_v54 = vadd.f32 %v2819_v55, %v2909_v40 }
 0x315   :  { %v1171_v37 = vsub.f32 1.0, %v1170_v59  ;;  %v1212_v60 = vmul.f32 %v2907_v30, %v2874_v17  ;;  %v2921_v3 = vpop.eup %1727  ;;  %vm1217_vm11 = vweird.f32 %v2907_v30  ;;  %vm3017_vm12 = vmor %vm1188_vm5, %vm1189_vm7  ;;  %v682_v2 = vsub.f32 %v675_v28, %v2878_v11 }
 0x316   :  { %v1185_v38 = vsub.f32 1.0, %v1184_v22  ;;  %v2944_v26 = vpop.eup %1729  ;;  %v2990_v22 = vmul.f32 2.0, %v2955_v29  ;;  %vm3043_vm13 = vmor %vm1216_vm9, %vm1217_vm11  ;;  %vm1203_vm14 = vweird.f32 %v2921_v3  ;;  %vm1202_vm15 = vweird.f32 %v2887_v48 }
 0x317   :  { %v1172_v52 = vmul.f32 %v2880_v21, %v1171_v37  ;;  %v1213_v18 = vsub.f32 1.0, %v1212_v60  ;;  %v1240_v59 = vmul.f32 %v2944_v26, %v2898_v10  ;;  %v2994_v37 = vadd.f32 %v2773_v34, %v2909_v40 }
 0x318   :  { %v1186_v25 = vmul.f32 %v2889_v1, %v1185_v38  ;;  %v1223_v60 = vor.u32 1.1754944e-38, %v1222_v39  ;;  %v1250_v53 = vand.u32 2147483648, %v2898_v10  ;;  %vm1071_vm7 = vweird.f32 %v2916_v32 }
 0x319   :  { %1688 = vmatmul.msk.f32.vlgmr.msra.gmra.mxu1 %vm146_vm0, %v1355_v62  ;;  %v1173_v5 = vadd.f32 %v2880_v21, %v1172_v52  ;;  %v1214_v8 = vmul.f32 %v2907_v30, %v1213_v18  ;;  %v1241_v4 = vsub.f32 1.0, %v1240_v59  ;;  %1739 = vrcp.f32 %v2994_v37 }
 0x31a   :  { %v1187_v57 = vadd.f32 %v2889_v1, %v1186_v25  ;;  %v1248_v25 = vand.u32 2147483647, %v2898_v10  ;;  %v1206_v18 = vand.u32 2147483647, %v2887_v48  ;;  %1741 = vrcp.f32 %v3032_v54 }
 0x31b   :  { %v1177_v49 = vsel %vm2969_vm6, %v2880_v21, %v1173_v5  ;;  %v1215_v51 = vadd.f32 %v2907_v30, %v1214_v8  ;;  %v1242_v39 = vmul.f32 %v2944_v26, %v1241_v4 }
 0x31c   :  { %v3011_v52 = vsel %vm2949_vm4, %v1181_v61, %v1177_v49  ;;  %v1191_v19 = vsel %vm3017_vm12, %v2889_v1, %v1187_v57  ;;  %v1208_v1 = vand.u32 2147483648, %v2887_v48  ;;  %v1059_v61 = vadd.f32 %v861_v36, %v682_v2 }
 0x31d   :  { %v1219_v11 = vsel %vm3043_vm13, %v2907_v30, %v1215_v51  ;;  %v3056_v41 = vsel %vm2975_vm8, %v1195_v35, %v1191_v19  ;;  %v3064_v30 = vadd.f32 %v1255_v0, %v2857_v46  ;;  %vm3070_vm2 = vcmp.eq.f32.partialorder %v1206_v18, 8.507059e+37 }
 0x31e   :  { %v1209_v58 = vor.u32 1.1754944e-38, %v1208_v1  ;;  %v3076_v8 = vsel %vm2997_vm10, %v1223_v60, %v1219_v11  ;;  %v3090_v28 = vadd.f32 %v1059_v61, %v2909_v40  ;;  %vm1230_vm4 = vweird.f32 %v2905_v7 }
 0x31f   :  { %v1089_v19 = vand.u32 2147483647, %v2925_v45  ;;  %vm1085_vm10 = vweird.f32 %v2925_v45 }
 0x320   :  { %1743 = vrcp.f32 %v3090_v28 }
 0x321   :  { %1689 = vmatmul.msk.f32.gmra.mxu1 %vm146_vm0, %v1356_v43  ;;  %vm3139_vm11 = vcmp.eq.f32.partialorder %v1089_v19, 8.507059e+37 }
 0x329   :  { %1694 = vmatmul.msk.f32.vlgmr.msrb.gmra.mxu1 %vm146_vm0, %v1355_v62  ;;  %v1198_v62 = vmul.f32 %v2921_v3, %v2887_v48  ;;  %v3081_v48 = vmul.f32 2.0, %v2571_v56 }
 0x32b   :  { %v1199_v42 = vsub.f32 1.0, %v1198_v62 }
 0x32d   :  { %v1200_v33 = vmul.f32 %v2921_v3, %v1199_v42 }
 0x32f   :  { %v1201_v20 = vadd.f32 %v2921_v3, %v1200_v33  ;;  %v1234_v33 = vand.u32 2147483647, %v2905_v7 }
 0x331   :  { %1695 = vmatmul.msk.f32.gmra.mxu1 %vm146_vm0, %v1356_v43  ;;  %v2953_v43 = vpop.eup %1731  ;;  %vm3066_vm0 = vmor %vm1202_vm15, %vm1203_vm14  ;;  %vm1113_vm14 = vweird.f32 %v2994_v37 }
 0x332   :  { %v2980_v9 = vpop.eup %1733  ;;  %v1226_v24 = vmul.f32 %v2953_v43, %v2905_v7  ;;  %v1205_v59 = vsel %vm3066_vm0, %v2921_v3, %v1201_v20  ;;  %vm1231_vm3 = vweird.f32 %v2953_v43  ;;  %v1236_v3 = vand.u32 2147483648, %v2905_v7  ;;  %v1361_v7 = vld [vmem:[%s3451_s5 + $0x20] sm:$0xff] }
 0x333   :  { %v3001_v21 = vpop.eup %1735  ;;  %v1067_v34 = vmul.f32 %v2980_v9, %v2916_v32  ;;  %v3109_v4 = vsel %vm3070_vm2, %v1209_v58, %v1205_v59  ;;  %vm1072_vm5 = vweird.f32 %v2980_v9  ;;  %vm3117_vm6 = vmor %vm1230_vm4, %vm1231_vm3  ;;  %v1077_v20 = vand.u32 2147483648, %v2916_v32 }
 0x334   :  { %v1227_v13 = vsub.f32 1.0, %v1226_v24  ;;  %v1081_v62 = vmul.f32 %v3001_v21, %v2925_v45  ;;  %v3052_v47 = vpop.eup %1737  ;;  %vm1086_vm8 = vweird.f32 %v3001_v21  ;;  %vm3134_vm9 = vmor %vm1071_vm7, %vm1072_vm5  ;;  %vm1099_vm0 = vweird.f32 %v2964_v31 }
 0x335   :  { %v1068_v55 = vsub.f32 1.0, %v1067_v34  ;;  %v3078_v14 = vpop.eup %1739  ;;  %v1095_v49 = vmul.f32 %v3052_v47, %v2964_v31  ;;  %v3097_v34 = vadd.f32 %v2944_v26, %v1242_v39  ;;  %vm3147_vm13 = vmor %vm1085_vm10, %vm1086_vm8  ;;  %vm1100_vm15 = vweird.f32 %v3052_v47 }
 0x336   :  { %v1228_v17 = vmul.f32 %v2953_v43, %v1227_v13  ;;  %v1082_v42 = vsub.f32 1.0, %v1081_v62  ;;  %v1109_v51 = vmul.f32 %v3078_v14, %v2994_v37  ;;  %v1091_v13 = vand.u32 2147483648, %v2925_v45  ;;  %v3111_v62 = vpop.eup %1741  ;;  %vm3205_vm3 = vmor %vm1099_vm0, %vm1100_vm15 }
 0x337   :  { %v1069_v24 = vmul.f32 %v2980_v9, %v1068_v55  ;;  %v1096_v18 = vsub.f32 1.0, %v1095_v49  ;;  %v1075_v55 = vand.u32 2147483647, %v2916_v32  ;;  %v1078_v49 = vor.u32 1.1754944e-38, %v1077_v20  ;;  %v3158_v19 = vpop.eup %1743 }
 0x338   :  { %v3093_v60 = vadd.f32 %v2953_v43, %v1228_v17  ;;  %v1083_v23 = vmul.f32 %v3001_v21, %v1082_v42  ;;  %v1123_v17 = vmul.f32 %v3111_v62, %v3032_v54  ;;  %v1092_v35 = vor.u32 1.1754944e-38, %v1091_v13 }
 0x339   :  { %v1070_v2 = vadd.f32 %v2980_v9, %v1069_v24  ;;  %v1097_v58 = vmul.f32 %v3052_v47, %v1096_v18  ;;  %vm1076_vm12 = vcmp.eq.f32.partialorder %v1075_v55, 8.507059e+37  ;;  %v1119_v45 = vand.u32 2147483648, %v2994_v37 }
 0x33a   :  { %v1084_v61 = vadd.f32 %v3001_v21, %v1083_v23  ;;  %v1124_v55 = vsub.f32 1.0, %v1123_v17  ;;  %v1380_v17 = vld [vmem:[%s3451_s5 + $0xb8] sm:$0xff]  ;;  %vm1114_vm4 = vweird.f32 %v3078_v14  ;;  %vm1277_vm5 = vcmask 31744  }
 0x33b   :  { %v1074_v32 = vsel %vm3134_vm9, %v2980_v9, %v1070_v2  ;;  %v1098_v39 = vadd.f32 %v3052_v47, %v1097_v58  ;;  %1470 = vmatpush.msra.mxu0 %v1380_v17  ;;  %1571 = vmatpush.msra.mxu1 %v1380_v17  ;;  %vm1127_vm8 = vweird.f32 %v3032_v54  ;;  %vm3231_vm9 = vmor %vm1113_vm14, %vm1114_vm4  ;;  %vm1128_vm10 = vweird.f32 %v3111_v62 }
 0x33c   :  { %v1088_v9 = vsel %vm3147_vm13, %v3001_v21, %v1084_v61  ;;  %v1079_v13 = vsel %vm1076_vm12, %v1078_v49, %v1074_v32  ;;  %v3172_v21 = vld [vmem:[%s3451_s5 + $0x70] sm:$0xff]  ;;  %v3183_v32 = vor.u32 1.1754944e-38, %v1119_v45  ;;  %vm1245_vm12 = vweird.f32 %v2944_v26  ;;  %vm3288_vm13 = vmor %vm1127_vm8, %vm1128_vm10 }
 0x33d   :  { %vm1244_vm14 = vweird.f32 %v2898_v10  ;;  %vm1142_vm0 = vweird.f32 %v3158_v19  ;;  %vm1235_vm4 = vcmp.eq.f32.partialorder %v1234_v33, 8.507059e+37  ;;  %vm1286_vm8 = vcmask 29696   ;;  %v1357_v10 = vld [vmem:[%s3451_s5] sm:$0xff] }
 0x33e   :  { %vm1308_vm10 = vcmask 0  }
 0x354   :  { %v1000_v5 = vpop.f32.mrf.mxu0 }
 0x35a   :  { %v948_v38 = vpop.f32.mrf.mxu3 }
 0x35c   :  { %v1003_v45 = vpop.f32.mrf.mxu0 }
 0x362   :  { %v951_v12 = vpop.f32.mrf.mxu3 }
 0x36a   :  { %v3162_v18 = vpop.f32.mrf.mxu3 }
 0x37e   :  { %v974_v36 = vpop.f32.mrf.mxu1 }
 0x37f   :  { %v975_v0 = vadd.f32 %v974_v36, %v948_v38  ;;  %v1233_v38 = vsel %vm3117_vm6, %v2953_v43, %v3093_v60  ;;  %v1117_v36 = vand.u32 2147483647, %v2994_v37  ;;  %v3244_v37 = vld [vmem:[%s3451_s5 + $0x58] sm:$0xff]  ;;  %vm3380_vm6 = vmor %vm1244_vm14, %vm1245_vm12 }
 0x381   :  { %v1035_v11 = vsub.f32 %v975_v0, %v2895_v6  ;;  %v1110_v6 = vsub.f32 1.0, %v1109_v51  ;;  %vm3194_vm2 = vcmp.eq.f32.partialorder %v1117_v36, 8.507059e+37  ;;  %v3215_v36 = vld [vmem:[%s3451_s5 + $0x60] sm:$0xff] }
 0x383   :  { %v1041_v57 = vmul.f32 2.0, %v1035_v11  ;;  %v1111_v2 = vmul.f32 %v3078_v14, %v1110_v6  ;;  %v1103_v6 = vand.u32 2147483647, %v2964_v31 }
 0x384   :  { %v1026_v24 = vpop.f32.mrf.mxu2 }
 0x385   :  { %v1048_v23 = vadd.f32 %v2909_v40, %v1041_v57  ;;  %v1027_v51 = vadd.f32 %v1026_v24, %v1000_v5  ;;  %v3167_v5 = vld [vmem:[%s3451_s5 + $0x78] sm:$0xff]  ;;  %v1105_v57 = vand.u32 2147483648, %v2964_v31  ;;  %v1102_v31 = vsel %vm3205_vm3, %v3052_v47, %v1098_v39  ;;  %v1006_v47 = vpop.f32.mrf.mxu0 }
 0x386   :  { %v977_v0 = vpop.f32.mrf.mxu1  ;;  %1439 = vmatpush.msra.mxu2 %v3167_v5  ;;  %vm1104_vm7 = vcmp.eq.f32.partialorder %v1103_v6, 8.507059e+37 }
 0x387   :  { %v1150_v20 = vmul.f32 %v1079_v13, %v1048_v23  ;;  %v1036_v11 = vsub.f32 %v1027_v51, %v3585_v15  ;;  %v978_v61 = vadd.f32 %v977_v0, %v951_v12  ;;  %v3188_v15 = vld [vmem:[%s3451_s5 + $0x68] sm:$0xff]  ;;  %v1137_v12 = vmul.f32 %v3158_v19, %v3090_v28 }
 0x388   :  { %1440 = vmatpush.msra.mxu2 %v3172_v21  ;;  %v1093_v23 = vsel %vm3139_vm11, %v1092_v35, %v1088_v9  ;;  %v1106_v13 = vor.u32 1.1754944e-38, %v1105_v57  ;;  %v1379_v57 = vld [vmem:[%s3451_s5 + $0xb0] sm:$0xff]  ;;  %vm1141_vm11 = vweird.f32 %v3090_v28 }
 0x389   :  { %v1265_v58 = vmul.f32 %v2930_v44, %v1150_v20  ;;  %v1042_v49 = vmul.f32 2.0, %v1036_v11  ;;  %v1037_v24 = vsub.f32 %v978_v61, %v2554_v27  ;;  %v1112_v27 = vadd.f32 %v3078_v14, %v1111_v2  ;;  %1471 = vmatpush.msra.mxu0 %v1379_v57  ;;  %1572 = vmatpush.msra.mxu1 %v1379_v57  ;;  %vm3343_vm3 = vmor %vm1141_vm11, %vm1142_vm0 }
 0x38a   :  { %v1125_v44 = vmul.f32 %v3111_v62, %v1124_v55  ;;  %1441 = vmatpush.msra.mxu2 %v3188_v15  ;;  %v1107_v61 = vsel %vm1104_vm7, %v1106_v13, %v1102_v31 }
 0x38b   :  { %v1049_v42 = vadd.f32 %v2909_v40, %v1042_v49  ;;  %v1043_v35 = vmul.f32 2.0, %v1037_v24  ;;  %v3222_v9 = vmul.f32 %v1265_v58, %v3011_v52  ;;  %v1138_v52 = vsub.f32 1.0, %v1137_v12  ;;  %v3252_v12 = vld [vmem:[%s3451_s5 + $0x50] sm:$0xff] }
 0x38c   :  { %v1029_v0 = vpop.f32.mrf.mxu2  ;;  %1442 = vmatpush.msra.mxu2 %v3215_v36  ;;  %v1116_v39 = vsel %vm3231_vm9, %v3078_v14, %v1112_v27  ;;  %v1126_v6 = vadd.f32 %v3111_v62, %v1125_v44  ;;  %v3254_v14 = vpop.f32.mrf.mxu3  ;;  %v1131_v27 = vand.u32 2147483647, %v3032_v54  ;;  %vm1485_vm9 = vcmask 785408  }
 0x38d   :  { %v1151_v2 = vmul.f32 %v1093_v23, %v1049_v42  ;;  %v1050_v55 = vadd.f32 %v2909_v40, %v1043_v35  ;;  %v1030_v11 = vadd.f32 %v1029_v0, %v1003_v45  ;;  %v1378_v23 = vld [vmem:[%s3451_s5 + $0xa8] sm:$0xff]  ;;  %v1377_v42 = vld [vmem:[%s3451_s5 + $0xa0] sm:$0xff] }
 0x38e   :  { %v980_v17 = vpop.f32.mrf.mxu1  ;;  %1443 = vmatpush.msra.mxu2 %v3244_v37  ;;  %1472 = vmatpush.msra.mxu0 %v1378_v23  ;;  %vm1132_vm15 = vcmp.eq.f32.partialorder %v1131_v27, 8.507059e+37 }
 0x38f   :  { %v1266_v58 = vmul.f32 %v2933_v63, %v1151_v2  ;;  %v1310_v49 = vsel %vm1277_vm5, %v1151_v2, 0.0  ;;  %v1152_v24 = vmul.f32 %v1107_v61, %v1050_v55  ;;  %v1038_v45 = vsub.f32 %v1030_v11, %v3586_v16  ;;  %v3270_v16 = vld [vmem:[%s3451_s5 + $0x48] sm:$0xff]  ;;  %v3296_v55 = vld [vmem:[%s3451_s5 + $0x40] sm:$0xff]  ;;  %1573 = vmatpush.msra.mxu1 %v1378_v23  ;;  %v3326_v23 = vld [vmem:[%s3451_s5 + $0x30] sm:$0xff] }
 0x390   :  { %v981_v51 = vadd.f32 %v980_v17, %v3162_v18  ;;  %v1133_v63 = vand.u32 2147483648, %v3032_v54  ;;  %v1311_v44 = vadd.f32 %v1310_v49, %v1150_v20  ;;  %v1139_v18 = vmul.f32 %v3158_v19, %v1138_v52  ;;  %1444 = vmatpush.msra.mxu2 %v3252_v12  ;;  %1473 = vmatpush.msra.mxu0 %v1377_v42 }
 0x391   :  { %v1267_v35 = vmul.f32 %v3064_v30, %v1152_v24  ;;  %v1044_v31 = vmul.f32 2.0, %v1038_v45  ;;  %v1272_v13 = vmul.f32 %v1266_v58, %v3056_v41  ;;  %v1121_v20 = vsel %vm3194_vm2, %v3183_v32, %v1116_v39  ;;  %1574 = vmatpush.msra.mxu1 %v1377_v42 }
 0x392   :  { %v1039_v0 = vsub.f32 %v981_v51, %v2571_v56  ;;  %v1145_v2 = vand.u32 2147483647, %v3090_v28  ;;  %v1312_v41 = vadd.f32 %v1311_v44, %v1152_v24  ;;  %v1376_v56 = vld [vmem:[%s3451_s5 + $0x98] sm:$0xff]  ;;  %v1130_v54 = vsel %vm3288_vm13, %v3111_v62, %v1126_v6  ;;  %1445 = vmatpush.msra.mxu2 %v3270_v16  ;;  %v1374_v51 = vld [vmem:[%s3451_s5 + $0x88] sm:$0xff] }
 0x393   :  { %v1051_v32 = vadd.f32 %v2909_v40, %v1044_v31  ;;  %v1273_v59 = vmul.f32 %v1267_v35, %v3109_v4  ;;  %v1278_v11 = vsel %vm1277_vm5, %v1272_v13, 0.0  ;;  %v1134_v61 = vor.u32 1.1754944e-38, %v1133_v63  ;;  %v3313_v62 = vld [vmem:[%s3451_s5 + $0x38] sm:$0xff]  ;;  %v1375_v4 = vld [vmem:[%s3451_s5 + $0x90] sm:$0xff]  ;;  %1474 = vmatpush.msra.mxu0 %v1376_v56  ;;  %1575 = vmatpush.msra.mxu1 %v1376_v56  ;;  %v3352_v13 = vld [vmem:[%s3451_s5 + $0x28] sm:$0xff] }
 0x394   :  { %v1045_v52 = vmul.f32 2.0, %v1039_v0  ;;  %v1032_v39 = vpop.f32.mrf.mxu2  ;;  %v1279_v17 = vadd.f32 %v1278_v11, %v3222_v9  ;;  %v1140_v58 = vadd.f32 %v3158_v19, %v1139_v18  ;;  %1446 = vmatpush.msra.mxu2 %v3296_v55  ;;  %v1147_v24 = vand.u32 2147483648, %v3090_v28  ;;  %v3331_v27 = vpop.f32.mrf.mxu3 }
 0x395   :  { %v1153_v6 = vmul.f32 %v1121_v20, %v1051_v32  ;;  %v1033_v57 = vadd.f32 %v1032_v39, %v1006_v47  ;;  %v1135_v49 = vsel %vm1132_vm15, %v1134_v61, %v1130_v54  ;;  %vm1283_vm2 = vcmask 1045504   ;;  %1475 = vmatpush.msra.mxu0 %v1375_v4  ;;  %1576 = vmatpush.msra.mxu1 %v1375_v4 }
 0x396   :  { %v1052_v9 = vadd.f32 %v2909_v40, %v1045_v52  ;;  %v1280_v45 = vadd.f32 %v1279_v17, %v1273_v59  ;;  %1447 = vmatpush.msra.mxu2 %v3313_v62  ;;  %v1263_v35 = vadd.f32 %v3081_v48, %v2857_v46  ;;  %v1373_v48 = vld [vmem:[%s3451_s5 + $0x80] sm:$0xff]  ;;  %v1144_v28 = vsel %vm3343_vm3, %v3158_v19, %v1140_v58  ;;  %v1404_v11 = vpop.f32.mrf.mxu1 }
 0x397   :  { %v1040_v63 = vsub.f32 %v1033_v57, %v2955_v29  ;;  %v1268_v44 = vmul.f32 %v2960_v50, %v1153_v6  ;;  %v1313_v42 = vsel %vm1277_vm5, %v1153_v6, 0.0  ;;  %v1237_v29 = vor.u32 1.1754944e-38, %v1236_v3  ;;  %1476 = vmatpush.msra.mxu0 %v1374_v51  ;;  %1577 = vmatpush.msra.mxu1 %v1374_v51 }
 0x398   :  { %v1154_v31 = vmul.f32 %v1135_v49, %v1052_v9  ;;  %v1314_v50 = vadd.f32 %v1313_v42, %v1312_v41  ;;  %1448 = vmatpush.msra.mxu2 %v3326_v23  ;;  %v1148_v0 = vor.u32 1.1754944e-38, %v1147_v24  ;;  %vm1146_vm7 = vcmp.eq.f32.partialorder %v1145_v2, 8.507059e+37 }
 0x399   :  { %v1046_v20 = vmul.f32 2.0, %v1040_v63  ;;  %v1274_v3 = vmul.f32 %v1268_v44, %v3076_v8  ;;  %v1238_v30 = vsel %vm1235_vm4, %v1237_v29, %v1233_v38  ;;  %1477 = vmatpush.msra.mxu0 %v1373_v48  ;;  %1578 = vmatpush.msra.mxu1 %v1373_v48  ;;  %v1264_v2 = vadd.f32 %v2990_v22, %v2857_v46  ;;  %v1359_v46 = vld [vmem:[%s3451_s5 + $0x10] sm:$0xff] }
 0x39a   :  { %v1269_v41 = vmul.f32 %v1263_v35, %v1154_v31  ;;  %v1315_v56 = vsel %vm1283_vm2, %v1154_v31, 0.0  ;;  %1449 = vmatpush.msra.mxu2 %v3352_v13  ;;  %v1149_v1 = vsel %vm1146_vm7, %v1148_v0, %v1144_v28  ;;  %v1247_v54 = vsel %vm3380_vm6, %v2944_v26, %v3097_v34  ;;  %1692 = vmatmul.msk.f32.vlgmr.msra.gmra.mxu0 %vm96_vm1, %v3254_v14 }
 0x39b   :  { %v1053_v8 = vadd.f32 %v2909_v40, %v1046_v20  ;;  %v1281_v33 = vsel %vm1277_vm5, %v1274_v3, 0.0  ;;  %v1316_v19 = vadd.f32 %v1315_v56, %v1314_v50  ;;  %1540 = vmatpush.msrb.mxu0 %v3167_v5  ;;  %v1360_v40 = vld [vmem:[%s3451_s5 + $0x18] sm:$0xff]  ;;  %v1251_v5 = vor.u32 1.1754944e-38, %v1250_v53  ;;  %v1358_v53 = vld [vmem:[%s3451_s5 + $0x8] sm:$0xff] }
 0x39c   :  { %v1275_v60 = vmul.f32 %v1269_v41, %v1238_v30  ;;  %v1282_v38 = vadd.f32 %v1281_v33, %v1280_v45  ;;  %1450 = vmatpush.msra.mxu2 %v1361_v7  ;;  %v1528_v22 = vpop.f32.mrf.mxu3  ;;  %vm1249_vm5 = vcmp.eq.f32.partialorder %v1248_v25, 8.507059e+37 }
 0x39d   :  { %v1155_v32 = vmul.f32 %v1149_v1, %v1053_v8  ;;  %1541 = vmatpush.msrb.mxu0 %v3172_v21  ;;  %1698 = vmatmul.msk.f32.vlgmr.msra.gmra.mxu1 %vm96_vm1, %v1528_v22  ;;  %v1252_v14 = vsel %vm1249_vm5, %v1251_v5, %v1247_v54 }
 0x39e   :  { %v1284_v59 = vsel %vm1283_vm2, %v1275_v60, 0.0  ;;  %1451 = vmatpush.msra.mxu2 %v1360_v40  ;;  %v1407_v52 = vpop.f32.mrf.mxu1 }
 0x39f   :  { %v1270_v26 = vmul.f32 %v1264_v2, %v1155_v32  ;;  %v1285_v34 = vadd.f32 %v1284_v59, %v1282_v38  ;;  %1542 = vmatpush.msrb.mxu0 %v3188_v15 }
 0x3a0   :  { %1452 = vmatpush.msra.mxu2 %v1359_v46 }
 0x3a1   :  { %v1276_v21 = vmul.f32 %v1270_v26, %v1252_v14  ;;  %1543 = vmatpush.msrb.mxu0 %v3215_v36  ;;  %v1317_v36 = vsel %vm1286_vm8, %v1155_v32, 0.0 }
 0x3a2   :  { %1453 = vmatpush.msra.mxu2 %v1358_v53  ;;  %1693 = vmatmul.msk.f32.gmra.mxu0 %vm96_vm1, %v3331_v27  ;;  %v1318_v61 = vadd.f32 %v1317_v36, %v1316_v19 }
 0x3a3   :  { %v1287_v25 = vsel %vm1286_vm8, %v1276_v21, 0.0  ;;  %1544 = vmatpush.msrb.mxu0 %v3244_v37 }
 0x3a4   :  { %v1288_v47 = vadd.f32 %v1287_v25, %v1285_v34  ;;  %1454 = vmatpush.msra.mxu2 %v1357_v10  ;;  %v1531_v15 = vpop.f32.mrf.mxu3 }
 0x3a5   :  { %1455 = vmatmul.f32.vlgmr.msra.gmra.mxu2 %v1404_v11  ;;  %1545 = vmatpush.msrb.mxu0 %v3252_v12 }
 0x3a6   :  { %1289 = vadd.xlane.f32.xlu1 %v1288_v47  ;;  %1699 = vmatmul.msk.f32.gmra.mxu1 %vm96_vm1, %v1531_v15  ;;  %v1505_v37 = vpop.f32.mrf.mxu1 }
 0x3a7   :  { %1546 = vmatpush.msrb.mxu0 %v3270_v16  ;;  %v1816_v16 = vmov 2904.0  }
 0x3a8   :  { %1745 = vrcp.f32 %v1816_v16 }
 0x3a9   :  { %1547 = vmatpush.msrb.mxu0 %v3296_v55 }
 0x3ab   :  { %1548 = vmatpush.msrb.mxu0 %v3313_v62 }
 0x3ad   :  { %1458 = vmatmul.f32.gmra.mxu2 %v1407_v52  ;;  %1549 = vmatpush.msrb.mxu0 %v3326_v23 }
 0x3ae   :  { %1319 = vadd.xlane.f32.xlu1 %v1318_v61  ;;  %v1508_v12 = vpop.f32.mrf.mxu1  ;;  %v1746_v55 = vpop.eup %1745 }
 0x3af   :  { %1550 = vmatpush.msrb.mxu0 %v3352_v13  ;;  %v1299_v39 = vmul.f32 2904.0, %v1746_v55  ;;  %vm1303_vm1 = vweird.f32 %v1746_v55 }
 0x3b1   :  { %1551 = vmatpush.msrb.mxu0 %v1361_v7  ;;  %v1300_v17 = vsub.f32 1.0, %v1299_v39 }
 0x3b3   :  { %1552 = vmatpush.msrb.mxu0 %v1360_v40  ;;  %v1301_v57 = vmul.f32 %v1746_v55, %v1300_v17 }
 0x3b5   :  { %1553 = vmatpush.msrb.mxu0 %v1359_v46  ;;  %v1302_v49 = vadd.f32 %v1746_v55, %v1301_v57 }
 0x3b7   :  { %1554 = vmatpush.msrb.mxu0 %v1358_v53  ;;  %v1304_v63 = vsel %vm1303_vm1, %v1746_v55, %v1302_v49 }
 0x3b9   :  { %1555 = vmatpush.msrb.mxu0 %v1357_v10 }
 0x3ba   :  { %1556 = vmatmul.f32.vlgmr.msrb.gmra.mxu0 %v1505_v37 }
 0x3c2   :  { %1559 = vmatmul.f32.gmra.mxu0 %v1508_v12 }
 0x417   :  { %v1479_v44 = vpop.f32.mrf.mxu0 }
 0x419   :  { %v1290_v62 = vpop.xlane.xlu1 %1289 }
 0x41a   :  { %v1291_v4 = vrot.slane %v1290_v62, 4  ;;  %v1580_v3 = vpop.f32.mrf.mxu1 }
 0x41c   :  { %v1292_v6 = vadd.f32 %v1291_v4, %v1290_v62 }
 0x41e   :  { %v1293_v58 = vrot.slane %v1292_v6, 2 }
 0x41f   :  { %v1482_v13 = vpop.f32.mrf.mxu0 }
 0x420   :  { %v1294_v9 = vadd.f32 %v1293_v58, %v1292_v6 }
 0x421   :  { %v1320_v24 = vpop.xlane.xlu1 %1319 }
 0x422   :  { %v1321_v45 = vrot.slane %v1320_v24, 4  ;;  %v1295_v23 = vrot.slane %v1294_v9, 1 }
 0x423   :  { %v1583_v41 = vpop.f32.mrf.mxu1 }
 0x424   :  { %v1322_v51 = vadd.f32 %v1321_v45, %v1320_v24  ;;  %v1296_v27 = vadd.f32 %v1295_v23, %v1294_v9 }
 0x426   :  { %v1323_v42 = vrot.slane %v1322_v51, 2  ;;  %1712 = vpush %v1296_v27 }
 0x427   :  { %1714 = vpush %v1304_v63 }
 0x428   :  { %v1324_v35 = vadd.f32 %v1323_v42, %v1322_v51  ;;  %v1456_v31 = vpop.f32.mrf.mxu2 }
 0x429   :  { %v1480_v29 = vadd.f32 %v1479_v44, %v1456_v31 }
 0x42a   :  { %v1325_v18 = vrot.slane %v1324_v35, 1 }
 0x42b   :  { %1486 = vst.msk [vmem:[%s3454_s8] sm:$0xff] %vm1485_vm9, %v1480_v29 }
 0x42c   :  { %v1326_v50 = vadd.f32 %v1325_v18, %v1324_v35 }
 0x42e   :  { %1716 = vpush %v1326_v50 }
 0x430   :  { %v1459_v48 = vpop.f32.mrf.mxu2 }
 0x431   :  { %v1483_v20 = vadd.f32 %v1482_v13, %v1459_v48 }
 0x433   :  { %1487 = vst.msk [vmem:[%s3454_s8 + $0x8] sm:$0xff] %vm1485_vm9, %v1483_v20  ;;  %s1595_s8 = sshll.u32 %s3452_s6, 4  ;;  %s1596_s8 = int_to_ptr.hbm [resolvable:$true] %s1595_s8 }
 0x437   :  { %v1557_v28 = vpop.f32.mrf.mxu0 }
 0x438   :  { %v1581_v0 = vadd.f32 %v1580_v3, %v1557_v28 }
 0x43a   :  { %1586 = vst.msk [vmem:[%s3455_s9] sm:$0xff] %vm1485_vm9, %v1581_v0 }
 0x43f   :  { %v1560_v30 = vpop.f32.mrf.mxu0 }
 0x440   :  { %v1584_v56 = vadd.f32 %v1583_v41, %v1560_v30 }
 0x442   :  { %1587 = vst.msk [vmem:[%s3455_s9 + $0x8] sm:$0xff] %vm1485_vm9, %v1584_v56  ;;  %s1606_s9 = sshll.u32 %s3453_s7, 4  ;;  %s1607_s9 = int_to_ptr.hbm [resolvable:$true] %s1606_s9 }
 0x457   :  { %s1713_s2 = spop %1712 }
 0x458   :  { %s1715_s10 = spop %1714 }
 0x459   :  { %s1306_s11 = smul.f32 %s1715_s10, %s1713_s2 }
 0x45b   :  { %v1307_v7 = vstv %s1306_s11 }
 0x45c   :  { %1309 = vst.msk [vmem:[#allocation2] sm:$0x1] %vm1308_vm10, %v1307_v7 }
 0x45d   :  { %1598 = dma.vmem_to_hbm [thread:$0]  %s1594_s30, 16, %s1596_s8, [#allocation3]  }
 0x45f   :  { %s1717_s15 = spop %1716 }
 0x460   :  { %s1336_s16 = smul.f32 %s1717_s15, %s1715_s10 }
 0x462   :  { %v1337_v8 = vstv %s1336_s16 }
 0x463   :  { %1338 = vst.msk [vmem:[#allocation4] sm:$0x1] %vm1308_vm10, %v1337_v8 }
 0x464   :  { %1609 = dma.vmem_to_hbm [thread:$0]  %s1605_s13, 16, %s1607_s9, [#allocation5]  }
 0x465   :  { %1812 = dma.done.wait [#allocation3], 16  }
 0x466   :  { %1813 = vsyncadd [#allocation3], 4294967280 }
 0x467   :  { %1814 = dma.done.wait [#allocation5], 16  }
 0x468   :  { %1815 = vsyncadd [#allocation5], 4294967280 }
 0x469   :  { %1626 = vsyncpa [#allocation3], 1 }
 0x46a   :  { %1627 = vsyncpa [#allocation5], 1 }

// kernel: _lambda_.8
= control target key start
LH: loop header
LB: loop body
LE: loop exit
PB: predicated region body
PF: predicated region fallthrough
CT: control target
= control target key end

     0   :  { %15 = vsyncpa [#allocation3], 0  ;;  %vm69_vm0 = vcmask 1043456   ;;  %vm65_vm1 = vcmask 31744   ;;  %vm35_vm2 = vcmask 191488   ;;  %s761_s0 = inlined_call_operand.vmem [shape: f32[4,24], index: 0, kind: input, shape index: {}]   ;;  %s762_s1 = inlined_call_operand.vmem [shape: f32[4,24], index: 1, kind: input, shape index: {}]   ;;  %s763_s2 = inlined_call_operand.vmem [shape: f32[1,4], index: 2, kind: input, shape index: {}]   ;;  %s764_s3 = inlined_call_operand.vmem [shape: f32[24,6], index: 3, kind: input, shape index: {}]   ;;  %s765_s4 = inlined_call_operand.vmem [shape: f32[2,4], index: 4, kind: input, shape index: {}]   ;;  %s766_s5 = inlined_call_operand.vmem [shape: f32[24,12], index: 5, kind: input, shape index: {}]   ;;  %s767_s6 = inlined_call_operand.hbm [shape: f32[1,1], index: 6, kind: output, shape index: {0}]   ;;  %s768_s7 = inlined_call_operand.hbm [shape: f32[1,1], index: 7, kind: output, shape index: {1}]   ;;  %s769_s8 = inlined_call_operand.vmem [shape: f32[2,12], index: 8, kind: output, shape index: {2}]   ;;  %s770_s9 = inlined_call_operand.vmem [shape: f32[2,12], index: 9, kind: output, shape index: {3}]  }
   0x1   :  { %v29_v0 = vld [vmem:[%s761_s0] sm:$0xf]  ;;  %v34_v5 = vld [vmem:[%s764_s3 + $0x10] sm:$0xff] }
   0x2   :  { %v30_v1 = vld [vmem:[%s762_s1] sm:$0xf]  ;;  %539 = vmatpush.msk.msra.mxu0 %vm69_vm0, %v29_v0  ;;  %v166_v4 = vmul.f32 %v29_v0, %v29_v0  ;;  %v36_v6 = vsel %vm35_vm2, %v29_v0, -inf }
   0x3   :  { %542 = vmatpush.msk.msra.mxu2 %vm69_vm0, %v30_v1  ;;  %v262_v2 = vmul.f32 %v30_v1, %v29_v0  ;;  %v31_v3 = vld [vmem:[%s763_s2] sm:$0x1] }
   0x4   :  { %540 = vmatmul.msk.f32.vlgmr.msra.gmra.mxu0 %vm65_vm1, %v31_v3  ;;  %543 = vmatmul.msk.f32.vlgmr.msra.gmra.mxu2 %vm65_vm1, %v31_v3 }
   0x5   :  { %16 = vsyncpa [#allocation5], 0  ;;  %545 = vmatpush.msk.msrb.mxu0 %vm69_vm0, %v166_v4  ;;  %37 = vmax.xlane.f32.xlu0 %v36_v6  ;;  %v33_v7 = vld [vmem:[%s764_s3 + $0x8] sm:$0xff]  ;;  %v48_v8 = vsel %vm35_vm2, %v29_v0, inf  ;;  %v32_v9 = vld [vmem:[%s764_s3] sm:$0xff]  ;;  %v214_v10 = vmul.f32 %v30_v1, %v30_v1  ;;  %vm93_vm3 = vcmask 195584  }
   0x6   :  { %110 = vmatpush.msra.mxu1 %v34_v5  ;;  %156 = vmatpush.msra.mxu3 %v34_v5  ;;  %v395_v29 = vld [vmem:[%s761_s0] sm:$0xf]  ;;  %v400_v48 = vld [vmem:[%s766_s5 + $0x10] sm:$0xff]  ;;  %v399_v49 = vld [vmem:[%s766_s5 + $0x8] sm:$0xff]  ;;  %vm351_vm12 = vcmask 40960   ;;  %vm450_vm14 = vcmask 91136  }
   0x7   :  { %551 = vmatpush.msk.msra.mxu0 %vm69_vm0, %v262_v2  ;;  %206 = vmatpush.msrb.mxu2 %v34_v5  ;;  %v396_v30 = vld [vmem:[%s762_s1] sm:$0xf]  ;;  %s632_s2 = smov [#allocation2]   ;;  %s506_s22 = sshll.u32 %s767_s6, 4  ;;  %vm372_vm15 = vcmask 0   ;;  %s507_s22 = int_to_ptr.hbm [resolvable:$true] %s506_s22 }
   0x8   :  { %111 = vmatpush.msra.mxu1 %v33_v7  ;;  %157 = vmatpush.msra.mxu3 %v33_v7  ;;  %v397_v31 = vld [vmem:[%s765_s4] sm:$0x3]  ;;  %s504_s19 = sshll.u32 %s632_s2, 4  ;;  %s505_s19 = int_to_ptr.vmem [resolvable:$true] %s504_s19 }
   0x9   :  { %207 = vmatpush.msrb.mxu2 %v33_v7  ;;  %v398_v51 = vld [vmem:[%s766_s5] sm:$0xff] }
   0xa   :  { %112 = vmatpush.msra.mxu1 %v32_v9  ;;  %158 = vmatpush.msra.mxu3 %v32_v9 }
   0xb   :  { %208 = vmatpush.msrb.mxu2 %v32_v9 }
   0xc   :  { %546 = vmatmul.msk.f32.vlgmr.msrb.gmra.mxu0 %vm65_vm1, %v31_v3  ;;  %254 = vmatpush.msrb.mxu3 %v34_v5 }
   0xd   :  { %49 = vmin.xlane.f32.xlu0 %v48_v8  ;;  %302 = vmatpush.msra.mxu2 %v34_v5 }
   0xe   :  { %548 = vmatpush.msk.msrb.mxu1 %vm69_vm0, %v214_v10  ;;  %255 = vmatpush.msrb.mxu3 %v33_v7 }
   0xf   :  { %303 = vmatpush.msra.mxu2 %v33_v7  ;;  %557 = vmatpush.msk.msrb.mxu0 %vm69_vm0, %v396_v30 }
  0x10   :  { %256 = vmatpush.msrb.mxu3 %v32_v9 }
  0x11   :  { %304 = vmatpush.msra.mxu2 %v32_v9 }
  0x14   :  { %552 = vmatmul.msk.f32.vlgmr.msra.gmra.mxu0 %vm65_vm1, %v31_v3 }
  0x1c   :  { %558 = vmatmul.msk.f32.vlgmr.msrb.gmra.mxu0 %vm65_vm1, %v397_v31 }
  0x78   :  { %v38_v11 = vpop.xlane.xlu0 %37 }
  0x79   :  { %v39_v12 = vrot.slane %v38_v11, 4 }
  0x7b   :  { %v40_v13 = vmax.f32 %v38_v11, %v39_v12 }
  0x7d   :  { %v41_v14 = vrot.slane %v40_v13, 2 }
  0x7f   :  { %v42_v15 = vmax.f32 %v40_v13, %v41_v14 }
  0x80   :  { %v50_v16 = vpop.xlane.xlu0 %49 }
  0x81   :  { %v90_v17 = vpop.f32.mrf.mxu0  ;;  %v51_v18 = vrot.slane %v50_v16, 4  ;;  %v43_v19 = vrot.slane %v42_v15, 1 }
  0x82   :  { %541 = vmatmul.msk.f32.vlgmr.msra.gmra.mxu1 %vm93_vm3, %v90_v17 }
  0x83   :  { %v52_v20 = vmin.f32 %v50_v16, %v51_v18  ;;  %v44_v21 = vmax.f32 %v42_v15, %v43_v19  ;;  %554 = vmatpush.msk.msra.mxu1 %vm69_vm0, %v395_v29 }
  0x85   :  { %v53_v22 = vrot.slane %v52_v20, 2  ;;  %560 = vpush %v44_v21 }
  0x87   :  { %v137_v23 = vpop.f32.mrf.mxu2  ;;  %v54_v24 = vmin.f32 %v52_v20, %v53_v22  ;;  %v631_v20 = vmov 6.0  }
  0x88   :  { %544 = vmatmul.msk.f32.vlgmr.msra.gmra.mxu3 %vm93_vm3, %v137_v23 }
  0x89   :  { %v187_v25 = vpop.f32.mrf.mxu0  ;;  %v55_v26 = vrot.slane %v54_v24, 1  ;;  %443 = vmatpush.msra.mxu3 %v400_v48 }
  0x8a   :  { %547 = vmatmul.msk.f32.vlgmr.msrb.gmra.mxu2 %vm93_vm3, %v187_v25  ;;  %549 = vmatmul.msk.f32.vlgmr.msrb.gmra.mxu1 %vm65_vm1, %v31_v3 }
  0x8b   :  { %v56_v27 = vmin.f32 %v54_v24, %v55_v26  ;;  %491 = vmatpush.msrb.mxu2 %v400_v48  ;;  %444 = vmatpush.msra.mxu3 %v399_v49 }
  0x8d   :  { %562 = vpush %v56_v27  ;;  %492 = vmatpush.msrb.mxu2 %v399_v49  ;;  %445 = vmatpush.msra.mxu3 %v398_v51 }
  0x8f   :  { %493 = vmatpush.msrb.mxu2 %v398_v51 }
  0x91   :  { %v283_v28 = vpop.f32.mrf.mxu0 }
  0x92   :  { %553 = vmatmul.msk.f32.vlgmr.msra.gmra.mxu2 %vm93_vm3, %v283_v28  ;;  %555 = vmatmul.msk.f32.vlgmr.msra.gmra.mxu1 %vm65_vm1, %v397_v31 }
  0x99   :  { %v472_v53 = vpop.f32.mrf.mxu0 }
  0x9a   :  { %559 = vmatmul.msk.f32.vlgmr.msrb.gmra.mxu2 %vm93_vm3, %v472_v53 }
  0xb6   :  { %s561_s0 = spop %560 }
  0xb7   :  { %p46_p0 = scmp.gt.f32.partialorder %s561_s0, 128.0 }
  0xb9   :  { %s47_s1 = scalar_select %p46_p0, 255.0, 1.0 }
  0xbe   :  { %s563_s25 = spop %562 }
  0xbf   :  { %p58_p1 = scmp.lt.f32.partialorder %s563_s25, -0.5 }
  0xc1   :  { %s59_s26 = scalar_select %p58_p1, -1.0, 0.0 }
  0xc3   :  { %s60_s27 = ssub.f32 %s47_s1, %s59_s26 }
  0xc5   :  { %s61_s4 = smul.f32 0.01, %s60_s27 }
  0xc6   :  { %s63_s29 = smul.f32 0.03, %s60_s27 }
  0xc7   :  { %s732_s28 = smul.f32 %s61_s4, %s61_s4 }
  0xc8   :  { %s735_s30 = smul.f32 %s63_s29, %s63_s29 }
  0xc9   :  { %v331_v38 = vstv %s732_s28 }
  0xca   :  { %v311_v45 = vstv %s735_s30 }
  0xff   :  { %v114_v32 = vpop.f32.mrf.mxu1 }
 0x100   :  { %v163_v36 = vmul.f32 %v114_v32, %v114_v32 }
 0x107   :  { %v235_v33 = vpop.f32.mrf.mxu1 }
 0x108   :  { %550 = vmatmul.msk.f32.vlgmr.msrb.gmra.mxu3 %vm93_vm3, %v235_v33 }
 0x10b   :  { %v160_v34 = vpop.f32.mrf.mxu3 }
 0x10c   :  { %v164_v35 = vmul.f32 %v160_v34, %v160_v34  ;;  %v165_v55 = vmul.f32 %v160_v34, %v114_v32 }
 0x10d   :  { %v210_v40 = vpop.f32.mrf.mxu2 }
 0x10e   :  { %v330_v37 = vadd.f32 %v164_v35, %v163_v36  ;;  %v213_v42 = vsub.f32 %v210_v40, %v163_v36  ;;  %v347_v2 = vmul.f32 2.0, %v165_v55 }
 0x10f   :  { %v424_v52 = vpop.f32.mrf.mxu1 }
 0x110   :  { %v332_v39 = vadd.f32 %v331_v38, %v330_v37  ;;  %556 = vmatmul.msk.f32.vlgmr.msra.gmra.mxu3 %vm93_vm3, %v424_v52  ;;  %v348_v13 = vadd.f32 %v347_v2, %v331_v38 }
 0x112   :  { %573 = vrcp.f32 %v332_v39  ;;  %vm338_vm8 = vweird.f32 %v332_v39  ;;  %v344_v6 = vand.u32 2147483648, %v332_v39  ;;  %v342_v9 = vand.u32 2147483647, %v332_v39 }
 0x114   :  { %v345_v14 = vor.u32 1.1754944e-38, %v344_v6  ;;  %vm343_vm11 = vcmp.eq.f32.partialorder %v342_v9, 8.507059e+37 }
 0x115   :  { %v306_v54 = vpop.f32.mrf.mxu2 }
 0x116   :  { %v309_v58 = vsub.f32 %v306_v54, %v165_v55 }
 0x118   :  { %v574_v46 = vpop.eup %573  ;;  %v310_v63 = vmul.f32 2.0, %v309_v58 }
 0x119   :  { %v334_v50 = vmul.f32 %v574_v46, %v332_v39  ;;  %vm339_vm6 = vweird.f32 %v574_v46 }
 0x11a   :  { %v312_v7 = vadd.f32 %v311_v45, %v310_v63  ;;  %vm340_vm10 = vmor %vm338_vm8, %vm339_vm6 }
 0x11b   :  { %v335_v56 = vsub.f32 1.0, %v334_v50 }
 0x11d   :  { %v336_v61 = vmul.f32 %v574_v46, %v335_v56 }
 0x11f   :  { %v337_v4 = vadd.f32 %v574_v46, %v336_v61 }
 0x121   :  { %v341_v12 = vsel %vm340_vm10, %v574_v46, %v337_v4 }
 0x122   :  { %v346_v16 = vsel %vm343_vm11, %v345_v14, %v341_v12 }
 0x18b   :  { %v258_v41 = vpop.f32.mrf.mxu3 }
 0x18c   :  { %v261_v43 = vsub.f32 %v258_v41, %v164_v35 }
 0x18e   :  { %v313_v44 = vadd.f32 %v261_v43, %v213_v42  ;;  %v495_v42 = vpop.f32.mrf.mxu2 }
 0x18f   :  { %498 = vst.msk [vmem:[%s770_s9] sm:$0x3] %vm450_vm14, %v495_v42  ;;  %s517_s9 = sshll.u32 %s768_s7, 4  ;;  %s518_s9 = int_to_ptr.hbm [resolvable:$true] %s517_s9 }
 0x190   :  { %v314_v47 = vadd.f32 %v313_v44, %v311_v45 }
 0x192   :  { %575 = vrcp.f32 %v314_v47  ;;  %v326_v62 = vand.u32 2147483648, %v314_v47  ;;  %v324_v1 = vand.u32 2147483647, %v314_v47  ;;  %vm320_vm5 = vweird.f32 %v314_v47 }
 0x193   :  { %577 = vrcp.f32 %v631_v20  ;;  %v447_v41 = vpop.f32.mrf.mxu3 }
 0x194   :  { %v327_v5 = vor.u32 1.1754944e-38, %v326_v62  ;;  %vm325_vm9 = vcmp.eq.f32.partialorder %v324_v1, 8.507059e+37  ;;  %451 = vst.msk [vmem:[%s769_s8] sm:$0x3] %vm450_vm14, %v447_v41  ;;  %s633_s8 = smov [#allocation4]  }
 0x195   :  { %s515_s0 = sshll.u32 %s633_s8, 4  ;;  %s516_s0 = int_to_ptr.vmem [resolvable:$true] %s515_s0 }
 0x198   :  { %v576_v57 = vpop.eup %575 }
 0x199   :  { %v316_v59 = vmul.f32 %v576_v57, %v314_v47  ;;  %vm321_vm4 = vweird.f32 %v576_v57  ;;  %v578_v21 = vpop.eup %577 }
 0x19a   :  { %vm322_vm7 = vmor %vm320_vm5, %vm321_vm4  ;;  %v363_v22 = vmul.f32 6.0, %v578_v21  ;;  %vm367_vm13 = vweird.f32 %v578_v21 }
 0x19b   :  { %v317_v60 = vsub.f32 1.0, %v316_v59 }
 0x19c   :  { %v364_v23 = vsub.f32 1.0, %v363_v22 }
 0x19d   :  { %v318_v0 = vmul.f32 %v576_v57, %v317_v60 }
 0x19e   :  { %v365_v27 = vmul.f32 %v578_v21, %v364_v23 }
 0x19f   :  { %v319_v3 = vadd.f32 %v576_v57, %v318_v0 }
 0x1a0   :  { %v366_v30 = vadd.f32 %v578_v21, %v365_v27 }
 0x1a1   :  { %v323_v8 = vsel %vm322_vm7, %v576_v57, %v319_v3 }
 0x1a2   :  { %v328_v10 = vsel %vm325_vm9, %v327_v5, %v323_v8  ;;  %v368_v36 = vsel %vm367_vm13, %v578_v21, %v366_v30 }
 0x1a3   :  { %v329_v11 = vmul.f32 %v328_v10, %v312_v7 }
 0x1a5   :  { %v349_v15 = vmul.f32 %v348_v13, %v329_v11  ;;  %v374_v19 = vsel %vm351_vm12, %v329_v11, 0.0 }
 0x1a7   :  { %v350_v17 = vmul.f32 %v349_v15, %v346_v16 }
 0x1a9   :  { %v352_v18 = vsel %vm351_vm12, %v350_v17, 0.0 }
 0x1aa   :  { %353 = vadd.xlane.f32.xlu1 %v352_v18 }
 0x1b2   :  { %375 = vadd.xlane.f32.xlu1 %v374_v19 }
 0x21d   :  { %v354_v24 = vpop.xlane.xlu1 %353 }
 0x21e   :  { %v355_v25 = vrot.slane %v354_v24, 4 }
 0x220   :  { %v356_v26 = vadd.f32 %v355_v25, %v354_v24 }
 0x222   :  { %v357_v28 = vrot.slane %v356_v26, 2 }
 0x224   :  { %v358_v29 = vadd.f32 %v357_v28, %v356_v26 }
 0x225   :  { %v376_v31 = vpop.xlane.xlu1 %375 }
 0x226   :  { %v377_v32 = vrot.slane %v376_v31, 4  ;;  %v359_v33 = vrot.slane %v358_v29, 1 }
 0x228   :  { %v378_v34 = vadd.f32 %v377_v32, %v376_v31  ;;  %v360_v35 = vadd.f32 %v359_v33, %v358_v29 }
 0x22a   :  { %v379_v37 = vrot.slane %v378_v34, 2  ;;  %564 = vpush %v360_v35 }
 0x22b   :  { %566 = vpush %v368_v36 }
 0x22c   :  { %v380_v38 = vadd.f32 %v379_v37, %v378_v34 }
 0x22e   :  { %v381_v39 = vrot.slane %v380_v38, 1 }
 0x230   :  { %v382_v40 = vadd.f32 %v381_v39, %v380_v38 }
 0x232   :  { %568 = vpush %v382_v40 }
 0x25b   :  { %s565_s3 = spop %564 }
 0x25c   :  { %s567_s23 = spop %566 }
 0x25d   :  { %s370_s24 = smul.f32 %s567_s23, %s565_s3 }
 0x25f   :  { %v371_v43 = vstv %s370_s24 }
 0x260   :  { %373 = vst.msk [vmem:[#allocation2] sm:$0x1] %vm372_vm15, %v371_v43 }
 0x261   :  { %509 = dma.vmem_to_hbm [thread:$0]  %s505_s19, 16, %s507_s22, [#allocation3]  }
 0x263   :  { %s569_s26 = spop %568 }
 0x264   :  { %s392_s27 = smul.f32 %s569_s26, %s567_s23 }
 0x266   :  { %v393_v44 = vstv %s392_s27 }
 0x267   :  { %394 = vst.msk [vmem:[#allocation4] sm:$0x1] %vm372_vm15, %v393_v44 }
 0x268   :  { %520 = dma.vmem_to_hbm [thread:$0]  %s516_s0, 16, %s518_s9, [#allocation5]  }
 0x269   :  { %627 = dma.done.wait [#allocation3], 16  }
 0x26a   :  { %628 = vsyncadd [#allocation3], 4294967280 }
 0x26b   :  { %629 = dma.done.wait [#allocation5], 16  }
 0x26c   :  { %630 = vsyncadd [#allocation5], 4294967280 }
 0x26d   :  { %537 = vsyncpa [#allocation3], 1 }
 0x26e   :  { %538 = vsyncpa [#allocation5], 1 }

// kernel: _lambda_.9
= control target key start
LH: loop header
LB: loop body
LE: loop exit
PB: predicated region body
PF: predicated region fallthrough
CT: control target
= control target key end

     0   :  { %11 = vsyncpa [#allocation3], 0  ;;  %vm60_vm0 = vcmask 1041408   ;;  %vm56_vm1 = vcmask 15360   ;;  %vm26_vm2 = vcmask 91136   ;;  %vm88_vm3 = vcmask 1043456   ;;  %s593_s0 = inlined_call_operand.vmem [shape: f32[2,12], index: 0, kind: input, shape index: {}]   ;;  %s594_s1 = inlined_call_operand.vmem [shape: f32[2,12], index: 1, kind: input, shape index: {}]   ;;  %s595_s2 = inlined_call_operand.vmem [shape: f32[1,2], index: 2, kind: input, shape index: {}]   ;;  %s596_s3 = inlined_call_operand.vmem [shape: f32[12,6], index: 3, kind: input, shape index: {}]   ;;  %s597_s4 = inlined_call_operand.hbm [shape: f32[1,1], index: 4, kind: output, shape index: {0}]   ;;  %s598_s5 = inlined_call_operand.hbm [shape: f32[1,1], index: 5, kind: output, shape index: {1}]  }
   0x1   :  { %v21_v0 = vld [vmem:[%s593_s0] sm:$0x3]  ;;  %v25_v5 = vld [vmem:[%s596_s3 + $0x8] sm:$0xf] }
   0x2   :  { %v22_v1 = vld [vmem:[%s594_s1] sm:$0x3]  ;;  %422 = vmatpush.msk.msra.mxu0 %vm60_vm0, %v21_v0  ;;  %v161_v4 = vmul.f32 %v21_v0, %v21_v0  ;;  %v27_v6 = vsel %vm26_vm2, %v21_v0, -inf }
   0x3   :  { %426 = vmatpush.msk.msra.mxu2 %vm60_vm0, %v22_v1  ;;  %v257_v2 = vmul.f32 %v22_v1, %v21_v0  ;;  %v23_v3 = vld [vmem:[%s595_s2] sm:$0x1] }
   0x4   :  { %423 = vmatmul.msk.f32.vlgmr.msra.gmra.mxu0 %vm56_vm1, %v23_v3  ;;  %427 = vmatmul.msk.f32.vlgmr.msra.gmra.mxu2 %vm56_vm1, %v23_v3 }
   0x5   :  { %12 = vsyncpa [#allocation5], 0  ;;  %430 = vmatpush.msk.msrb.mxu0 %vm60_vm0, %v161_v4  ;;  %28 = vmax.xlane.f32.xlu0 %v27_v6  ;;  %v39_v7 = vsel %vm26_vm2, %v21_v0, inf  ;;  %v24_v8 = vld [vmem:[%s596_s3] sm:$0xff]  ;;  %v209_v9 = vmul.f32 %v22_v1, %v22_v1  ;;  %vm84_vm4 = vcmask 97280   ;;  %vm346_vm13 = vcmask 40960  }
   0x6   :  { %424 = vmatpush.msk.msra.mxu1 %vm88_vm3, %v25_v5  ;;  %428 = vmatpush.msk.msra.mxu3 %vm88_vm3, %v25_v5  ;;  %s514_s8 = smov [#allocation2]   ;;  %s397_s13 = sshll.u32 %s597_s4, 4  ;;  %vm367_vm15 = vcmask 0   ;;  %s398_s13 = int_to_ptr.hbm [resolvable:$true] %s397_s13 }
   0x7   :  { %438 = vmatpush.msk.msra.mxu0 %vm60_vm0, %v257_v2  ;;  %432 = vmatpush.msk.msrb.mxu2 %vm88_vm3, %v25_v5  ;;  %s395_s9 = sshll.u32 %s514_s8, 4  ;;  %s515_s16 = smov [#allocation4]   ;;  %s396_s9 = int_to_ptr.vmem [resolvable:$true] %s395_s9 }
   0x8   :  { %107 = vmatpush.msra.mxu1 %v24_v8  ;;  %153 = vmatpush.msra.mxu3 %v24_v8  ;;  %s406_s17 = sshll.u32 %s515_s16, 4  ;;  %s408_s20 = sshll.u32 %s598_s5, 4  ;;  %s407_s17 = int_to_ptr.vmem [resolvable:$true] %s406_s17  ;;  %s409_s20 = int_to_ptr.hbm [resolvable:$true] %s408_s20 }
   0x9   :  { %203 = vmatpush.msrb.mxu2 %v24_v8 }
   0xa   :  { %436 = vmatpush.msk.msrb.mxu3 %vm88_vm3, %v25_v5  ;;  %434 = vmatpush.msk.msrb.mxu1 %vm60_vm0, %v209_v9 }
   0xb   :  { %440 = vmatpush.msk.msra.mxu2 %vm88_vm3, %v25_v5 }
   0xc   :  { %431 = vmatmul.msk.f32.vlgmr.msrb.gmra.mxu0 %vm56_vm1, %v23_v3  ;;  %251 = vmatpush.msrb.mxu3 %v24_v8 }
   0xd   :  { %40 = vmin.xlane.f32.xlu0 %v39_v7  ;;  %299 = vmatpush.msra.mxu2 %v24_v8 }
  0x14   :  { %439 = vmatmul.msk.f32.vlgmr.msra.gmra.mxu0 %vm56_vm1, %v23_v3 }
  0x78   :  { %v29_v10 = vpop.xlane.xlu0 %28 }
  0x79   :  { %v30_v11 = vrot.slane %v29_v10, 4 }
  0x7b   :  { %v31_v12 = vmax.f32 %v29_v10, %v30_v11  ;;  %v513_v11 = vmov 6.0  }
  0x7d   :  { %v32_v13 = vrot.slane %v31_v12, 2 }
  0x7f   :  { %v33_v14 = vmax.f32 %v31_v12, %v32_v13 }
  0x80   :  { %v41_v15 = vpop.xlane.xlu0 %40 }
  0x81   :  { %v81_v16 = vpop.f32.mrf.mxu0  ;;  %v42_v17 = vrot.slane %v41_v15, 4  ;;  %v34_v18 = vrot.slane %v33_v14, 1 }
  0x82   :  { %425 = vmatmul.msk.f32.vlgmr.msra.gmra.mxu1 %vm84_vm4, %v81_v16 }
  0x83   :  { %v43_v19 = vmin.f32 %v41_v15, %v42_v17  ;;  %v35_v20 = vmax.f32 %v33_v14, %v34_v18 }
  0x85   :  { %v44_v21 = vrot.slane %v43_v19, 2  ;;  %442 = vpush %v35_v20 }
  0x87   :  { %v132_v22 = vpop.f32.mrf.mxu2  ;;  %v45_v23 = vmin.f32 %v43_v19, %v44_v21 }
  0x88   :  { %429 = vmatmul.msk.f32.vlgmr.msra.gmra.mxu3 %vm84_vm4, %v132_v22 }
  0x89   :  { %v182_v24 = vpop.f32.mrf.mxu0  ;;  %v46_v25 = vrot.slane %v45_v23, 1 }
  0x8a   :  { %433 = vmatmul.msk.f32.vlgmr.msrb.gmra.mxu2 %vm84_vm4, %v182_v24  ;;  %435 = vmatmul.msk.f32.vlgmr.msrb.gmra.mxu1 %vm56_vm1, %v23_v3 }
  0x8b   :  { %v47_v26 = vmin.f32 %v45_v23, %v46_v25 }
  0x8d   :  { %444 = vpush %v47_v26 }
  0x91   :  { %v278_v27 = vpop.f32.mrf.mxu0 }
  0x92   :  { %441 = vmatmul.msk.f32.vlgmr.msra.gmra.mxu2 %vm84_vm4, %v278_v27 }
  0xb6   :  { %s443_s2 = spop %442 }
  0xb7   :  { %p37_p0 = scmp.gt.f32.partialorder %s443_s2, 128.0 }
  0xb9   :  { %s38_s26 = scalar_select %p37_p0, 255.0, 1.0 }
  0xbe   :  { %s445_s3 = spop %444 }
  0xbf   :  { %p49_p1 = scmp.lt.f32.partialorder %s445_s3, -0.5 }
  0xc1   :  { %s50_s27 = scalar_select %p49_p1, -1.0, 0.0 }
  0xc3   :  { %s51_s28 = ssub.f32 %s38_s26, %s50_s27 }
  0xc5   :  { %s52_s29 = smul.f32 0.01, %s51_s28 }
  0xc6   :  { %s54_s6 = smul.f32 0.03, %s51_s28 }
  0xc7   :  { %s581_s30 = smul.f32 %s52_s29, %s52_s29 }
  0xc8   :  { %s584_s7 = smul.f32 %s54_s6, %s54_s6 }
  0xc9   :  { %v326_v34 = vstv %s581_s30 }
  0xca   :  { %v306_v41 = vstv %s584_s7 }
  0xff   :  { %v109_v28 = vpop.f32.mrf.mxu1 }
 0x100   :  { %v158_v32 = vmul.f32 %v109_v28, %v109_v28 }
 0x107   :  { %v230_v29 = vpop.f32.mrf.mxu1 }
 0x108   :  { %437 = vmatmul.msk.f32.vlgmr.msrb.gmra.mxu3 %vm84_vm4, %v230_v29 }
 0x10b   :  { %v155_v30 = vpop.f32.mrf.mxu3 }
 0x10c   :  { %v159_v31 = vmul.f32 %v155_v30, %v155_v30  ;;  %v160_v46 = vmul.f32 %v155_v30, %v109_v28 }
 0x10d   :  { %v205_v36 = vpop.f32.mrf.mxu2 }
 0x10e   :  { %v325_v33 = vadd.f32 %v159_v31, %v158_v32  ;;  %v208_v38 = vsub.f32 %v205_v36, %v158_v32  ;;  %v342_v57 = vmul.f32 2.0, %v160_v46 }
 0x110   :  { %v327_v35 = vadd.f32 %v326_v34, %v325_v33  ;;  %v343_v4 = vadd.f32 %v342_v57, %v326_v34 }
 0x112   :  { %455 = vrcp.f32 %v327_v35  ;;  %vm333_vm9 = vweird.f32 %v327_v35  ;;  %v339_v61 = vand.u32 2147483648, %v327_v35  ;;  %v337_v0 = vand.u32 2147483647, %v327_v35 }
 0x114   :  { %v340_v5 = vor.u32 1.1754944e-38, %v339_v61  ;;  %vm338_vm12 = vcmp.eq.f32.partialorder %v337_v0, 8.507059e+37 }
 0x115   :  { %v301_v45 = vpop.f32.mrf.mxu2 }
 0x116   :  { %v304_v49 = vsub.f32 %v301_v45, %v160_v46 }
 0x118   :  { %v456_v42 = vpop.eup %455  ;;  %v305_v54 = vmul.f32 2.0, %v304_v49 }
 0x119   :  { %v329_v44 = vmul.f32 %v456_v42, %v327_v35  ;;  %vm334_vm7 = vweird.f32 %v456_v42 }
 0x11a   :  { %v307_v62 = vadd.f32 %v306_v41, %v305_v54  ;;  %vm335_vm11 = vmor %vm333_vm9, %vm334_vm7 }
 0x11b   :  { %v330_v47 = vsub.f32 1.0, %v329_v44 }
 0x11d   :  { %v331_v52 = vmul.f32 %v456_v42, %v330_v47 }
 0x11f   :  { %v332_v59 = vadd.f32 %v456_v42, %v331_v52 }
 0x121   :  { %v336_v3 = vsel %vm335_vm11, %v456_v42, %v332_v59 }
 0x122   :  { %v341_v7 = vsel %vm338_vm12, %v340_v5, %v336_v3 }
 0x18b   :  { %v253_v37 = vpop.f32.mrf.mxu3 }
 0x18c   :  { %v256_v39 = vsub.f32 %v253_v37, %v159_v31 }
 0x18e   :  { %v308_v40 = vadd.f32 %v256_v39, %v208_v38 }
 0x190   :  { %v309_v43 = vadd.f32 %v308_v40, %v306_v41 }
 0x192   :  { %457 = vrcp.f32 %v309_v43  ;;  %v321_v53 = vand.u32 2147483648, %v309_v43  ;;  %v319_v56 = vand.u32 2147483647, %v309_v43  ;;  %vm315_vm6 = vweird.f32 %v309_v43 }
 0x193   :  { %459 = vrcp.f32 %v513_v11 }
 0x194   :  { %v322_v60 = vor.u32 1.1754944e-38, %v321_v53  ;;  %vm320_vm10 = vcmp.eq.f32.partialorder %v319_v56, 8.507059e+37 }
 0x198   :  { %v458_v48 = vpop.eup %457 }
 0x199   :  { %v311_v50 = vmul.f32 %v458_v48, %v309_v43  ;;  %vm316_vm5 = vweird.f32 %v458_v48  ;;  %v460_v12 = vpop.eup %459 }
 0x19a   :  { %vm317_vm8 = vmor %vm315_vm6, %vm316_vm5  ;;  %v358_v13 = vmul.f32 6.0, %v460_v12  ;;  %vm362_vm14 = vweird.f32 %v460_v12 }
 0x19b   :  { %v312_v51 = vsub.f32 1.0, %v311_v50 }
 0x19c   :  { %v359_v14 = vsub.f32 1.0, %v358_v13 }
 0x19d   :  { %v313_v55 = vmul.f32 %v458_v48, %v312_v51 }
 0x19e   :  { %v360_v18 = vmul.f32 %v460_v12, %v359_v14 }
 0x19f   :  { %v314_v58 = vadd.f32 %v458_v48, %v313_v55 }
 0x1a0   :  { %v361_v21 = vadd.f32 %v460_v12, %v360_v18 }
 0x1a1   :  { %v318_v63 = vsel %vm317_vm8, %v458_v48, %v314_v58 }
 0x1a2   :  { %v323_v1 = vsel %vm320_vm10, %v322_v60, %v318_v63  ;;  %v363_v27 = vsel %vm362_vm14, %v460_v12, %v361_v21 }
 0x1a3   :  { %v324_v2 = vmul.f32 %v323_v1, %v307_v62 }
 0x1a5   :  { %v344_v6 = vmul.f32 %v343_v4, %v324_v2  ;;  %v369_v10 = vsel %vm346_vm13, %v324_v2, 0.0 }
 0x1a7   :  { %v345_v8 = vmul.f32 %v344_v6, %v341_v7 }
 0x1a9   :  { %v347_v9 = vsel %vm346_vm13, %v345_v8, 0.0 }
 0x1aa   :  { %348 = vadd.xlane.f32.xlu1 %v347_v9 }
 0x1b2   :  { %370 = vadd.xlane.f32.xlu1 %v369_v10 }
 0x21d   :  { %v349_v15 = vpop.xlane.xlu1 %348 }
 0x21e   :  { %v350_v16 = vrot.slane %v349_v15, 4 }
 0x220   :  { %v351_v17 = vadd.f32 %v350_v16, %v349_v15 }
 0x222   :  { %v352_v19 = vrot.slane %v351_v17, 2 }
 0x224   :  { %v353_v20 = vadd.f32 %v352_v19, %v351_v17 }
 0x225   :  { %v371_v22 = vpop.xlane.xlu1 %370 }
 0x226   :  { %v372_v23 = vrot.slane %v371_v22, 4  ;;  %v354_v24 = vrot.slane %v353_v20, 1 }
 0x228   :  { %v373_v25 = vadd.f32 %v372_v23, %v371_v22  ;;  %v355_v26 = vadd.f32 %v354_v24, %v353_v20 }
 0x22a   :  { %v374_v28 = vrot.slane %v373_v25, 2  ;;  %446 = vpush %v355_v26 }
 0x22b   :  { %448 = vpush %v363_v27 }
 0x22c   :  { %v375_v29 = vadd.f32 %v374_v28, %v373_v25 }
 0x22e   :  { %v376_v30 = vrot.slane %v375_v29, 1 }
 0x230   :  { %v377_v31 = vadd.f32 %v376_v30, %v375_v29 }
 0x232   :  { %450 = vpush %v377_v31 }
 0x25b   :  { %s447_s10 = spop %446 }
 0x25c   :  { %s449_s14 = spop %448 }
 0x25d   :  { %s365_s15 = smul.f32 %s449_s14, %s447_s10 }
 0x25f   :  { %v366_v32 = vstv %s365_s15 }
 0x260   :  { %368 = vst.msk [vmem:[#allocation2] sm:$0x1] %vm367_vm15, %v366_v32 }
 0x261   :  { %400 = dma.vmem_to_hbm [thread:$0]  %s396_s9, 16, %s398_s13, [#allocation3]  }
 0x263   :  { %s451_s21 = spop %450 }
 0x264   :  { %s387_s22 = smul.f32 %s451_s21, %s449_s14 }
 0x266   :  { %v388_v33 = vstv %s387_s22 }
 0x267   :  { %389 = vst.msk [vmem:[#allocation4] sm:$0x1] %vm367_vm15, %v388_v33 }
 0x268   :  { %411 = dma.vmem_to_hbm [thread:$0]  %s407_s17, 16, %s409_s20, [#allocation5]  }
 0x269   :  { %509 = dma.done.wait [#allocation3], 16  }
 0x26a   :  { %510 = vsyncadd [#allocation3], 4294967280 }
 0x26b   :  { %511 = dma.done.wait [#allocation5], 16  }
 0x26c   :  { %512 = vsyncadd [#allocation5], 4294967280 }
 0x26d   :  { %420 = vsyncpa [#allocation3], 1 }
 0x26e   :  { %421 = vsyncpa [#allocation5], 1 }

</bundles_post_ra>
